<compile_context>
chip_gen: v7x
topology: tpu7x:2x2x1
jax: 0.10.0
libtpu: 0.0.40
codegen_flags: <defaults>
</compile_context>

<pallas_src>
import jax
import jax.numpy as jnp
import numpy as np
from jax.experimental import pallas as pl
from jax.experimental.pallas import tpu as pltpu


# ----------------------------- Pallas kernels --------------------------------

def _conv_matmul_kernel(a_ref, w_ref, b_ref, o_ref):
    """One M-tile of relu(a @ w + b): bf16 inputs, f32 accumulate, bf16 out."""
    acc = jnp.dot(a_ref[...], w_ref[...], preferred_element_type=jnp.float32)
    acc = acc + b_ref[...]
    o_ref[...] = jnp.maximum(acc, 0.0).astype(o_ref.dtype)


def conv_matmul(a, w, b, *, block_rows=None):
    """a: (M, K) bf16 im2col patches, w: (K, N) bf16, b: (1, N) f32 -> (M, N) bf16."""
    M, K = a.shape
    N = w.shape[1]
    tm = M if block_rows is None else block_rows
    # Keep blocks layout-legal: full-M or a multiple of 16 rows (bf16 sublane pack).
    if M % tm != 0 or (tm != M and tm % 16 != 0):
        tm = M
    grid = (M // tm,)
    bytes_accessed = 2 * (a.size + w.size + M * N) + 4 * b.size
    return pl.pallas_call(
        _conv_matmul_kernel,
        out_shape=jax.ShapeDtypeStruct((M, N), jnp.bfloat16),
        grid=grid,
        in_specs=[
            pl.BlockSpec((tm, K), lambda i: (i, 0)),   # patches stream per M-tile
            pl.BlockSpec((K, N), lambda i: (0, 0)),    # weight resident
            pl.BlockSpec((1, N), lambda i: (0, 0)),    # bias resident
        ],
        out_specs=pl.BlockSpec((tm, N), lambda i: (i, 0)),
        compiler_params=pltpu.CompilerParams(
            dimension_semantics=("parallel",)),
        cost_estimate=pl.CostEstimate(
            flops=2 * M * K * N, transcendentals=0,
            bytes_accessed=bytes_accessed),
    )(a, w, b)


def _fc_fused_kernel(x_ref, w4_ref, b4_ref, w5_ref, b5_ref, o_ref, acc_ref):
    """Fused fc1(+ReLU) + fc2.  Grid reduces over fc1's hidden-column tiles;
    the (B, 512) hidden activation never leaves VMEM."""
    j = pl.program_id(0)

    @pl.when(j == 0)
    def _():
        acc_ref[...] = jnp.zeros_like(acc_ref)

    h = jnp.dot(x_ref[...], w4_ref[...], preferred_element_type=jnp.float32)
    h = jnp.maximum(h + b4_ref[...], 0.0).astype(jnp.bfloat16)
    acc_ref[...] += jnp.dot(h, w5_ref[...], preferred_element_type=jnp.float32)

    @pl.when(j == pl.num_programs(0) - 1)
    def _():
        o_ref[...] = acc_ref[...] + b5_ref[...]


def fc_fused(x, w4, b4, w5, b5, *, block_cols=256):
    """x: (B, K) bf16, w4: (K, H) bf16, b4: (1, H) f32, w5: (H, A) bf16,
    b5: (1, A) f32 -> (B, A) f32.  Streams w4/w5 in H-tiles (reduction grid)."""
    B, K = x.shape
    H = w4.shape[1]
    A = w5.shape[1]
    tn = block_cols
    if H % tn != 0:
        tn = H
    grid = (H // tn,)
    bytes_accessed = (2 * (x.size + w4.size + w5.size)
                      + 4 * (b4.size + b5.size + B * A))
    return pl.pallas_call(
        _fc_fused_kernel,
        out_shape=jax.ShapeDtypeStruct((B, A), jnp.float32),
        grid=grid,
        in_specs=[
            pl.BlockSpec((B, K), lambda j: (0, 0)),    # activations resident
            pl.BlockSpec((K, tn), lambda j: (0, j)),   # fc1 weight streams
            pl.BlockSpec((1, tn), lambda j: (0, j)),   # fc1 bias streams
            pl.BlockSpec((tn, A), lambda j: (j, 0)),   # fc2 weight streams
            pl.BlockSpec((1, A), lambda j: (0, 0)),    # fc2 bias resident
        ],
        out_specs=pl.BlockSpec((B, A), lambda j: (0, 0)),
        scratch_shapes=[pltpu.VMEM((B, A), jnp.float32)],
        compiler_params=pltpu.CompilerParams(
            dimension_semantics=("arbitrary",)),
        cost_estimate=pl.CostEstimate(
            flops=2 * B * K * H + 2 * B * H * A, transcendentals=0,
            bytes_accessed=bytes_accessed),
    )(x, w4, b4, w5, b5)


# ------------------------------- JAX glue -------------------------------------

def im2col_nhwc(x, kh, kw, sh, sw):
    """x: (B, H, W, C) -> (B*OH*OW, kh*kw*C); feature order (kh, kw, C)."""
    B, H, W, C = x.shape
    OH = (H - kh) // sh + 1
    OW = (W - kw) // sw + 1
    cols = []
    for i in range(kh):
        for j in range(kw):
            cols.append(x[:, i:i + sh * OH:sh, j:j + sw * OW:sw, :])  # (B,OH,OW,C)
    p = jnp.stack(cols, axis=3)                       # (B, OH, OW, kh*kw, C)
    return p.reshape(B * OH * OW, kh * kw * C), OH, OW


def dqn_forward(packed, x_u8):
    B = x_u8.shape[0]
    # NCHW u8 -> NHWC bf16 (exact for 0..255); /255 is folded into conv1's weight.
    x = jnp.transpose(x_u8, (0, 2, 3, 1)).astype(jnp.bfloat16)

    p1, oh, ow = im2col_nhwc(x, 8, 8, 4, 4)                          # (800, 256)
    a1 = conv_matmul(p1, packed["w1"], packed["b1"],
                     block_rows=p1.shape[0] // 2)                    # (800, 32)
    a1 = a1.reshape(B, oh, ow, 32)                                   # (B,20,20,32)

    p2, oh, ow = im2col_nhwc(a1, 4, 4, 2, 2)                         # (162, 512)
    a2 = conv_matmul(p2, packed["w2"], packed["b2"])                 # (162, 64)
    a2 = a2.reshape(B, oh, ow, 64)                                   # (B,9,9,64)

    p3, oh, ow = im2col_nhwc(a2, 3, 3, 1, 1)                         # (98, 576)
    a3 = conv_matmul(p3, packed["w3"], packed["b3"])                 # (98, 64)

    flat = a3.reshape(B, oh * ow * 64)       # NHWC flatten; w4 is pre-permuted
    return fc_fused(flat, packed["w4"], packed["b4"],
                    packed["w5"], packed["b5"])                      # (B, 4) f32


# -------------------------- deterministic params ------------------------------

def init_params(key, n_channels=4, n_actions=4):
    """Torch-layout f32 parameters (same init scheme as nn.Linear/Conv2d)."""
    ks = jax.random.split(key, 10)

    def u(k, shape, fan_in):
        bound = 1.0 / np.sqrt(fan_in)
        return jax.random.uniform(k, shape, jnp.float32, -bound, bound)

    p = {}
    p["w1"] = u(ks[0], (32, n_channels, 8, 8), n_channels * 8 * 8)
    p["b1"] = u(ks[1], (32,), n_channels * 8 * 8)
    p["w2"] = u(ks[2], (64, 32, 4, 4), 32 * 4 * 4)
    p["b2"] = u(ks[3], (64,), 32 * 4 * 4)
    p["w3"] = u(ks[4], (64, 64, 3, 3), 64 * 3 * 3)
    p["b3"] = u(ks[5], (64,), 64 * 3 * 3)
    p["w4"] = u(ks[6], (512, 7 * 7 * 64), 7 * 7 * 64)
    p["b4"] = u(ks[7], (512,), 7 * 7 * 64)
    p["w5"] = u(ks[8], (n_actions, 512), 512)
    p["b5"] = u(ks[9], (n_actions,), 512)
    return p


def pack_params(p):
    """One-time repack: (K, N) bf16 matmul weights in NHWC/im2col order,
    x/255 folded into conv1, f32 biases shaped (1, N)."""
    def conv_w(w, scale=1.0):
        oc, ic, kh, kw = w.shape
        return (jnp.transpose(w, (2, 3, 1, 0)).reshape(kh * kw * ic, oc)
                * scale).astype(jnp.bfloat16)

    q = {}
    q["w1"] = conv_w(p["w1"], 1.0 / 255.0)
    q["w2"] = conv_w(p["w2"])
    q["w3"] = conv_w(p["w3"])
    # fc1: permute columns from torch's (C, H, W) flatten to NHWC (H, W, C).
    w4 = p["w4"].reshape(512, 64, 7, 7)
    q["w4"] = jnp.transpose(w4, (2, 3, 1, 0)).reshape(7 * 7 * 64, 512).astype(jnp.bfloat16)
    q["w5"] = p["w5"].T.astype(jnp.bfloat16)
    for name in ("b1", "b2", "b3", "b4", "b5"):
        q[name] = p[name].reshape(1, -1).astype(jnp.float32)
    return q


# -------------------------------- reference ------------------------------------

def dqn_reference(params, x_u8):
    x = x_u8.astype(jnp.float32) / 255.0

    def conv(x, w, b, s):
        y = jax.lax.conv_general_dilated(
            x, w, (s, s), "VALID",
            dimension_numbers=("NCHW", "OIHW", "NCHW"),
            precision=jax.lax.Precision.HIGHEST)
        return y + b[None, :, None, None]

    h = jax.nn.relu(conv(x, params["w1"], params["b1"], 4))
    h = jax.nn.relu(conv(h, params["w2"], params["b2"], 2))
    h = jax.nn.relu(conv(h, params["w3"], params["b3"], 1))
    h = h.reshape(h.shape[0], -1)
    h = jax.nn.relu(jnp.dot(h, params["w4"].T,
                            precision=jax.lax.Precision.HIGHEST) + params["b4"])
    return jnp.dot(h, params["w5"].T,
                   precision=jax.lax.Precision.HIGHEST) + params["b5"]


# ---------------------------------- main ---------------------------------------

if __name__ == "__main__":
    key = jax.random.PRNGKey(0)
    k_params, k_x = jax.random.split(key)
    params = init_params(k_params, n_channels=4, n_actions=4)
    packed = pack_params(params)   # one-time weight repack (no per-forward cost)

    # Atari frame stack: batch=2, 4 channels, 84x84 (spatial size fixed by the
    # Linear(7*7*64, 512) layer in the module).
    x = jax.random.randint(k_x, (2, 4, 84, 84), 0, 256, dtype=jnp.int32).astype(jnp.uint8)

    fwd = jax.jit(dqn_forward)
    q = jax.block_until_ready(fwd(packed, x))
    assert q.shape == (2, 4) and q.dtype == jnp.float32

    q_ref = jax.block_until_ready(dqn_reference(params, x))
    np.testing.assert_allclose(np.asarray(q), np.asarray(q_ref), rtol=1e-2, atol=1e-2)

    print("KERNEL_OK")
</pallas_src>

<mosaic_0001>
module attributes {stable_mosaic.version = 11 : i64} {
  func.func @_conv_matmul_kernel(%arg0: i32, %arg1: memref<400x256xbf16, #tpu.memory_space<vmem>>, %arg2: memref<256x32xbf16, #tpu.memory_space<vmem>>, %arg3: memref<1x32xf32, #tpu.memory_space<vmem>>, %arg4: memref<400x32xbf16, #tpu.memory_space<vmem>>) attributes {dimension_semantics = [#tpu.dimension_semantics<parallel>], iteration_bounds = array<i64: 2>, scalar_prefetch = 0 : i64, scratch_operands = 0 : i64, tpu.core_type = #tpu.core_type<tc>, window_params = [{transform_indices = @transform_0, window_bounds = array<i64: 400, 256>}, {pipeline_mode = #tpu.pipeline_mode<synchronous>, transform_indices = @transform_1, window_bounds = array<i64: 256, 32>}, {pipeline_mode = #tpu.pipeline_mode<synchronous>, transform_indices = @transform_2, window_bounds = array<i64: 1, 32>}, {transform_indices = @transform_3, window_bounds = array<i64: 400, 32>}]} {
    %c0 = arith.constant 0 : index
    %c0_0 = arith.constant 0 : index
    %0 = vector.load %arg1[%c0, %c0_0] : memref<400x256xbf16, #tpu.memory_space<vmem>>, vector<400x256xbf16>
    %c0_1 = arith.constant 0 : index
    %c0_2 = arith.constant 0 : index
    %1 = vector.load %arg2[%c0_1, %c0_2] : memref<256x32xbf16, #tpu.memory_space<vmem>>, vector<256x32xbf16>
    %cst = arith.constant dense<0.000000e+00> : vector<400x32xf32>
    %2 = tpu.matmul %0, %1, %cst {dimension_numbers = #tpu.dot_dimension_numbers<[1], [0], [0], [1], [0, 0, 1, 1], [], []>} : vector<400x256xbf16>, vector<256x32xbf16>, vector<400x32xf32> -> vector<400x32xf32>
    %c0_3 = arith.constant 0 : index
    %c0_4 = arith.constant 0 : index
    %3 = vector.load %arg3[%c0_3, %c0_4] : memref<1x32xf32, #tpu.memory_space<vmem>>, vector<1x32xf32>
    %4 = vector.broadcast %3 : vector<1x32xf32> to vector<400x32xf32>
    %5 = arith.addf %2, %4 : vector<400x32xf32>
    %cst_5 = arith.constant 0.000000e+00 : f32
    %6 = vector.broadcast %cst_5 : f32 to vector<400x32xf32>
    %7 = arith.maximumf %5, %6 : vector<400x32xf32>
    %8 = arith.truncf %7 : vector<400x32xf32> to vector<400x32xbf16>
    %c0_6 = arith.constant 0 : index
    %c0_7 = arith.constant 0 : index
    %9 = vector.load %arg4[%c0_6, %c0_7] : memref<400x32xbf16, #tpu.memory_space<vmem>>, vector<400x32xbf16>
    tpu.vector_store %arg4[%c0_6, %c0_7], %8 {strides = array<i32>} : memref<400x32xbf16, #tpu.memory_space<vmem>>, vector<400x32xbf16>,
    return
  }
  func.func @transform_0(%arg0: i32) -> (i32, i32) {
    %c0_i32 = arith.constant 0 : i32
    %c0_i32_0 = arith.constant 0 : i32
    return %arg0, %c0_i32 : i32, i32
  }
  func.func @transform_1(%arg0: i32) -> (i32, i32) {
    %c0_i32 = arith.constant 0 : i32
    %c0_i32_0 = arith.constant 0 : i32
    %c0_i32_1 = arith.constant 0 : i32
    return %c0_i32, %c0_i32_0 : i32, i32
  }
  func.func @transform_2(%arg0: i32) -> (i32, i32) {
    %c0_i32 = arith.constant 0 : i32
    %c0_i32_0 = arith.constant 0 : i32
    %c0_i32_1 = arith.constant 0 : i32
    return %c0_i32, %c0_i32_0 : i32, i32
  }
  func.func @transform_3(%arg0: i32) -> (i32, i32) {
    %c0_i32 = arith.constant 0 : i32
    %c0_i32_0 = arith.constant 0 : i32
    return %arg0, %c0_i32 : i32, i32
  }
}

module attributes {stable_mosaic.version = 11 : i64} {
  func.func @_conv_matmul_kernel(%arg0: i32, %arg1: memref<162x512xbf16, #tpu.memory_space<vmem>>, %arg2: memref<512x64xbf16, #tpu.memory_space<vmem>>, %arg3: memref<1x64xf32, #tpu.memory_space<vmem>>, %arg4: memref<162x64xbf16, #tpu.memory_space<vmem>>) attributes {dimension_semantics = [#tpu.dimension_semantics<parallel>], iteration_bounds = array<i64: 1>, scalar_prefetch = 0 : i64, scratch_operands = 0 : i64, tpu.core_type = #tpu.core_type<tc>, window_params = [{transform_indices = @transform_0, window_bounds = array<i64: 162, 512>}, {pipeline_mode = #tpu.pipeline_mode<synchronous>, transform_indices = @transform_1, window_bounds = array<i64: 512, 64>}, {pipeline_mode = #tpu.pipeline_mode<synchronous>, transform_indices = @transform_2, window_bounds = array<i64: 1, 64>}, {transform_indices = @transform_3, window_bounds = array<i64: 162, 64>}]} {
    %c0 = arith.constant 0 : index
    %c0_0 = arith.constant 0 : index
    %0 = vector.load %arg1[%c0, %c0_0] : memref<162x512xbf16, #tpu.memory_space<vmem>>, vector<162x512xbf16>
    %c0_1 = arith.constant 0 : index
    %c0_2 = arith.constant 0 : index
    %1 = vector.load %arg2[%c0_1, %c0_2] : memref<512x64xbf16, #tpu.memory_space<vmem>>, vector<512x64xbf16>
    %cst = arith.constant dense<0.000000e+00> : vector<162x64xf32>
    %2 = tpu.matmul %0, %1, %cst {dimension_numbers = #tpu.dot_dimension_numbers<[1], [0], [0], [1], [0, 0, 1, 1], [], []>} : vector<162x512xbf16>, vector<512x64xbf16>, vector<162x64xf32> -> vector<162x64xf32>
    %c0_3 = arith.constant 0 : index
    %c0_4 = arith.constant 0 : index
    %3 = vector.load %arg3[%c0_3, %c0_4] : memref<1x64xf32, #tpu.memory_space<vmem>>, vector<1x64xf32>
    %4 = vector.broadcast %3 : vector<1x64xf32> to vector<162x64xf32>
    %5 = arith.addf %2, %4 : vector<162x64xf32>
    %cst_5 = arith.constant 0.000000e+00 : f32
    %6 = vector.broadcast %cst_5 : f32 to vector<162x64xf32>
    %7 = arith.maximumf %5, %6 : vector<162x64xf32>
    %8 = arith.truncf %7 : vector<162x64xf32> to vector<162x64xbf16>
    %c0_6 = arith.constant 0 : index
    %c0_7 = arith.constant 0 : index
    %9 = vector.load %arg4[%c0_6, %c0_7] : memref<162x64xbf16, #tpu.memory_space<vmem>>, vector<162x64xbf16>
    tpu.vector_store %arg4[%c0_6, %c0_7], %8 {strides = array<i32>} : memref<162x64xbf16, #tpu.memory_space<vmem>>, vector<162x64xbf16>,
    return
  }
  func.func @transform_0(%arg0: i32) -> (i32, i32) {
    %c0_i32 = arith.constant 0 : i32
    %c0_i32_0 = arith.constant 0 : i32
    return %arg0, %c0_i32 : i32, i32
  }
  func.func @transform_1(%arg0: i32) -> (i32, i32) {
    %c0_i32 = arith.constant 0 : i32
    %c0_i32_0 = arith.constant 0 : i32
    %c0_i32_1 = arith.constant 0 : i32
    return %c0_i32, %c0_i32_0 : i32, i32
  }
  func.func @transform_2(%arg0: i32) -> (i32, i32) {
    %c0_i32 = arith.constant 0 : i32
    %c0_i32_0 = arith.constant 0 : i32
    %c0_i32_1 = arith.constant 0 : i32
    return %c0_i32, %c0_i32_0 : i32, i32
  }
  func.func @transform_3(%arg0: i32) -> (i32, i32) {
    %c0_i32 = arith.constant 0 : i32
    %c0_i32_0 = arith.constant 0 : i32
    return %arg0, %c0_i32 : i32, i32
  }
}

module attributes {stable_mosaic.version = 11 : i64} {
  func.func @_conv_matmul_kernel(%arg0: i32, %arg1: memref<98x576xbf16, #tpu.memory_space<vmem>>, %arg2: memref<576x64xbf16, #tpu.memory_space<vmem>>, %arg3: memref<1x64xf32, #tpu.memory_space<vmem>>, %arg4: memref<98x64xbf16, #tpu.memory_space<vmem>>) attributes {dimension_semantics = [#tpu.dimension_semantics<parallel>], iteration_bounds = array<i64: 1>, scalar_prefetch = 0 : i64, scratch_operands = 0 : i64, tpu.core_type = #tpu.core_type<tc>, window_params = [{transform_indices = @transform_0, window_bounds = array<i64: 98, 576>}, {pipeline_mode = #tpu.pipeline_mode<synchronous>, transform_indices = @transform_1, window_bounds = array<i64: 576, 64>}, {pipeline_mode = #tpu.pipeline_mode<synchronous>, transform_indices = @transform_2, window_bounds = array<i64: 1, 64>}, {transform_indices = @transform_3, window_bounds = array<i64: 98, 64>}]} {
    %c0 = arith.constant 0 : index
    %c0_0 = arith.constant 0 : index
    %0 = vector.load %arg1[%c0, %c0_0] : memref<98x576xbf16, #tpu.memory_space<vmem>>, vector<98x576xbf16>
    %c0_1 = arith.constant 0 : index
    %c0_2 = arith.constant 0 : index
    %1 = vector.load %arg2[%c0_1, %c0_2] : memref<576x64xbf16, #tpu.memory_space<vmem>>, vector<576x64xbf16>
    %cst = arith.constant dense<0.000000e+00> : vector<98x64xf32>
    %2 = tpu.matmul %0, %1, %cst {dimension_numbers = #tpu.dot_dimension_numbers<[1], [0], [0], [1], [0, 0, 1, 1], [], []>} : vector<98x576xbf16>, vector<576x64xbf16>, vector<98x64xf32> -> vector<98x64xf32>
    %c0_3 = arith.constant 0 : index
    %c0_4 = arith.constant 0 : index
    %3 = vector.load %arg3[%c0_3, %c0_4] : memref<1x64xf32, #tpu.memory_space<vmem>>, vector<1x64xf32>
    %4 = vector.broadcast %3 : vector<1x64xf32> to vector<98x64xf32>
    %5 = arith.addf %2, %4 : vector<98x64xf32>
    %cst_5 = arith.constant 0.000000e+00 : f32
    %6 = vector.broadcast %cst_5 : f32 to vector<98x64xf32>
    %7 = arith.maximumf %5, %6 : vector<98x64xf32>
    %8 = arith.truncf %7 : vector<98x64xf32> to vector<98x64xbf16>
    %c0_6 = arith.constant 0 : index
    %c0_7 = arith.constant 0 : index
    %9 = vector.load %arg4[%c0_6, %c0_7] : memref<98x64xbf16, #tpu.memory_space<vmem>>, vector<98x64xbf16>
    tpu.vector_store %arg4[%c0_6, %c0_7], %8 {strides = array<i32>} : memref<98x64xbf16, #tpu.memory_space<vmem>>, vector<98x64xbf16>,
    return
  }
  func.func @transform_0(%arg0: i32) -> (i32, i32) {
    %c0_i32 = arith.constant 0 : i32
    %c0_i32_0 = arith.constant 0 : i32
    return %arg0, %c0_i32 : i32, i32
  }
  func.func @transform_1(%arg0: i32) -> (i32, i32) {
    %c0_i32 = arith.constant 0 : i32
    %c0_i32_0 = arith.constant 0 : i32
    %c0_i32_1 = arith.constant 0 : i32
    return %c0_i32, %c0_i32_0 : i32, i32
  }
  func.func @transform_2(%arg0: i32) -> (i32, i32) {
    %c0_i32 = arith.constant 0 : i32
    %c0_i32_0 = arith.constant 0 : i32
    %c0_i32_1 = arith.constant 0 : i32
    return %c0_i32, %c0_i32_0 : i32, i32
  }
  func.func @transform_3(%arg0: i32) -> (i32, i32) {
    %c0_i32 = arith.constant 0 : i32
    %c0_i32_0 = arith.constant 0 : i32
    return %arg0, %c0_i32 : i32, i32
  }
}

module attributes {stable_mosaic.version = 11 : i64} {
  func.func @_fc_fused_kernel(%arg0: i32, %arg1: memref<2x3136xbf16, #tpu.memory_space<vmem>>, %arg2: memref<3136x256xbf16, #tpu.memory_space<vmem>>, %arg3: memref<1x256xf32, #tpu.memory_space<vmem>>, %arg4: memref<256x4xbf16, #tpu.memory_space<vmem>>, %arg5: memref<1x4xf32, #tpu.memory_space<vmem>>, %arg6: memref<2x4xf32, #tpu.memory_space<vmem>>, %arg7: memref<2x4xf32, #tpu.memory_space<vmem>>) attributes {dimension_semantics = [#tpu.dimension_semantics<arbitrary>], iteration_bounds = array<i64: 2>, scalar_prefetch = 0 : i64, scratch_operands = 1 : i64, tpu.core_type = #tpu.core_type<tc>, window_params = [{pipeline_mode = #tpu.pipeline_mode<synchronous>, transform_indices = @transform_0, window_bounds = array<i64: 2, 3136>}, {transform_indices = @transform_1, window_bounds = array<i64: 3136, 256>}, {transform_indices = @transform_2, window_bounds = array<i64: 1, 256>}, {transform_indices = @transform_3, window_bounds = array<i64: 256, 4>}, {pipeline_mode = #tpu.pipeline_mode<synchronous>, transform_indices = @transform_4, window_bounds = array<i64: 1, 4>}, {pipeline_mode = #tpu.pipeline_mode<synchronous>, transform_indices = @transform_5, window_bounds = array<i64: 2, 4>}]} {
    %c0_i32 = arith.constant 0 : i32
    %0 = arith.cmpi eq, %arg0, %c0_i32 : i32
    %1 = arith.extui %0 : i1 to i32
    %c0_i32_0 = arith.constant 0 : i32
    %2 = arith.cmpi ne, %1, %c0_i32_0 : i32
    scf.if %2 {
      %cst_15 = arith.constant 0.000000e+00 : f32
      %20 = vector.broadcast %cst_15 : f32 to vector<2x4xf32>
      %c0_16 = arith.constant 0 : index
      %c0_17 = arith.constant 0 : index
      %21 = vector.load %arg7[%c0_16, %c0_17] : memref<2x4xf32, #tpu.memory_space<vmem>>, vector<2x4xf32>
      tpu.vector_store %arg7[%c0_16, %c0_17], %20 {strides = array<i32>} : memref<2x4xf32, #tpu.memory_space<vmem>>, vector<2x4xf32>,
    } else {
    }
    %c0 = arith.constant 0 : index
    %c0_1 = arith.constant 0 : index
    %3 = vector.load %arg1[%c0, %c0_1] : memref<2x3136xbf16, #tpu.memory_space<vmem>>, vector<2x3136xbf16>
    %c0_2 = arith.constant 0 : index
    %c0_3 = arith.constant 0 : index
    %4 = vector.load %arg2[%c0_2, %c0_3] : memref<3136x256xbf16, #tpu.memory_space<vmem>>, vector<3136x256xbf16>
    %cst = arith.constant dense<0.000000e+00> : vector<2x256xf32>
    %5 = tpu.matmul %3, %4, %cst {dimension_numbers = #tpu.dot_dimension_numbers<[1], [0], [0], [1], [0, 0, 1, 1], [], []>} : vector<2x3136xbf16>, vector<3136x256xbf16>, vector<2x256xf32> -> vector<2x256xf32>
    %c0_4 = arith.constant 0 : index
    %c0_5 = arith.constant 0 : index
    %6 = vector.load %arg3[%c0_4, %c0_5] : memref<1x256xf32, #tpu.memory_space<vmem>>, vector<1x256xf32>
    %7 = vector.broadcast %6 : vector<1x256xf32> to vector<2x256xf32>
    %8 = arith.addf %5, %7 : vector<2x256xf32>
    %cst_6 = arith.constant 0.000000e+00 : f32
    %9 = vector.broadcast %cst_6 : f32 to vector<2x256xf32>
    %10 = arith.maximumf %8, %9 : vector<2x256xf32>
    %11 = arith.truncf %10 : vector<2x256xf32> to vector<2x256xbf16>
    %c0_7 = arith.constant 0 : index
    %c0_8 = arith.constant 0 : index
    %12 = vector.load %arg7[%c0_7, %c0_8] : memref<2x4xf32, #tpu.memory_space<vmem>>, vector<2x4xf32>
    %c0_9 = arith.constant 0 : index
    %c0_10 = arith.constant 0 : index
    %13 = vector.load %arg4[%c0_9, %c0_10] : memref<256x4xbf16, #tpu.memory_space<vmem>>, vector<256x4xbf16>
    %cst_11 = arith.constant dense<0.000000e+00> : vector<2x4xf32>
    %14 = tpu.matmul %11, %13, %cst_11 {dimension_numbers = #tpu.dot_dimension_numbers<[1], [0], [0], [1], [0, 0, 1, 1], [], []>} : vector<2x256xbf16>, vector<256x4xbf16>, vector<2x4xf32> -> vector<2x4xf32>
    %15 = arith.addf %12, %14 : vector<2x4xf32>
    %c0_12 = arith.constant 0 : index
    %c0_13 = arith.constant 0 : index
    %16 = vector.load %arg7[%c0_12, %c0_13] : memref<2x4xf32, #tpu.memory_space<vmem>>, vector<2x4xf32>
    tpu.vector_store %arg7[%c0_12, %c0_13], %15 {strides = array<i32>} : memref<2x4xf32, #tpu.memory_space<vmem>>, vector<2x4xf32>,
    %c1_i32 = arith.constant 1 : i32
    %17 = arith.cmpi eq, %arg0, %c1_i32 : i32
    %18 = arith.extui %17 : i1 to i32
    %c0_i32_14 = arith.constant 0 : i32
    %19 = arith.cmpi ne, %18, %c0_i32_14 : i32
    scf.if %19 {
      %c0_15 = arith.constant 0 : index
      %c0_16 = arith.constant 0 : index
      %20 = vector.load %arg7[%c0_15, %c0_16] : memref<2x4xf32, #tpu.memory_space<vmem>>, vector<2x4xf32>
      %c0_17 = arith.constant 0 : index
      %c0_18 = arith.constant 0 : index
      %21 = vector.load %arg5[%c0_17, %c0_18] : memref<1x4xf32, #tpu.memory_space<vmem>>, vector<1x4xf32>
      %22 = vector.broadcast %21 : vector<1x4xf32> to vector<2x4xf32>
      %23 = arith.addf %20, %22 : vector<2x4xf32>
      %c0_19 = arith.constant 0 : index
      %c0_20 = arith.constant 0 : index
      %24 = vector.load %arg6[%c0_19, %c0_20] : memref<2x4xf32, #tpu.memory_space<vmem>>, vector<2x4xf32>
      tpu.vector_store %arg6[%c0_19, %c0_20], %23 {strides = array<i32>} : memref<2x4xf32, #tpu.memory_space<vmem>>, vector<2x4xf32>,
    } else {
    }
    return
  }
  func.func @transform_0(%arg0: i32) -> (i32, i32) {
    %c0_i32 = arith.constant 0 : i32
    %c0_i32_0 = arith.constant 0 : i32
    %c0_i32_1 = arith.constant 0 : i32
    return %c0_i32, %c0_i32_0 : i32, i32
  }
  func.func @transform_1(%arg0: i32) -> (i32, i32) {
    %c0_i32 = arith.constant 0 : i32
    %c0_i32_0 = arith.constant 0 : i32
    return %c0_i32, %arg0 : i32, i32
  }
  func.func @transform_2(%arg0: i32) -> (i32, i32) {
    %c0_i32 = arith.constant 0 : i32
    %c0_i32_0 = arith.constant 0 : i32
    return %c0_i32, %arg0 : i32, i32
  }
  func.func @transform_3(%arg0: i32) -> (i32, i32) {
    %c0_i32 = arith.constant 0 : i32
    %c0_i32_0 = arith.constant 0 : i32
    return %arg0, %c0_i32 : i32, i32
  }
  func.func @transform_4(%arg0: i32) -> (i32, i32) {
    %c0_i32 = arith.constant 0 : i32
    %c0_i32_0 = arith.constant 0 : i32
    %c0_i32_1 = arith.constant 0 : i32
    return %c0_i32, %c0_i32_0 : i32, i32
  }
  func.func @transform_5(%arg0: i32) -> (i32, i32) {
    %c0_i32 = arith.constant 0 : i32
    %c0_i32_0 = arith.constant 0 : i32
    %c0_i32_1 = arith.constant 0 : i32
    return %c0_i32, %c0_i32_0 : i32, i32
  }
}

</mosaic_0001>

<bundles_post_ra>
// kernel: dqn_forward.4
= control target key start
LH: loop header
LB: loop body
LE: loop exit
PB: predicated region body
PF: predicated region fallthrough
CT: control target
= control target key end

     0   :  { %s1542_s12 = smov 0   ;;  %s1852_s0 = inlined_call_operand.vmem [shape: bf16[800,256], index: 0, kind: input, shape index: {}]   ;;  %s1853_s1 = inlined_call_operand.vmem [shape: bf16[256,32], index: 1, kind: input, shape index: {}]   ;;  %s1854_s2 = inlined_call_operand.vmem [shape: f32[1,32], index: 2, kind: input, shape index: {}]   ;;  %s1855_s3 = inlined_call_operand.vmem [shape: bf16[800,32], index: 3, kind: output, shape index: {}]  }
   0x1 LB: > { %s1203_s13 = sadd.s32 4294967295, %s1519_s12   ;;  %p1207_p0 = scmp.ge.s32.totalorder %s1519_s12, 1  ;;  %s1519_s12 = sphi %s1542_s12, %s13_s12  }
   0x2   : > { %p139_p1 = scmp.lt.s32.totalorder %s1519_s12, 3 }
   0x4   : > { %p140_p2 = pnand %p1207_p0, %p139_p1 }
   0x5   : > { %v1422_v0 = vld [vmem:[%s1853_s1] sm:$0xff] (!%p140_p2)   ;;  %v1521_v1 = vmov (!%p140_p2), 0   ;;  %s164_s16 = smul.u32 (!%p140_p2), 50, %s1203_s13  ;;  %v1423_v2 = vld [vmem:[%s1853_s1 + $0x8] sm:$0xff] (!%p140_p2)   ;;  %v1424_v3 = vld [vmem:[%s1853_s1 + $0x10] sm:$0xff] (!%p140_p2)   ;;  %vm1096_vm0 = vcmask (!%p140_p2), 257024  }
   0x6   : > { %143 = sbr.rel (%p140_p2) target bundleno = 387 (0x183), region = 32  ;;  %613 = vmatprep.subr.bf16.mxu0 (!%p140_p2), %v1521_v1  ;;  %1381 = vmatprep.subr.bf16.mxu1 (!%p140_p2), %v1521_v1  ;;  %v1425_v4 = vld [vmem:[%s1853_s1 + $0x18] sm:$0xff] (!%p140_p2)   ;;  %v1426_v5 = vld [vmem:[%s1853_s1 + $0x20] sm:$0xff] (!%p140_p2)   ;;  %v1427_v7 = vld [vmem:[%s1853_s1 + $0x28] sm:$0xff] (!%p140_p2)  }
   0x7   : > { %614 = vmatpush1.bf16.msra.mxu0 (!%p140_p2), %v1422_v0  ;;  %1397 = vmatpush1.bf16.msra.mxu1 (!%p140_p2), %v1422_v0  ;;  %p165_p3 = scmp.lt.s32.totalorder (!%p140_p2), %s164_s16, 99  ;;  %v1428_v9 = vld [vmem:[%s1853_s1 + $0x30] sm:$0xff] (!%p140_p2)   ;;  %v1429_v10 = vld [vmem:[%s1853_s1 + $0x38] sm:$0xff] (!%p140_p2)   ;;  %v1430_v11 = vld [vmem:[%s1853_s1 + $0x40] sm:$0xff] (!%p140_p2)  }
   0x8   : > { %615 = vmatprep.subr.bf16.mxu0 (!%p140_p2), %v1521_v1  ;;  %1382 = vmatprep.subr.bf16.mxu1 (!%p140_p2), %v1521_v1  ;;  %v1431_v12 = vld [vmem:[%s1853_s1 + $0x48] sm:$0xff] (!%p140_p2)   ;;  %v1432_v13 = vld [vmem:[%s1853_s1 + $0x50] sm:$0xff] (!%p140_p2)   ;;  %v1433_v14 = vld [vmem:[%s1853_s1 + $0x58] sm:$0xff] (!%p140_p2)  }
   0x9   : > { %v1434_v15 = vld [vmem:[%s1853_s1 + $0x60] sm:$0xff] (!%p140_p2)   ;;  %v1435_v16 = vld [vmem:[%s1853_s1 + $0x68] sm:$0xff] (!%p140_p2)   ;;  %v1436_v17 = vld [vmem:[%s1853_s1 + $0x70] sm:$0xff] (!%p140_p2)  }
   0xa   : > { %v1437_v18 = vld [vmem:[%s1853_s1 + $0x78] sm:$0xff] (!%p140_p2)  }
   0xb   : > { %616 = vmatpush1.bf16.msra.mxu0 (!%p140_p2), %v1423_v2  ;;  %1398 = vmatpush1.bf16.msra.mxu1 (!%p140_p2), %v1423_v2 }
   0xc   : > { %617 = vmatprep.subr.bf16.mxu0 (!%p140_p2), %v1521_v1  ;;  %1383 = vmatprep.subr.bf16.mxu1 (!%p140_p2), %v1521_v1 }
   0xd   : > { %s1857_s16 = smov (!%p165_p3, %s164_s16), 99 }
   0xe   : > { %s1330_s23 = sshll.u32 %s1857_s16, 3  ;;  %s1210_s29 = sshll.u32 %s1857_s16, 2 }
   0xf   : > { %618 = vmatpush1.bf16.msra.mxu0 %v1424_v3  ;;  %1399 = vmatpush1.bf16.msra.mxu1 %v1424_v3  ;;  %s1579_s28 = scalar_lea.vmem %s1852_s0, %s1330_s23  ;;  %v1691_v3 = vld [vmem:[%s1854_s2] ss:$0 sm:$0xff]  ;;  %s1701_s16 = scalar_lea.vmem %s1855_s3, %s1210_s29 }
  0x10   : > { %619 = vmatprep.subr.bf16.mxu0 %v1521_v1  ;;  %1384 = vmatprep.subr.bf16.mxu1 %v1521_v1  ;;  %v1440_v6 = vld [vmem:[%s1579_s28 + $0x4] ss:$8 sps:$4 sm:$0xff]   ;;  %v1443_v8 = vld [vmem:[%s1579_s28 + $0xd4] ss:$8 sps:$4 sm:$0xff]   ;;  %v1438_v19 = vld [vmem:[%s1579_s28] ss:$8 sps:$4 sm:$0xff]  }
  0x11   : > { %645 = vmatprep.mubr.bf16.mxu0 %v1440_v6  ;;  %749 = vmatprep.mubr.bf16.mxu1 %v1443_v8  ;;  %v1441_v20 = vld [vmem:[%s1579_s28 + $0xd0] ss:$8 sps:$4 sm:$0xff]   ;;  %v1444_v21 = vld [vmem:[%s1579_s28 + $0x14] ss:$8 sps:$4 sm:$0xff]   ;;  %v1447_v22 = vld [vmem:[%s1579_s28 + $0xe4] ss:$8 sps:$4 sm:$0xff]  }
  0x12   : > { %v1446_v23 = vld [vmem:[%s1579_s28 + $0x10] ss:$8 sps:$4 sm:$0xff]   ;;  %v1449_v24 = vld [vmem:[%s1579_s28 + $0xe0] ss:$8 sps:$4 sm:$0xff]   ;;  %v1450_v25 = vld [vmem:[%s1579_s28 + $0x24] ss:$8 sps:$4 sm:$0xff]  }
  0x13   : > { %620 = vmatpush1.bf16.msra.mxu0 %v1425_v4  ;;  %1400 = vmatpush1.bf16.msra.mxu1 %v1425_v4  ;;  %v1453_v26 = vld [vmem:[%s1579_s28 + $0xf4] ss:$8 sps:$4 sm:$0xff]   ;;  %v1452_v27 = vld [vmem:[%s1579_s28 + $0x20] ss:$8 sps:$4 sm:$0xff]   ;;  %v1455_v28 = vld [vmem:[%s1579_s28 + $0xf0] ss:$8 sps:$4 sm:$0xff]  }
  0x14   : > { %621 = vmatprep.subr.bf16.mxu0 %v1521_v1  ;;  %1385 = vmatprep.subr.bf16.mxu1 %v1521_v1  ;;  %v1456_v29 = vld [vmem:[%s1579_s28 + $0x34] ss:$8 sps:$4 sm:$0xff]   ;;  %v1459_v30 = vld [vmem:[%s1579_s28 + $0x104] ss:$8 sps:$4 sm:$0xff]   ;;  %v1458_v31 = vld [vmem:[%s1579_s28 + $0x30] ss:$8 sps:$4 sm:$0xff]  }
  0x15   : > { %v1461_v32 = vld [vmem:[%s1579_s28 + $0x100] ss:$8 sps:$4 sm:$0xff]   ;;  %v1462_v33 = vld [vmem:[%s1579_s28 + $0x44] ss:$8 sps:$4 sm:$0xff]   ;;  %v1465_v34 = vld [vmem:[%s1579_s28 + $0x114] ss:$8 sps:$4 sm:$0xff]  }
  0x16   : > { %v1464_v35 = vld [vmem:[%s1579_s28 + $0x40] ss:$8 sps:$4 sm:$0xff]   ;;  %v1467_v36 = vld [vmem:[%s1579_s28 + $0x110] ss:$8 sps:$4 sm:$0xff]   ;;  %v1468_v37 = vld [vmem:[%s1579_s28 + $0x54] ss:$8 sps:$4 sm:$0xff]  }
  0x17   : > { %622 = vmatpush1.bf16.msra.mxu0 %v1426_v5  ;;  %1401 = vmatpush1.bf16.msra.mxu1 %v1426_v5  ;;  %v1471_v38 = vld [vmem:[%s1579_s28 + $0x124] ss:$8 sps:$4 sm:$0xff]   ;;  %v1470_v39 = vld [vmem:[%s1579_s28 + $0x50] ss:$8 sps:$4 sm:$0xff]   ;;  %v1473_v40 = vld [vmem:[%s1579_s28 + $0x120] ss:$8 sps:$4 sm:$0xff]  }
  0x18   : > { %623 = vmatprep.subr.bf16.mxu0 %v1521_v1  ;;  %1386 = vmatprep.subr.bf16.mxu1 %v1521_v1  ;;  %v1474_v41 = vld [vmem:[%s1579_s28 + $0x64] ss:$8 sps:$4 sm:$0xff]   ;;  %v1477_v42 = vld [vmem:[%s1579_s28 + $0x134] ss:$8 sps:$4 sm:$0xff]   ;;  %v1476_v43 = vld [vmem:[%s1579_s28 + $0x60] ss:$8 sps:$4 sm:$0xff]  }
  0x19   : > { %v1479_v44 = vld [vmem:[%s1579_s28 + $0x130] ss:$8 sps:$4 sm:$0xff]   ;;  %v1480_v45 = vld [vmem:[%s1579_s28 + $0x74] ss:$8 sps:$4 sm:$0xff]   ;;  %v1483_v46 = vld [vmem:[%s1579_s28 + $0x144] ss:$8 sps:$4 sm:$0xff]  }
  0x1a   : > { %v1482_v47 = vld [vmem:[%s1579_s28 + $0x70] ss:$8 sps:$4 sm:$0xff]   ;;  %v1485_v48 = vld [vmem:[%s1579_s28 + $0x140] ss:$8 sps:$4 sm:$0xff]   ;;  %v1486_v49 = vld [vmem:[%s1579_s28 + $0x84] ss:$8 sps:$4 sm:$0xff]  }
  0x1b   : > { %624 = vmatpush1.bf16.msra.mxu0 %v1427_v7  ;;  %1402 = vmatpush1.bf16.msra.mxu1 %v1427_v7  ;;  %v1489_v50 = vld [vmem:[%s1579_s28 + $0x154] ss:$8 sps:$4 sm:$0xff]   ;;  %v1488_v51 = vld [vmem:[%s1579_s28 + $0x80] ss:$8 sps:$4 sm:$0xff]   ;;  %v1491_v52 = vld [vmem:[%s1579_s28 + $0x150] ss:$8 sps:$4 sm:$0xff]  }
  0x1c   : > { %625 = vmatprep.subr.bf16.mxu0 %v1521_v1  ;;  %1387 = vmatprep.subr.bf16.mxu1 %v1521_v1  ;;  %v1492_v53 = vld [vmem:[%s1579_s28 + $0x94] ss:$8 sps:$4 sm:$0xff]   ;;  %v1495_v54 = vld [vmem:[%s1579_s28 + $0x164] ss:$8 sps:$4 sm:$0xff]   ;;  %v1494_v55 = vld [vmem:[%s1579_s28 + $0x90] ss:$8 sps:$4 sm:$0xff]  }
  0x1d   : > { %v1497_v56 = vld [vmem:[%s1579_s28 + $0x160] ss:$8 sps:$4 sm:$0xff]   ;;  %v1498_v57 = vld [vmem:[%s1579_s28 + $0xa4] ss:$8 sps:$4 sm:$0xff]   ;;  %v1501_v58 = vld [vmem:[%s1579_s28 + $0x174] ss:$8 sps:$4 sm:$0xff]  }
  0x1e   : > { %v1500_v59 = vld [vmem:[%s1579_s28 + $0xa0] ss:$8 sps:$4 sm:$0xff]   ;;  %v1503_v60 = vld [vmem:[%s1579_s28 + $0x170] ss:$8 sps:$4 sm:$0xff]   ;;  %v1504_v61 = vld [vmem:[%s1579_s28 + $0xb4] ss:$8 sps:$4 sm:$0xff]  }
  0x1f   : > { %626 = vmatpush1.bf16.msra.mxu0 %v1428_v9  ;;  %1403 = vmatpush1.bf16.msra.mxu1 %v1428_v9  ;;  %v1507_v62 = vld [vmem:[%s1579_s28 + $0x184] ss:$8 sps:$4 sm:$0xff]   ;;  %v1506_v63 = vld [vmem:[%s1579_s28 + $0xb0] ss:$8 sps:$4 sm:$0xff]   ;;  %v1509_v0 = vld [vmem:[%s1579_s28 + $0x180] ss:$8 sps:$4 sm:$0xff]  }
  0x20   : > { %627 = vmatprep.subr.bf16.mxu0 %v1521_v1  ;;  %1388 = vmatprep.subr.bf16.mxu1 %v1521_v1  ;;  %v1512_v2 = vld [vmem:[%s1579_s28 + $0xc0] ss:$8 sps:$4 sm:$0xff]  }
  0x23   : > { %628 = vmatpush1.bf16.msra.mxu0 %v1429_v10  ;;  %1404 = vmatpush1.bf16.msra.mxu1 %v1429_v10 }
  0x24   : > { %629 = vmatprep.subr.bf16.mxu0 %v1521_v1  ;;  %1389 = vmatprep.subr.bf16.mxu1 %v1521_v1 }
  0x27   : > { %630 = vmatpush1.bf16.msra.mxu0 %v1430_v11  ;;  %1405 = vmatpush1.bf16.msra.mxu1 %v1430_v11 }
  0x28   : > { %631 = vmatprep.subr.bf16.mxu0 %v1521_v1  ;;  %1390 = vmatprep.subr.bf16.mxu1 %v1521_v1 }
  0x2b   : > { %632 = vmatpush1.bf16.msra.mxu0 %v1431_v12  ;;  %1406 = vmatpush1.bf16.msra.mxu1 %v1431_v12 }
  0x2c   : > { %633 = vmatprep.subr.bf16.mxu0 %v1521_v1  ;;  %1391 = vmatprep.subr.bf16.mxu1 %v1521_v1 }
  0x2f   : > { %634 = vmatpush1.bf16.msra.mxu0 %v1432_v13  ;;  %1407 = vmatpush1.bf16.msra.mxu1 %v1432_v13 }
  0x30   : > { %635 = vmatprep.subr.bf16.mxu0 %v1521_v1  ;;  %1392 = vmatprep.subr.bf16.mxu1 %v1521_v1 }
  0x33   : > { %636 = vmatpush1.bf16.msra.mxu0 %v1433_v14  ;;  %1408 = vmatpush1.bf16.msra.mxu1 %v1433_v14 }
  0x34   : > { %637 = vmatprep.subr.bf16.mxu0 %v1521_v1  ;;  %1393 = vmatprep.subr.bf16.mxu1 %v1521_v1 }
  0x37   : > { %638 = vmatpush1.bf16.msra.mxu0 %v1434_v15  ;;  %1409 = vmatpush1.bf16.msra.mxu1 %v1434_v15 }
  0x38   : > { %639 = vmatprep.subr.bf16.mxu0 %v1521_v1  ;;  %1394 = vmatprep.subr.bf16.mxu1 %v1521_v1 }
  0x3b   : > { %640 = vmatpush1.bf16.msra.mxu0 %v1435_v16  ;;  %1410 = vmatpush1.bf16.msra.mxu1 %v1435_v16 }
  0x3c   : > { %641 = vmatprep.subr.bf16.mxu0 %v1521_v1  ;;  %1395 = vmatprep.subr.bf16.mxu1 %v1521_v1 }
  0x3f   : > { %642 = vmatpush1.bf16.msra.mxu0 %v1436_v17  ;;  %1411 = vmatpush1.bf16.msra.mxu1 %v1436_v17 }
  0x40   : > { %643 = vmatprep.subr.bf16.mxu0 %v1521_v1  ;;  %1396 = vmatprep.subr.bf16.mxu1 %v1521_v1  ;;  %v1510_v1 = vld [vmem:[%s1579_s28 + $0xc4] ss:$8 sps:$4 sm:$0xff]  }
  0x43   : > { %644 = vmatpush1.bf16.msra.mxu0 %v1437_v18  ;;  %1412 = vmatpush1.bf16.msra.mxu1 %v1437_v18 }
  0x46   : > { %646 = vmatmul.mubr.bf16.vlgmr.msra.gmra.mrb[0].mxu0 %v1438_v19  ;;  %750 = vmatmul.mubr.bf16.vlgmr.msra.gmra.mrb[0].mxu1 %v1441_v20 }
  0x47   : > { %653 = vmatprep.mubr.bf16.mxu0 %v1444_v21  ;;  %757 = vmatprep.mubr.bf16.mxu1 %v1447_v22 }
  0x4e   : > { %654 = vmatmul.mubr.bf16.gmra.mrb[4].mxu0 %v1446_v23  ;;  %758 = vmatmul.mubr.bf16.gmra.mrb[4].mxu1 %v1449_v24 }
  0x4f   : > { %661 = vmatprep.mubr.bf16.mxu0 %v1450_v25  ;;  %765 = vmatprep.mubr.bf16.mxu1 %v1453_v26 }
  0x56   : > { %662 = vmatmul.mubr.bf16.gmra.mrb[8].mxu0 %v1452_v27  ;;  %766 = vmatmul.mubr.bf16.gmra.mrb[8].mxu1 %v1455_v28 }
  0x57   : > { %669 = vmatprep.mubr.bf16.mxu0 %v1456_v29  ;;  %773 = vmatprep.mubr.bf16.mxu1 %v1459_v30 }
  0x5e   : > { %670 = vmatmul.mubr.bf16.gmra.mrb[12].mxu0 %v1458_v31  ;;  %774 = vmatmul.mubr.bf16.gmra.mrb[12].mxu1 %v1461_v32 }
  0x5f   : > { %677 = vmatprep.mubr.bf16.mxu0 %v1462_v33  ;;  %781 = vmatprep.mubr.bf16.mxu1 %v1465_v34 }
  0x66   : > { %678 = vmatmul.mubr.bf16.gmra.mrb[16].mxu0 %v1464_v35  ;;  %782 = vmatmul.mubr.bf16.gmra.mrb[16].mxu1 %v1467_v36 }
  0x67   : > { %685 = vmatprep.mubr.bf16.mxu0 %v1468_v37  ;;  %789 = vmatprep.mubr.bf16.mxu1 %v1471_v38 }
  0x6e   : > { %686 = vmatmul.mubr.bf16.gmra.mrb[20].mxu0 %v1470_v39  ;;  %790 = vmatmul.mubr.bf16.gmra.mrb[20].mxu1 %v1473_v40 }
  0x6f   : > { %693 = vmatprep.mubr.bf16.mxu0 %v1474_v41  ;;  %797 = vmatprep.mubr.bf16.mxu1 %v1477_v42 }
  0x76   : > { %694 = vmatmul.mubr.bf16.gmra.mrb[24].mxu0 %v1476_v43  ;;  %798 = vmatmul.mubr.bf16.gmra.mrb[24].mxu1 %v1479_v44 }
  0x77   : > { %701 = vmatprep.mubr.bf16.mxu0 %v1480_v45  ;;  %805 = vmatprep.mubr.bf16.mxu1 %v1483_v46 }
  0x7e   : > { %702 = vmatmul.mubr.bf16.gmra.mrb[28].mxu0 %v1482_v47  ;;  %806 = vmatmul.mubr.bf16.gmra.mrb[28].mxu1 %v1485_v48 }
  0x7f   : > { %709 = vmatprep.mubr.bf16.mxu0 %v1486_v49  ;;  %813 = vmatprep.mubr.bf16.mxu1 %v1489_v50 }
  0x86   : > { %710 = vmatmul.mubr.bf16.gmra.mrb[32].mxu0 %v1488_v51  ;;  %814 = vmatmul.mubr.bf16.gmra.mrb[32].mxu1 %v1491_v52 }
  0x87   : > { %717 = vmatprep.mubr.bf16.mxu0 %v1492_v53  ;;  %821 = vmatprep.mubr.bf16.mxu1 %v1495_v54 }
  0x8e   : > { %718 = vmatmul.mubr.bf16.gmra.mrb[36].mxu0 %v1494_v55  ;;  %822 = vmatmul.mubr.bf16.gmra.mrb[36].mxu1 %v1497_v56 }
  0x8f   : > { %725 = vmatprep.mubr.bf16.mxu0 %v1498_v57  ;;  %829 = vmatprep.mubr.bf16.mxu1 %v1501_v58 }
  0x96   : > { %726 = vmatmul.mubr.bf16.gmra.mrb[40].mxu0 %v1500_v59  ;;  %830 = vmatmul.mubr.bf16.gmra.mrb[40].mxu1 %v1503_v60 }
  0x97   : > { %733 = vmatprep.mubr.bf16.mxu0 %v1504_v61  ;;  %837 = vmatprep.mubr.bf16.mxu1 %v1507_v62 }
  0x9e   : > { %734 = vmatmul.mubr.bf16.gmra.mrb[44].mxu0 %v1506_v63  ;;  %838 = vmatmul.mubr.bf16.gmra.mrb[44].mxu1 %v1509_v0 }
  0x9f   : > { %741 = vmatprep.mubr.bf16.mxu0 %v1510_v1 }
  0xa6   : > { %742 = vmatmul.mubr.bf16.gmra.mrb[48].mxu0 %v1512_v2 }
 0x119   : > { %v647_v4 = vpop.f32.mrb[0].mxu0  ;;  %v751_v5 = vpop.f32.mrb[0].mxu1 }
 0x11a   : > { %v648_v6 = vadd.f32 %v1691_v3, %v647_v4  ;;  %v649_v7 = vpop.f32.mrb[1].mxu0  ;;  %v752_v8 = vadd.f32 %v1691_v3, %v751_v5  ;;  %v753_v9 = vpop.f32.mrb[1].mxu1 }
 0x11b   : > { %v650_v10 = vpop.f32.mrb[2].mxu0  ;;  %v754_v11 = vpop.f32.mrb[2].mxu1 }
 0x11c   : > { %v846_v12 = vmax.f32 %v648_v6, 0.0  ;;  %v651_v13 = vadd.f32 %v1691_v3, %v650_v10  ;;  %v652_v14 = vpop.f32.mrb[3].mxu0  ;;  %v872_v15 = vmax.f32 %v752_v8, 0.0  ;;  %v755_v16 = vadd.f32 %v1691_v3, %v754_v11  ;;  %v756_v17 = vpop.f32.mrb[3].mxu1 }
 0x11e   : > { %v1331_v18 = vpack.c.bf16 %v846_v12, %v846_v12  ;;  %v847_v19 = vmax.f32 %v651_v13, 0.0  ;;  %v1357_v20 = vpack.c.bf16 %v872_v15, %v872_v15  ;;  %v873_v21 = vmax.f32 %v755_v16, 0.0 }
 0x120   : > { %1097 = vst.msk [vmem:[%s1701_s16] sm:$0xf] %vm1096_vm0, %v1331_v18  ;;  %v1332_v22 = vpack.c.bf16 %v847_v19, %v847_v19  ;;  %1123 = vst.msk [vmem:[%s1701_s16 + $0x68] sm:$0xf] %vm1096_vm0, %v1357_v20  ;;  %v1358_v23 = vpack.c.bf16 %v873_v21, %v873_v21 }
 0x121   : > { %v655_v24 = vpop.f32.mrb[4].mxu0  ;;  %v759_v25 = vpop.f32.mrb[4].mxu1 }
 0x122   : > { %1098 = vst.msk [vmem:[%s1701_s16 + $0x4] sm:$0xf] %vm1096_vm0, %v1332_v22  ;;  %1124 = vst.msk [vmem:[%s1701_s16 + $0x6c] sm:$0xf] %vm1096_vm0, %v1358_v23  ;;  %v656_v26 = vadd.f32 %v1691_v3, %v655_v24  ;;  %v657_v27 = vpop.f32.mrb[5].mxu0  ;;  %v760_v28 = vadd.f32 %v1691_v3, %v759_v25  ;;  %v761_v29 = vpop.f32.mrb[5].mxu1 }
 0x123   : > { %v658_v30 = vpop.f32.mrb[6].mxu0  ;;  %v762_v31 = vpop.f32.mrb[6].mxu1 }
 0x124   : > { %v848_v32 = vmax.f32 %v656_v26, 0.0  ;;  %v659_v33 = vadd.f32 %v1691_v3, %v658_v30  ;;  %v660_v34 = vpop.f32.mrb[7].mxu0  ;;  %v874_v35 = vmax.f32 %v760_v28, 0.0  ;;  %v763_v36 = vadd.f32 %v1691_v3, %v762_v31  ;;  %v764_v37 = vpop.f32.mrb[7].mxu1 }
 0x126   : > { %v1333_v38 = vpack.c.bf16 %v848_v32, %v848_v32  ;;  %v849_v39 = vmax.f32 %v659_v33, 0.0  ;;  %v1359_v40 = vpack.c.bf16 %v874_v35, %v874_v35  ;;  %v875_v41 = vmax.f32 %v763_v36, 0.0 }
 0x128   : > { %1099 = vst.msk [vmem:[%s1701_s16 + $0x8] sm:$0xf] %vm1096_vm0, %v1333_v38  ;;  %v1334_v42 = vpack.c.bf16 %v849_v39, %v849_v39  ;;  %1125 = vst.msk [vmem:[%s1701_s16 + $0x70] sm:$0xf] %vm1096_vm0, %v1359_v40  ;;  %v1360_v43 = vpack.c.bf16 %v875_v41, %v875_v41 }
 0x129   : > { %v663_v44 = vpop.f32.mrb[8].mxu0  ;;  %v767_v45 = vpop.f32.mrb[8].mxu1 }
 0x12a   : > { %1100 = vst.msk [vmem:[%s1701_s16 + $0xc] sm:$0xf] %vm1096_vm0, %v1334_v42  ;;  %1126 = vst.msk [vmem:[%s1701_s16 + $0x74] sm:$0xf] %vm1096_vm0, %v1360_v43  ;;  %v664_v46 = vadd.f32 %v1691_v3, %v663_v44  ;;  %v665_v47 = vpop.f32.mrb[9].mxu0  ;;  %v768_v48 = vadd.f32 %v1691_v3, %v767_v45  ;;  %v769_v49 = vpop.f32.mrb[9].mxu1 }
 0x12b   : > { %v666_v50 = vpop.f32.mrb[10].mxu0  ;;  %v770_v51 = vpop.f32.mrb[10].mxu1 }
 0x12c   : > { %v850_v52 = vmax.f32 %v664_v46, 0.0  ;;  %v667_v53 = vadd.f32 %v1691_v3, %v666_v50  ;;  %v668_v54 = vpop.f32.mrb[11].mxu0  ;;  %v876_v55 = vmax.f32 %v768_v48, 0.0  ;;  %v771_v56 = vadd.f32 %v1691_v3, %v770_v51  ;;  %v772_v57 = vpop.f32.mrb[11].mxu1 }
 0x12e   : > { %v1335_v58 = vpack.c.bf16 %v850_v52, %v850_v52  ;;  %v851_v59 = vmax.f32 %v667_v53, 0.0  ;;  %v1361_v60 = vpack.c.bf16 %v876_v55, %v876_v55  ;;  %v877_v61 = vmax.f32 %v771_v56, 0.0 }
 0x130   : > { %1101 = vst.msk [vmem:[%s1701_s16 + $0x10] sm:$0xf] %vm1096_vm0, %v1335_v58  ;;  %v1336_v62 = vpack.c.bf16 %v851_v59, %v851_v59  ;;  %1127 = vst.msk [vmem:[%s1701_s16 + $0x78] sm:$0xf] %vm1096_vm0, %v1361_v60  ;;  %v1362_v63 = vpack.c.bf16 %v877_v61, %v877_v61 }
 0x131   : > { %v671_v0 = vpop.f32.mrb[12].mxu0  ;;  %v775_v1 = vpop.f32.mrb[12].mxu1 }
 0x132   : > { %1102 = vst.msk [vmem:[%s1701_s16 + $0x14] sm:$0xf] %vm1096_vm0, %v1336_v62  ;;  %1128 = vst.msk [vmem:[%s1701_s16 + $0x7c] sm:$0xf] %vm1096_vm0, %v1362_v63  ;;  %v672_v2 = vadd.f32 %v1691_v3, %v671_v0  ;;  %v673_v4 = vpop.f32.mrb[13].mxu0  ;;  %v776_v5 = vadd.f32 %v1691_v3, %v775_v1  ;;  %v777_v6 = vpop.f32.mrb[13].mxu1 }
 0x133   : > { %v674_v7 = vpop.f32.mrb[14].mxu0  ;;  %v778_v8 = vpop.f32.mrb[14].mxu1 }
 0x134   : > { %v852_v9 = vmax.f32 %v672_v2, 0.0  ;;  %v675_v10 = vadd.f32 %v1691_v3, %v674_v7  ;;  %v676_v11 = vpop.f32.mrb[15].mxu0  ;;  %v878_v12 = vmax.f32 %v776_v5, 0.0  ;;  %v779_v13 = vadd.f32 %v1691_v3, %v778_v8  ;;  %v780_v14 = vpop.f32.mrb[15].mxu1 }
 0x136   : > { %v1337_v15 = vpack.c.bf16 %v852_v9, %v852_v9  ;;  %v853_v16 = vmax.f32 %v675_v10, 0.0  ;;  %v1363_v17 = vpack.c.bf16 %v878_v12, %v878_v12  ;;  %v879_v18 = vmax.f32 %v779_v13, 0.0 }
 0x138   : > { %1103 = vst.msk [vmem:[%s1701_s16 + $0x18] sm:$0xf] %vm1096_vm0, %v1337_v15  ;;  %v1338_v19 = vpack.c.bf16 %v853_v16, %v853_v16  ;;  %1129 = vst.msk [vmem:[%s1701_s16 + $0x80] sm:$0xf] %vm1096_vm0, %v1363_v17  ;;  %v1364_v20 = vpack.c.bf16 %v879_v18, %v879_v18 }
 0x139   : > { %v679_v21 = vpop.f32.mrb[16].mxu0  ;;  %v783_v22 = vpop.f32.mrb[16].mxu1 }
 0x13a   : > { %1104 = vst.msk [vmem:[%s1701_s16 + $0x1c] sm:$0xf] %vm1096_vm0, %v1338_v19  ;;  %1130 = vst.msk [vmem:[%s1701_s16 + $0x84] sm:$0xf] %vm1096_vm0, %v1364_v20  ;;  %v680_v23 = vadd.f32 %v1691_v3, %v679_v21  ;;  %v681_v24 = vpop.f32.mrb[17].mxu0  ;;  %v784_v25 = vadd.f32 %v1691_v3, %v783_v22  ;;  %v785_v26 = vpop.f32.mrb[17].mxu1 }
 0x13b   : > { %v682_v27 = vpop.f32.mrb[18].mxu0  ;;  %v786_v28 = vpop.f32.mrb[18].mxu1 }
 0x13c   : > { %v854_v29 = vmax.f32 %v680_v23, 0.0  ;;  %v683_v30 = vadd.f32 %v1691_v3, %v682_v27  ;;  %v684_v31 = vpop.f32.mrb[19].mxu0  ;;  %v880_v32 = vmax.f32 %v784_v25, 0.0  ;;  %v787_v33 = vadd.f32 %v1691_v3, %v786_v28  ;;  %v788_v34 = vpop.f32.mrb[19].mxu1 }
 0x13e   : > { %v1339_v35 = vpack.c.bf16 %v854_v29, %v854_v29  ;;  %v855_v36 = vmax.f32 %v683_v30, 0.0  ;;  %v1365_v37 = vpack.c.bf16 %v880_v32, %v880_v32  ;;  %v881_v38 = vmax.f32 %v787_v33, 0.0 }
 0x140   : > { %1105 = vst.msk [vmem:[%s1701_s16 + $0x20] sm:$0xf] %vm1096_vm0, %v1339_v35  ;;  %v1340_v39 = vpack.c.bf16 %v855_v36, %v855_v36  ;;  %1131 = vst.msk [vmem:[%s1701_s16 + $0x88] sm:$0xf] %vm1096_vm0, %v1365_v37  ;;  %v1366_v40 = vpack.c.bf16 %v881_v38, %v881_v38 }
 0x141   : > { %v687_v41 = vpop.f32.mrb[20].mxu0  ;;  %v791_v42 = vpop.f32.mrb[20].mxu1 }
 0x142   : > { %1106 = vst.msk [vmem:[%s1701_s16 + $0x24] sm:$0xf] %vm1096_vm0, %v1340_v39  ;;  %1132 = vst.msk [vmem:[%s1701_s16 + $0x8c] sm:$0xf] %vm1096_vm0, %v1366_v40  ;;  %v688_v43 = vadd.f32 %v1691_v3, %v687_v41  ;;  %v689_v44 = vpop.f32.mrb[21].mxu0  ;;  %v792_v45 = vadd.f32 %v1691_v3, %v791_v42  ;;  %v793_v46 = vpop.f32.mrb[21].mxu1 }
 0x143   : > { %v690_v47 = vpop.f32.mrb[22].mxu0  ;;  %v794_v48 = vpop.f32.mrb[22].mxu1 }
 0x144   : > { %v856_v49 = vmax.f32 %v688_v43, 0.0  ;;  %v691_v50 = vadd.f32 %v1691_v3, %v690_v47  ;;  %v692_v51 = vpop.f32.mrb[23].mxu0  ;;  %v882_v52 = vmax.f32 %v792_v45, 0.0  ;;  %v795_v53 = vadd.f32 %v1691_v3, %v794_v48  ;;  %v796_v54 = vpop.f32.mrb[23].mxu1 }
 0x146   : > { %v1341_v55 = vpack.c.bf16 %v856_v49, %v856_v49  ;;  %v857_v56 = vmax.f32 %v691_v50, 0.0  ;;  %v1367_v57 = vpack.c.bf16 %v882_v52, %v882_v52  ;;  %v883_v58 = vmax.f32 %v795_v53, 0.0 }
 0x148   : > { %1107 = vst.msk [vmem:[%s1701_s16 + $0x28] sm:$0xf] %vm1096_vm0, %v1341_v55  ;;  %v1342_v59 = vpack.c.bf16 %v857_v56, %v857_v56  ;;  %1133 = vst.msk [vmem:[%s1701_s16 + $0x90] sm:$0xf] %vm1096_vm0, %v1367_v57  ;;  %v1368_v60 = vpack.c.bf16 %v883_v58, %v883_v58 }
 0x149   : > { %v695_v61 = vpop.f32.mrb[24].mxu0  ;;  %v799_v62 = vpop.f32.mrb[24].mxu1 }
 0x14a   : > { %1108 = vst.msk [vmem:[%s1701_s16 + $0x2c] sm:$0xf] %vm1096_vm0, %v1342_v59  ;;  %1134 = vst.msk [vmem:[%s1701_s16 + $0x94] sm:$0xf] %vm1096_vm0, %v1368_v60  ;;  %v696_v63 = vadd.f32 %v1691_v3, %v695_v61  ;;  %v697_v0 = vpop.f32.mrb[25].mxu0  ;;  %v800_v1 = vadd.f32 %v1691_v3, %v799_v62  ;;  %v801_v2 = vpop.f32.mrb[25].mxu1 }
 0x14b   : > { %v698_v4 = vpop.f32.mrb[26].mxu0  ;;  %v802_v5 = vpop.f32.mrb[26].mxu1 }
 0x14c   : > { %v858_v6 = vmax.f32 %v696_v63, 0.0  ;;  %v699_v7 = vadd.f32 %v1691_v3, %v698_v4  ;;  %v700_v8 = vpop.f32.mrb[27].mxu0  ;;  %v884_v9 = vmax.f32 %v800_v1, 0.0  ;;  %v803_v10 = vadd.f32 %v1691_v3, %v802_v5  ;;  %v804_v11 = vpop.f32.mrb[27].mxu1 }
 0x14e   : > { %v1343_v12 = vpack.c.bf16 %v858_v6, %v858_v6  ;;  %v859_v13 = vmax.f32 %v699_v7, 0.0  ;;  %v1369_v14 = vpack.c.bf16 %v884_v9, %v884_v9  ;;  %v885_v15 = vmax.f32 %v803_v10, 0.0 }
 0x150   : > { %1109 = vst.msk [vmem:[%s1701_s16 + $0x30] sm:$0xf] %vm1096_vm0, %v1343_v12  ;;  %v1344_v16 = vpack.c.bf16 %v859_v13, %v859_v13  ;;  %1135 = vst.msk [vmem:[%s1701_s16 + $0x98] sm:$0xf] %vm1096_vm0, %v1369_v14  ;;  %v1370_v17 = vpack.c.bf16 %v885_v15, %v885_v15 }
 0x151   : > { %v703_v18 = vpop.f32.mrb[28].mxu0  ;;  %v807_v19 = vpop.f32.mrb[28].mxu1 }
 0x152   : > { %1110 = vst.msk [vmem:[%s1701_s16 + $0x34] sm:$0xf] %vm1096_vm0, %v1344_v16  ;;  %1136 = vst.msk [vmem:[%s1701_s16 + $0x9c] sm:$0xf] %vm1096_vm0, %v1370_v17  ;;  %v704_v20 = vadd.f32 %v1691_v3, %v703_v18  ;;  %v705_v21 = vpop.f32.mrb[29].mxu0  ;;  %v808_v22 = vadd.f32 %v1691_v3, %v807_v19  ;;  %v809_v23 = vpop.f32.mrb[29].mxu1 }
 0x153   : > { %v706_v24 = vpop.f32.mrb[30].mxu0  ;;  %v810_v25 = vpop.f32.mrb[30].mxu1 }
 0x154   : > { %v860_v26 = vmax.f32 %v704_v20, 0.0  ;;  %v707_v27 = vadd.f32 %v1691_v3, %v706_v24  ;;  %v708_v28 = vpop.f32.mrb[31].mxu0  ;;  %v886_v29 = vmax.f32 %v808_v22, 0.0  ;;  %v811_v30 = vadd.f32 %v1691_v3, %v810_v25  ;;  %v812_v31 = vpop.f32.mrb[31].mxu1 }
 0x156   : > { %v1345_v32 = vpack.c.bf16 %v860_v26, %v860_v26  ;;  %v861_v33 = vmax.f32 %v707_v27, 0.0  ;;  %v1371_v34 = vpack.c.bf16 %v886_v29, %v886_v29  ;;  %v887_v35 = vmax.f32 %v811_v30, 0.0 }
 0x158   : > { %1111 = vst.msk [vmem:[%s1701_s16 + $0x38] sm:$0xf] %vm1096_vm0, %v1345_v32  ;;  %v1346_v36 = vpack.c.bf16 %v861_v33, %v861_v33  ;;  %1137 = vst.msk [vmem:[%s1701_s16 + $0xa0] sm:$0xf] %vm1096_vm0, %v1371_v34  ;;  %v1372_v37 = vpack.c.bf16 %v887_v35, %v887_v35 }
 0x159   : > { %v711_v38 = vpop.f32.mrb[32].mxu0  ;;  %v815_v39 = vpop.f32.mrb[32].mxu1 }
 0x15a   : > { %1112 = vst.msk [vmem:[%s1701_s16 + $0x3c] sm:$0xf] %vm1096_vm0, %v1346_v36  ;;  %1138 = vst.msk [vmem:[%s1701_s16 + $0xa4] sm:$0xf] %vm1096_vm0, %v1372_v37  ;;  %v712_v40 = vadd.f32 %v1691_v3, %v711_v38  ;;  %v713_v41 = vpop.f32.mrb[33].mxu0  ;;  %v816_v42 = vadd.f32 %v1691_v3, %v815_v39  ;;  %v817_v43 = vpop.f32.mrb[33].mxu1 }
 0x15b   : > { %v714_v44 = vpop.f32.mrb[34].mxu0  ;;  %v818_v45 = vpop.f32.mrb[34].mxu1 }
 0x15c   : > { %v862_v46 = vmax.f32 %v712_v40, 0.0  ;;  %v715_v47 = vadd.f32 %v1691_v3, %v714_v44  ;;  %v716_v48 = vpop.f32.mrb[35].mxu0  ;;  %v888_v49 = vmax.f32 %v816_v42, 0.0  ;;  %v819_v50 = vadd.f32 %v1691_v3, %v818_v45  ;;  %v820_v51 = vpop.f32.mrb[35].mxu1 }
 0x15e   : > { %v1347_v52 = vpack.c.bf16 %v862_v46, %v862_v46  ;;  %v863_v53 = vmax.f32 %v715_v47, 0.0  ;;  %v1373_v54 = vpack.c.bf16 %v888_v49, %v888_v49  ;;  %v889_v55 = vmax.f32 %v819_v50, 0.0 }
 0x160   : > { %1113 = vst.msk [vmem:[%s1701_s16 + $0x40] sm:$0xf] %vm1096_vm0, %v1347_v52  ;;  %v1348_v56 = vpack.c.bf16 %v863_v53, %v863_v53  ;;  %1139 = vst.msk [vmem:[%s1701_s16 + $0xa8] sm:$0xf] %vm1096_vm0, %v1373_v54  ;;  %v1374_v57 = vpack.c.bf16 %v889_v55, %v889_v55 }
 0x161   : > { %v719_v58 = vpop.f32.mrb[36].mxu0  ;;  %v823_v59 = vpop.f32.mrb[36].mxu1 }
 0x162   : > { %1114 = vst.msk [vmem:[%s1701_s16 + $0x44] sm:$0xf] %vm1096_vm0, %v1348_v56  ;;  %1140 = vst.msk [vmem:[%s1701_s16 + $0xac] sm:$0xf] %vm1096_vm0, %v1374_v57  ;;  %v720_v60 = vadd.f32 %v1691_v3, %v719_v58  ;;  %v721_v61 = vpop.f32.mrb[37].mxu0  ;;  %v824_v62 = vadd.f32 %v1691_v3, %v823_v59  ;;  %v825_v63 = vpop.f32.mrb[37].mxu1 }
 0x163   : > { %v722_v0 = vpop.f32.mrb[38].mxu0  ;;  %v826_v1 = vpop.f32.mrb[38].mxu1 }
 0x164   : > { %v864_v2 = vmax.f32 %v720_v60, 0.0  ;;  %v723_v4 = vadd.f32 %v1691_v3, %v722_v0  ;;  %v724_v5 = vpop.f32.mrb[39].mxu0  ;;  %v890_v6 = vmax.f32 %v824_v62, 0.0  ;;  %v827_v7 = vadd.f32 %v1691_v3, %v826_v1  ;;  %v828_v8 = vpop.f32.mrb[39].mxu1 }
 0x166   : > { %v1349_v9 = vpack.c.bf16 %v864_v2, %v864_v2  ;;  %v865_v10 = vmax.f32 %v723_v4, 0.0  ;;  %v1375_v11 = vpack.c.bf16 %v890_v6, %v890_v6  ;;  %v891_v12 = vmax.f32 %v827_v7, 0.0 }
 0x168   : > { %1115 = vst.msk [vmem:[%s1701_s16 + $0x48] sm:$0xf] %vm1096_vm0, %v1349_v9  ;;  %v1350_v13 = vpack.c.bf16 %v865_v10, %v865_v10  ;;  %1141 = vst.msk [vmem:[%s1701_s16 + $0xb0] sm:$0xf] %vm1096_vm0, %v1375_v11  ;;  %v1376_v14 = vpack.c.bf16 %v891_v12, %v891_v12 }
 0x169   : > { %v727_v15 = vpop.f32.mrb[40].mxu0  ;;  %v831_v16 = vpop.f32.mrb[40].mxu1 }
 0x16a   : > { %1116 = vst.msk [vmem:[%s1701_s16 + $0x4c] sm:$0xf] %vm1096_vm0, %v1350_v13  ;;  %1142 = vst.msk [vmem:[%s1701_s16 + $0xb4] sm:$0xf] %vm1096_vm0, %v1376_v14  ;;  %v728_v17 = vadd.f32 %v1691_v3, %v727_v15  ;;  %v729_v18 = vpop.f32.mrb[41].mxu0  ;;  %v832_v19 = vadd.f32 %v1691_v3, %v831_v16  ;;  %v833_v20 = vpop.f32.mrb[41].mxu1 }
 0x16b   : > { %v730_v21 = vpop.f32.mrb[42].mxu0  ;;  %v834_v22 = vpop.f32.mrb[42].mxu1 }
 0x16c   : > { %v866_v23 = vmax.f32 %v728_v17, 0.0  ;;  %v731_v24 = vadd.f32 %v1691_v3, %v730_v21  ;;  %v732_v25 = vpop.f32.mrb[43].mxu0  ;;  %v892_v26 = vmax.f32 %v832_v19, 0.0  ;;  %v835_v27 = vadd.f32 %v1691_v3, %v834_v22  ;;  %v836_v28 = vpop.f32.mrb[43].mxu1 }
 0x16e   : > { %v1351_v29 = vpack.c.bf16 %v866_v23, %v866_v23  ;;  %v867_v30 = vmax.f32 %v731_v24, 0.0  ;;  %v1377_v31 = vpack.c.bf16 %v892_v26, %v892_v26  ;;  %v893_v32 = vmax.f32 %v835_v27, 0.0 }
 0x170   : > { %1117 = vst.msk [vmem:[%s1701_s16 + $0x50] sm:$0xf] %vm1096_vm0, %v1351_v29  ;;  %v1352_v33 = vpack.c.bf16 %v867_v30, %v867_v30  ;;  %1143 = vst.msk [vmem:[%s1701_s16 + $0xb8] sm:$0xf] %vm1096_vm0, %v1377_v31  ;;  %v1378_v34 = vpack.c.bf16 %v893_v32, %v893_v32 }
 0x171   : > { %v735_v35 = vpop.f32.mrb[44].mxu0  ;;  %v839_v36 = vpop.f32.mrb[44].mxu1 }
 0x172   : > { %1118 = vst.msk [vmem:[%s1701_s16 + $0x54] sm:$0xf] %vm1096_vm0, %v1352_v33  ;;  %1144 = vst.msk [vmem:[%s1701_s16 + $0xbc] sm:$0xf] %vm1096_vm0, %v1378_v34  ;;  %v736_v37 = vadd.f32 %v1691_v3, %v735_v35  ;;  %v737_v38 = vpop.f32.mrb[45].mxu0  ;;  %v840_v39 = vadd.f32 %v1691_v3, %v839_v36  ;;  %v841_v40 = vpop.f32.mrb[45].mxu1 }
 0x173   : > { %v738_v41 = vpop.f32.mrb[46].mxu0  ;;  %v842_v42 = vpop.f32.mrb[46].mxu1 }
 0x174   : > { %v868_v43 = vmax.f32 %v736_v37, 0.0  ;;  %v739_v44 = vadd.f32 %v1691_v3, %v738_v41  ;;  %v740_v45 = vpop.f32.mrb[47].mxu0  ;;  %v894_v46 = vmax.f32 %v840_v39, 0.0  ;;  %v843_v47 = vadd.f32 %v1691_v3, %v842_v42  ;;  %v844_v48 = vpop.f32.mrb[47].mxu1 }
 0x176   : > { %v1353_v49 = vpack.c.bf16 %v868_v43, %v868_v43  ;;  %v869_v50 = vmax.f32 %v739_v44, 0.0  ;;  %v1379_v51 = vpack.c.bf16 %v894_v46, %v894_v46  ;;  %v895_v52 = vmax.f32 %v843_v47, 0.0 }
 0x178   : > { %1119 = vst.msk [vmem:[%s1701_s16 + $0x58] sm:$0xf] %vm1096_vm0, %v1353_v49  ;;  %v1354_v53 = vpack.c.bf16 %v869_v50, %v869_v50  ;;  %1145 = vst.msk [vmem:[%s1701_s16 + $0xc0] sm:$0xf] %vm1096_vm0, %v1379_v51  ;;  %v1380_v54 = vpack.c.bf16 %v895_v52, %v895_v52 }
 0x179   : > { %v743_v55 = vpop.f32.mrb[48].mxu0 }
 0x17a   : > { %1120 = vst.msk [vmem:[%s1701_s16 + $0x5c] sm:$0xf] %vm1096_vm0, %v1354_v53  ;;  %1146 = vst.msk [vmem:[%s1701_s16 + $0xc4] sm:$0xf] %vm1096_vm0, %v1380_v54  ;;  %v744_v56 = vadd.f32 %v1691_v3, %v743_v55  ;;  %v745_v57 = vpop.f32.mrb[49].mxu0 }
 0x17b   : > { %v746_v58 = vpop.f32.mrb[50].mxu0 }
 0x17c   : > { %v870_v59 = vmax.f32 %v744_v56, 0.0  ;;  %v747_v60 = vadd.f32 %v1691_v3, %v746_v58  ;;  %v748_v61 = vpop.f32.mrb[51].mxu0 }
 0x17e   : > { %v1355_v62 = vpack.c.bf16 %v870_v59, %v870_v59  ;;  %v871_v63 = vmax.f32 %v747_v60, 0.0 }
 0x180   : > { %1121 = vst.msk [vmem:[%s1701_s16 + $0x60] sm:$0xf] %vm1096_vm0, %v1355_v62  ;;  %v1356_v0 = vpack.c.bf16 %v871_v63, %v871_v63 }
 0x182   : > { %1122 = vst.msk [vmem:[%s1701_s16 + $0x64] sm:$0xf] %vm1096_vm0, %v1356_v0 }
 0x183 PF: > { %s13_s12 = sadd.s32 1, %s1519_s12  }
 0x184   : > { %p10_p4 = scmp.ge.s32.totalorder %s13_s12, 4  }
 0x186   :  { %12 = sbr.rel (!%p10_p4) target bundleno = 1 (0x1), region = 62 }

// kernel: dqn_forward.5
= control target key start
LH: loop header
LB: loop body
LE: loop exit
PB: predicated region body
PF: predicated region fallthrough
CT: control target
= control target key end

     0   :  { %vm880_vm0 = vcmask 519168   ;;  %vm901_vm1 = vcmask 516096   ;;  %s1637_s1 = inlined_call_operand.vmem [shape: bf16[512,64], index: 1, kind: input, shape index: {}]   ;;  %s1638_s0 = inlined_call_operand.vmem [shape: bf16[162,512], index: 0, kind: input, shape index: {}]   ;;  %s1639_s2 = inlined_call_operand.vmem [shape: f32[1,64], index: 2, kind: input, shape index: {}]   ;;  %s1640_s3 = inlined_call_operand.vmem [shape: bf16[162,64], index: 3, kind: output, shape index: {}]  }
   0x1   :  { %v1190_v0 = vld [vmem:[%s1637_s1 + $0x40] sm:$0xff]   ;;  %v1194_v4 = vld [vmem:[%s1637_s1 + $0x48] sm:$0xff]   ;;  %v1198_v8 = vld [vmem:[%s1637_s1 + $0x50] sm:$0xff]  }
   0x2   :  { %v1191_v1 = vld [vmem:[%s1637_s1 + $0xc0] sm:$0xff]   ;;  %1026 = vmatprep.subr.bf16.mxu0 %v1190_v0  ;;  %v1195_v5 = vld [vmem:[%s1637_s1 + $0xc8] sm:$0xff]   ;;  %v1199_v9 = vld [vmem:[%s1637_s1 + $0xd0] sm:$0xff]  }
   0x3   :  { %v1192_v2 = vld [vmem:[%s1637_s1] sm:$0xff]   ;;  %1108 = vmatprep.subr.bf16.mxu1 %v1191_v1  ;;  %v1196_v6 = vld [vmem:[%s1637_s1 + $0x8] sm:$0xff]   ;;  %v1200_v10 = vld [vmem:[%s1637_s1 + $0x10] sm:$0xff]  }
   0x4   :  { %v1193_v3 = vld [vmem:[%s1637_s1 + $0x80] sm:$0xff]   ;;  %1027 = vmatpush3.bf16.msra.mxu0 %v1192_v2  ;;  %v1197_v7 = vld [vmem:[%s1637_s1 + $0x88] sm:$0xff]   ;;  %v1201_v11 = vld [vmem:[%s1637_s1 + $0x90] sm:$0xff]  }
   0x5   :  { %1109 = vmatpush3.bf16.msra.mxu1 %v1193_v3  ;;  %1028 = vmatprep.subr.bf16.mxu0 %v1194_v4  ;;  %v1202_v12 = vld [vmem:[%s1637_s1 + $0x58] sm:$0xff]   ;;  %v1206_v16 = vld [vmem:[%s1637_s1 + $0x60] sm:$0xff]   ;;  %v1210_v20 = vld [vmem:[%s1637_s1 + $0x68] sm:$0xff]  }
   0x6   :  { %1110 = vmatprep.subr.bf16.mxu1 %v1195_v5  ;;  %v1203_v13 = vld [vmem:[%s1637_s1 + $0xd8] sm:$0xff]   ;;  %v1207_v17 = vld [vmem:[%s1637_s1 + $0xe0] sm:$0xff]   ;;  %v1211_v21 = vld [vmem:[%s1637_s1 + $0xe8] sm:$0xff]  }
   0x7   :  { %v1204_v14 = vld [vmem:[%s1637_s1 + $0x18] sm:$0xff]   ;;  %v1208_v18 = vld [vmem:[%s1637_s1 + $0x20] sm:$0xff]   ;;  %v1212_v22 = vld [vmem:[%s1637_s1 + $0x28] sm:$0xff]  }
   0x8   :  { %1029 = vmatpush3.bf16.msra.mxu0 %v1196_v6  ;;  %v1205_v15 = vld [vmem:[%s1637_s1 + $0x98] sm:$0xff]   ;;  %v1209_v19 = vld [vmem:[%s1637_s1 + $0xa0] sm:$0xff]   ;;  %v1213_v23 = vld [vmem:[%s1637_s1 + $0xa8] sm:$0xff]  }
   0x9   :  { %1111 = vmatpush3.bf16.msra.mxu1 %v1197_v7  ;;  %1030 = vmatprep.subr.bf16.mxu0 %v1198_v8  ;;  %v1214_v24 = vld [vmem:[%s1637_s1 + $0x70] sm:$0xff]   ;;  %v1218_v28 = vld [vmem:[%s1637_s1 + $0x78] sm:$0xff]   ;;  %v55_v6 = vld [vmem:[%s1638_s0 + $0x140] sm:$0x11] }
   0xa   :  { %1112 = vmatprep.subr.bf16.mxu1 %v1199_v9  ;;  %v1215_v25 = vld [vmem:[%s1637_s1 + $0xf0] sm:$0xff]   ;;  %v1219_v29 = vld [vmem:[%s1637_s1 + $0xf8] sm:$0xff]   ;;  %v56_v7 = vld [vmem:[%s1638_s0 + $0x148] sm:$0x11] }
   0xb   :  { %v1216_v26 = vld [vmem:[%s1637_s1 + $0x30] sm:$0xff]   ;;  %v1220_v30 = vld [vmem:[%s1637_s1 + $0x38] sm:$0xff]  }
   0xc   :  { %1031 = vmatpush3.bf16.msra.mxu0 %v1200_v10  ;;  %v1217_v27 = vld [vmem:[%s1637_s1 + $0xb0] sm:$0xff]   ;;  %v1221_v31 = vld [vmem:[%s1637_s1 + $0xb8] sm:$0xff]   ;;  %v949_v10 = vcombine.high %v55_v6, %v55_v6 }
   0xd   :  { %1113 = vmatpush3.bf16.msra.mxu1 %v1201_v11  ;;  %1032 = vmatprep.subr.bf16.mxu0 %v1202_v12  ;;  %v1222_v32 = vld [vmem:[%s1638_s0] ss:$16 sps:$4 sm:$0xff]   ;;  %v1224_v33 = vld [vmem:[%s1638_s0 + $0x4] ss:$16 sps:$4 sm:$0xff]   ;;  %v1225_v34 = vld [vmem:[%s1638_s0 + $0x8] ss:$16 sps:$4 sm:$0xff]   ;;  %v951_v11 = vcombine.high %v56_v7, %v56_v7  ;;  %v948_v12 = vcombine.low %v55_v6, %v55_v6 }
   0xe   :  { %1114 = vmatprep.subr.bf16.mxu1 %v1203_v13  ;;  %v1227_v35 = vld [vmem:[%s1638_s0 + $0xc] ss:$16 sps:$4 sm:$0xff]   ;;  %566 = vmatprep.mubr.bf16.mxu0 %v1224_v33  ;;  %v1228_v36 = vld [vmem:[%s1638_s0 + $0x24] ss:$16 sps:$4 sm:$0xff]   ;;  %v1232_v38 = vld [vmem:[%s1638_s0 + $0x20] ss:$16 sps:$4 sm:$0xff]   ;;  %v950_v13 = vcombine.low %v56_v7, %v56_v7 }
   0xf   :  { %686 = vmatprep.mubr.bf16.mxu1 %v1227_v35  ;;  %v1230_v37 = vld [vmem:[%s1638_s0 + $0x2c] ss:$16 sps:$4 sm:$0xff]   ;;  %v1233_v39 = vld [vmem:[%s1638_s0 + $0x28] ss:$16 sps:$4 sm:$0xff]   ;;  %v1234_v40 = vld [vmem:[%s1638_s0 + $0x44] ss:$16 sps:$4 sm:$0xff]  }
  0x10   :  { %1033 = vmatpush3.bf16.msra.mxu0 %v1204_v14  ;;  %v1236_v41 = vld [vmem:[%s1638_s0 + $0x4c] ss:$16 sps:$4 sm:$0xff]   ;;  %v1238_v42 = vld [vmem:[%s1638_s0 + $0x40] ss:$16 sps:$4 sm:$0xff]   ;;  %v1239_v43 = vld [vmem:[%s1638_s0 + $0x48] ss:$16 sps:$4 sm:$0xff]  }
  0x11   :  { %1115 = vmatpush3.bf16.msra.mxu1 %v1205_v15  ;;  %1034 = vmatprep.subr.bf16.mxu0 %v1206_v16  ;;  %v1240_v44 = vld [vmem:[%s1638_s0 + $0x64] ss:$16 sps:$4 sm:$0xff]   ;;  %v1242_v45 = vld [vmem:[%s1638_s0 + $0x6c] ss:$16 sps:$4 sm:$0xff]   ;;  %v1244_v46 = vld [vmem:[%s1638_s0 + $0x60] ss:$16 sps:$4 sm:$0xff]  }
  0x12   :  { %1116 = vmatprep.subr.bf16.mxu1 %v1207_v17  ;;  %v1245_v47 = vld [vmem:[%s1638_s0 + $0x68] ss:$16 sps:$4 sm:$0xff]   ;;  %v1246_v48 = vld [vmem:[%s1638_s0 + $0x84] ss:$16 sps:$4 sm:$0xff]   ;;  %v1248_v49 = vld [vmem:[%s1638_s0 + $0x8c] ss:$16 sps:$4 sm:$0xff]  }
  0x13   :  { %v1250_v50 = vld [vmem:[%s1638_s0 + $0x80] ss:$16 sps:$4 sm:$0xff]   ;;  %v1251_v51 = vld [vmem:[%s1638_s0 + $0x88] ss:$16 sps:$4 sm:$0xff]   ;;  %v1252_v52 = vld [vmem:[%s1638_s0 + $0xa4] ss:$16 sps:$4 sm:$0xff]  }
  0x14   :  { %1035 = vmatpush3.bf16.msra.mxu0 %v1208_v18  ;;  %v1254_v53 = vld [vmem:[%s1638_s0 + $0xac] ss:$16 sps:$4 sm:$0xff]   ;;  %v1256_v54 = vld [vmem:[%s1638_s0 + $0xa0] ss:$16 sps:$4 sm:$0xff]   ;;  %v1257_v55 = vld [vmem:[%s1638_s0 + $0xa8] ss:$16 sps:$4 sm:$0xff]  }
  0x15   :  { %1117 = vmatpush3.bf16.msra.mxu1 %v1209_v19  ;;  %1036 = vmatprep.subr.bf16.mxu0 %v1210_v20  ;;  %v1258_v56 = vld [vmem:[%s1638_s0 + $0xc4] ss:$16 sps:$4 sm:$0xff]   ;;  %v1260_v57 = vld [vmem:[%s1638_s0 + $0xcc] ss:$16 sps:$4 sm:$0xff]   ;;  %v1262_v58 = vld [vmem:[%s1638_s0 + $0xc0] ss:$16 sps:$4 sm:$0xff]  }
  0x16   :  { %1118 = vmatprep.subr.bf16.mxu1 %v1211_v21  ;;  %v1263_v59 = vld [vmem:[%s1638_s0 + $0xc8] ss:$16 sps:$4 sm:$0xff]   ;;  %v1264_v60 = vld [vmem:[%s1638_s0 + $0xe4] ss:$16 sps:$4 sm:$0xff]   ;;  %v1266_v61 = vld [vmem:[%s1638_s0 + $0xec] ss:$16 sps:$4 sm:$0xff]  }
  0x17   :  { %v1268_v62 = vld [vmem:[%s1638_s0 + $0xe0] ss:$16 sps:$4 sm:$0xff]   ;;  %v1269_v63 = vld [vmem:[%s1638_s0 + $0xe8] ss:$16 sps:$4 sm:$0xff]   ;;  %v1270_v0 = vld [vmem:[%s1638_s0 + $0x104] ss:$16 sps:$4 sm:$0xff]  }
  0x18   :  { %1037 = vmatpush3.bf16.msra.mxu0 %v1212_v22  ;;  %v1272_v1 = vld [vmem:[%s1638_s0 + $0x10c] ss:$16 sps:$4 sm:$0xff]   ;;  %v1274_v2 = vld [vmem:[%s1638_s0 + $0x100] ss:$16 sps:$4 sm:$0xff]   ;;  %v1275_v3 = vld [vmem:[%s1638_s0 + $0x108] ss:$16 sps:$4 sm:$0xff]  }
  0x19   :  { %1119 = vmatpush3.bf16.msra.mxu1 %v1213_v23  ;;  %1038 = vmatprep.subr.bf16.mxu0 %v1214_v24  ;;  %v1276_v4 = vld [vmem:[%s1638_s0 + $0x124] ss:$16 sps:$4 sm:$0xff]   ;;  %v1278_v5 = vld [vmem:[%s1638_s0 + $0x12c] ss:$16 sps:$4 sm:$0xff]   ;;  %v1280_v8 = vld [vmem:[%s1638_s0 + $0x120] ss:$16 sps:$4 sm:$0xff]  }
  0x1a   :  { %1120 = vmatprep.subr.bf16.mxu1 %v1215_v25  ;;  %v1281_v9 = vld [vmem:[%s1638_s0 + $0x128] ss:$16 sps:$4 sm:$0xff]   ;;  %v1531_v16 = vld [vmem:[%s1639_s2] ss:$0 sm:$0xff] }
  0x1c   :  { %1039 = vmatpush3.bf16.msra.mxu0 %v1216_v26 }
  0x1d   :  { %1121 = vmatpush3.bf16.msra.mxu1 %v1217_v27  ;;  %1040 = vmatprep.subr.bf16.mxu0 %v1218_v28 }
  0x1e   :  { %1122 = vmatprep.subr.bf16.mxu1 %v1219_v29 }
  0x20   :  { %1041 = vmatpush3.bf16.msra.mxu0 %v1220_v30 }
  0x21   :  { %1123 = vmatpush3.bf16.msra.mxu1 %v1221_v31 }
  0x23   :  { %567 = vmatmul.mubr.bf16.vlgmr.msra.gmra.mrb[0].mxu0 %v1222_v32 }
  0x24   :  { %687 = vmatmul.mubr.bf16.vlgmr.msra.gmra.mrb[0].mxu1 %v1225_v34  ;;  %574 = vmatprep.mubr.bf16.mxu0 %v1228_v36 }
  0x25   :  { %694 = vmatprep.mubr.bf16.mxu1 %v1230_v37 }
  0x2b   :  { %575 = vmatmul.mubr.bf16.gmra.mrb[4].mxu0 %v1232_v38 }
  0x2c   :  { %695 = vmatmul.mubr.bf16.gmra.mrb[4].mxu1 %v1233_v39  ;;  %582 = vmatprep.mubr.bf16.mxu0 %v1234_v40 }
  0x2d   :  { %702 = vmatprep.mubr.bf16.mxu1 %v1236_v41 }
  0x33   :  { %583 = vmatmul.mubr.bf16.gmra.mrb[8].mxu0 %v1238_v42 }
  0x34   :  { %703 = vmatmul.mubr.bf16.gmra.mrb[8].mxu1 %v1239_v43  ;;  %590 = vmatprep.mubr.bf16.mxu0 %v1240_v44 }
  0x35   :  { %710 = vmatprep.mubr.bf16.mxu1 %v1242_v45 }
  0x3b   :  { %591 = vmatmul.mubr.bf16.gmra.mrb[12].mxu0 %v1244_v46 }
  0x3c   :  { %711 = vmatmul.mubr.bf16.gmra.mrb[12].mxu1 %v1245_v47  ;;  %598 = vmatprep.mubr.bf16.mxu0 %v1246_v48 }
  0x3d   :  { %718 = vmatprep.mubr.bf16.mxu1 %v1248_v49 }
  0x43   :  { %599 = vmatmul.mubr.bf16.gmra.mrb[16].mxu0 %v1250_v50 }
  0x44   :  { %719 = vmatmul.mubr.bf16.gmra.mrb[16].mxu1 %v1251_v51  ;;  %606 = vmatprep.mubr.bf16.mxu0 %v1252_v52 }
  0x45   :  { %726 = vmatprep.mubr.bf16.mxu1 %v1254_v53 }
  0x4b   :  { %607 = vmatmul.mubr.bf16.gmra.mrb[20].mxu0 %v1256_v54 }
  0x4c   :  { %727 = vmatmul.mubr.bf16.gmra.mrb[20].mxu1 %v1257_v55  ;;  %614 = vmatprep.mubr.bf16.mxu0 %v1258_v56 }
  0x4d   :  { %734 = vmatprep.mubr.bf16.mxu1 %v1260_v57 }
  0x53   :  { %615 = vmatmul.mubr.bf16.gmra.mrb[24].mxu0 %v1262_v58 }
  0x54   :  { %735 = vmatmul.mubr.bf16.gmra.mrb[24].mxu1 %v1263_v59  ;;  %622 = vmatprep.mubr.bf16.mxu0 %v1264_v60 }
  0x55   :  { %742 = vmatprep.mubr.bf16.mxu1 %v1266_v61 }
  0x5b   :  { %623 = vmatmul.mubr.bf16.gmra.mrb[28].mxu0 %v1268_v62 }
  0x5c   :  { %743 = vmatmul.mubr.bf16.gmra.mrb[28].mxu1 %v1269_v63  ;;  %630 = vmatprep.mubr.bf16.mxu0 %v1270_v0 }
  0x5d   :  { %750 = vmatprep.mubr.bf16.mxu1 %v1272_v1 }
  0x63   :  { %631 = vmatmul.mubr.bf16.gmra.mrb[32].mxu0 %v1274_v2 }
  0x64   :  { %751 = vmatmul.mubr.bf16.gmra.mrb[32].mxu1 %v1275_v3  ;;  %638 = vmatprep.mubr.bf16.mxu0 %v1276_v4 }
  0x65   :  { %758 = vmatprep.mubr.bf16.mxu1 %v1278_v5 }
  0x6b   :  { %639 = vmatmul.mubr.bf16.gmra.mrb[36].mxu0 %v1280_v8 }
  0x6c   :  { %759 = vmatmul.mubr.bf16.gmra.mrb[36].mxu1 %v1281_v9  ;;  %646 = vmatprep.mubr.bf16.mxu0 %v949_v10 }
  0x6d   :  { %766 = vmatprep.mubr.bf16.mxu1 %v951_v11 }
  0x73   :  { %647 = vmatmul.mubr.bf16.gmra.mrb[40].mxu0 %v948_v12 }
  0x74   :  { %767 = vmatmul.mubr.bf16.gmra.mrb[40].mxu1 %v950_v13 }
  0xf6   :  { %v1042_v14 = vpop.f32.mrb[0].mxu0 }
  0xf7   :  { %v1124_v15 = vpop.f32.mrb[0].mxu1  ;;  %v1043_v17 = vpop.f32.mrb[1].mxu0 }
  0xf8   :  { %v1044_v18 = vadd.f32 %v1043_v17, %v1042_v14  ;;  %v1125_v19 = vpop.f32.mrb[1].mxu1  ;;  %v1045_v20 = vpop.f32.mrb[2].mxu0 }
  0xf9   :  { %v1126_v21 = vadd.f32 %v1125_v19, %v1124_v15  ;;  %v1127_v22 = vpop.f32.mrb[2].mxu1  ;;  %v1046_v23 = vpop.f32.mrb[3].mxu0 }
  0xfa   :  { %v569_v24 = vadd.f32 %v1044_v18, %v1531_v16  ;;  %v1047_v25 = vadd.f32 %v1046_v23, %v1045_v20  ;;  %v1128_v26 = vpop.f32.mrb[3].mxu1 }
  0xfb   :  { %v1129_v27 = vadd.f32 %v1128_v26, %v1127_v22 }
  0xfc   :  { %v689_v28 = vadd.f32 %v1126_v21, %v569_v24  ;;  %v572_v29 = vadd.f32 %v1047_v25, %v1531_v16 }
  0xfe   :  { %v774_v30 = vmax.f32 %v689_v28, 0.0  ;;  %v692_v31 = vadd.f32 %v1129_v27, %v572_v29  ;;  %v1048_v32 = vpop.f32.mrb[4].mxu0 }
  0xff   :  { %v1130_v33 = vpop.f32.mrb[4].mxu1  ;;  %v1049_v34 = vpop.f32.mrb[5].mxu0 }
 0x100   :  { %v1005_v35 = vpack.c.bf16 %v774_v30, %v774_v30  ;;  %v775_v36 = vmax.f32 %v692_v31, 0.0  ;;  %v1050_v37 = vadd.f32 %v1049_v34, %v1048_v32  ;;  %v1131_v38 = vpop.f32.mrb[5].mxu1  ;;  %v1051_v39 = vpop.f32.mrb[6].mxu0 }
 0x101   :  { %v1132_v40 = vadd.f32 %v1131_v38, %v1130_v33  ;;  %v1133_v41 = vpop.f32.mrb[6].mxu1  ;;  %v1052_v42 = vpop.f32.mrb[7].mxu0 }
 0x102   :  { %881 = vst.msk [vmem:[%s1640_s3] sm:$0xf] %vm880_vm0, %v1005_v35  ;;  %v1006_v43 = vpack.c.bf16 %v775_v36, %v775_v36  ;;  %v577_v44 = vadd.f32 %v1050_v37, %v1531_v16  ;;  %v1053_v45 = vadd.f32 %v1052_v42, %v1051_v39  ;;  %v1134_v46 = vpop.f32.mrb[7].mxu1 }
 0x103   :  { %v1135_v47 = vadd.f32 %v1134_v46, %v1133_v41 }
 0x104   :  { %882 = vst.msk [vmem:[%s1640_s3 + $0x4] sm:$0xf] %vm880_vm0, %v1006_v43  ;;  %v697_v48 = vadd.f32 %v1132_v40, %v577_v44  ;;  %v580_v49 = vadd.f32 %v1053_v45, %v1531_v16 }
 0x106   :  { %v776_v50 = vmax.f32 %v697_v48, 0.0  ;;  %v700_v51 = vadd.f32 %v1135_v47, %v580_v49  ;;  %v1054_v52 = vpop.f32.mrb[8].mxu0 }
 0x107   :  { %v1136_v53 = vpop.f32.mrb[8].mxu1  ;;  %v1055_v54 = vpop.f32.mrb[9].mxu0 }
 0x108   :  { %v1007_v55 = vpack.c.bf16 %v776_v50, %v776_v50  ;;  %v777_v56 = vmax.f32 %v700_v51, 0.0  ;;  %v1056_v57 = vadd.f32 %v1055_v54, %v1054_v52  ;;  %v1137_v58 = vpop.f32.mrb[9].mxu1  ;;  %v1057_v59 = vpop.f32.mrb[10].mxu0 }
 0x109   :  { %v1138_v60 = vadd.f32 %v1137_v58, %v1136_v53  ;;  %v1139_v61 = vpop.f32.mrb[10].mxu1  ;;  %v1058_v62 = vpop.f32.mrb[11].mxu0 }
 0x10a   :  { %883 = vst.msk [vmem:[%s1640_s3 + $0x8] sm:$0xf] %vm880_vm0, %v1007_v55  ;;  %v1008_v63 = vpack.c.bf16 %v777_v56, %v777_v56  ;;  %v585_v0 = vadd.f32 %v1056_v57, %v1531_v16  ;;  %v1059_v1 = vadd.f32 %v1058_v62, %v1057_v59  ;;  %v1140_v2 = vpop.f32.mrb[11].mxu1 }
 0x10b   :  { %v1141_v3 = vadd.f32 %v1140_v2, %v1139_v61 }
 0x10c   :  { %884 = vst.msk [vmem:[%s1640_s3 + $0xc] sm:$0xf] %vm880_vm0, %v1008_v63  ;;  %v705_v4 = vadd.f32 %v1138_v60, %v585_v0  ;;  %v588_v5 = vadd.f32 %v1059_v1, %v1531_v16 }
 0x10e   :  { %v778_v6 = vmax.f32 %v705_v4, 0.0  ;;  %v708_v7 = vadd.f32 %v1141_v3, %v588_v5  ;;  %v1060_v8 = vpop.f32.mrb[12].mxu0 }
 0x10f   :  { %v1142_v9 = vpop.f32.mrb[12].mxu1  ;;  %v1061_v10 = vpop.f32.mrb[13].mxu0 }
 0x110   :  { %v1009_v11 = vpack.c.bf16 %v778_v6, %v778_v6  ;;  %v779_v12 = vmax.f32 %v708_v7, 0.0  ;;  %v1062_v13 = vadd.f32 %v1061_v10, %v1060_v8  ;;  %v1143_v14 = vpop.f32.mrb[13].mxu1  ;;  %v1063_v15 = vpop.f32.mrb[14].mxu0 }
 0x111   :  { %v1144_v17 = vadd.f32 %v1143_v14, %v1142_v9  ;;  %v1145_v18 = vpop.f32.mrb[14].mxu1  ;;  %v1064_v19 = vpop.f32.mrb[15].mxu0 }
 0x112   :  { %885 = vst.msk [vmem:[%s1640_s3 + $0x10] sm:$0xf] %vm880_vm0, %v1009_v11  ;;  %v1010_v20 = vpack.c.bf16 %v779_v12, %v779_v12  ;;  %v593_v21 = vadd.f32 %v1062_v13, %v1531_v16  ;;  %v1065_v22 = vadd.f32 %v1064_v19, %v1063_v15  ;;  %v1146_v23 = vpop.f32.mrb[15].mxu1 }
 0x113   :  { %v1147_v24 = vadd.f32 %v1146_v23, %v1145_v18 }
 0x114   :  { %886 = vst.msk [vmem:[%s1640_s3 + $0x14] sm:$0xf] %vm880_vm0, %v1010_v20  ;;  %v713_v25 = vadd.f32 %v1144_v17, %v593_v21  ;;  %v596_v26 = vadd.f32 %v1065_v22, %v1531_v16 }
 0x116   :  { %v780_v27 = vmax.f32 %v713_v25, 0.0  ;;  %v716_v28 = vadd.f32 %v1147_v24, %v596_v26  ;;  %v1066_v29 = vpop.f32.mrb[16].mxu0 }
 0x117   :  { %v1148_v30 = vpop.f32.mrb[16].mxu1  ;;  %v1067_v31 = vpop.f32.mrb[17].mxu0 }
 0x118   :  { %v1011_v32 = vpack.c.bf16 %v780_v27, %v780_v27  ;;  %v781_v33 = vmax.f32 %v716_v28, 0.0  ;;  %v1068_v34 = vadd.f32 %v1067_v31, %v1066_v29  ;;  %v1149_v35 = vpop.f32.mrb[17].mxu1  ;;  %v1069_v36 = vpop.f32.mrb[18].mxu0 }
 0x119   :  { %v1150_v37 = vadd.f32 %v1149_v35, %v1148_v30  ;;  %v1151_v38 = vpop.f32.mrb[18].mxu1  ;;  %v1070_v39 = vpop.f32.mrb[19].mxu0 }
 0x11a   :  { %887 = vst.msk [vmem:[%s1640_s3 + $0x18] sm:$0xf] %vm880_vm0, %v1011_v32  ;;  %v1012_v40 = vpack.c.bf16 %v781_v33, %v781_v33  ;;  %v601_v41 = vadd.f32 %v1068_v34, %v1531_v16  ;;  %v1071_v42 = vadd.f32 %v1070_v39, %v1069_v36  ;;  %v1152_v43 = vpop.f32.mrb[19].mxu1 }
 0x11b   :  { %v1153_v44 = vadd.f32 %v1152_v43, %v1151_v38 }
 0x11c   :  { %888 = vst.msk [vmem:[%s1640_s3 + $0x1c] sm:$0xf] %vm880_vm0, %v1012_v40  ;;  %v721_v45 = vadd.f32 %v1150_v37, %v601_v41  ;;  %v604_v46 = vadd.f32 %v1071_v42, %v1531_v16 }
 0x11e   :  { %v782_v47 = vmax.f32 %v721_v45, 0.0  ;;  %v724_v48 = vadd.f32 %v1153_v44, %v604_v46  ;;  %v1072_v49 = vpop.f32.mrb[20].mxu0 }
 0x11f   :  { %v1154_v50 = vpop.f32.mrb[20].mxu1  ;;  %v1073_v51 = vpop.f32.mrb[21].mxu0 }
 0x120   :  { %v1013_v52 = vpack.c.bf16 %v782_v47, %v782_v47  ;;  %v783_v53 = vmax.f32 %v724_v48, 0.0  ;;  %v1074_v54 = vadd.f32 %v1073_v51, %v1072_v49  ;;  %v1155_v55 = vpop.f32.mrb[21].mxu1  ;;  %v1075_v56 = vpop.f32.mrb[22].mxu0 }
 0x121   :  { %v1156_v57 = vadd.f32 %v1155_v55, %v1154_v50  ;;  %v1157_v58 = vpop.f32.mrb[22].mxu1  ;;  %v1076_v59 = vpop.f32.mrb[23].mxu0 }
 0x122   :  { %889 = vst.msk [vmem:[%s1640_s3 + $0x20] sm:$0xf] %vm880_vm0, %v1013_v52  ;;  %v1014_v60 = vpack.c.bf16 %v783_v53, %v783_v53  ;;  %v609_v61 = vadd.f32 %v1074_v54, %v1531_v16  ;;  %v1077_v62 = vadd.f32 %v1076_v59, %v1075_v56  ;;  %v1158_v63 = vpop.f32.mrb[23].mxu1 }
 0x123   :  { %v1159_v0 = vadd.f32 %v1158_v63, %v1157_v58 }
 0x124   :  { %890 = vst.msk [vmem:[%s1640_s3 + $0x24] sm:$0xf] %vm880_vm0, %v1014_v60  ;;  %v729_v1 = vadd.f32 %v1156_v57, %v609_v61  ;;  %v612_v2 = vadd.f32 %v1077_v62, %v1531_v16 }
 0x126   :  { %v784_v3 = vmax.f32 %v729_v1, 0.0  ;;  %v732_v4 = vadd.f32 %v1159_v0, %v612_v2  ;;  %v1078_v5 = vpop.f32.mrb[24].mxu0 }
 0x127   :  { %v1160_v6 = vpop.f32.mrb[24].mxu1  ;;  %v1079_v7 = vpop.f32.mrb[25].mxu0 }
 0x128   :  { %v1015_v8 = vpack.c.bf16 %v784_v3, %v784_v3  ;;  %v785_v9 = vmax.f32 %v732_v4, 0.0  ;;  %v1080_v10 = vadd.f32 %v1079_v7, %v1078_v5  ;;  %v1161_v11 = vpop.f32.mrb[25].mxu1  ;;  %v1081_v12 = vpop.f32.mrb[26].mxu0 }
 0x129   :  { %v1162_v13 = vadd.f32 %v1161_v11, %v1160_v6  ;;  %v1163_v14 = vpop.f32.mrb[26].mxu1  ;;  %v1082_v15 = vpop.f32.mrb[27].mxu0 }
 0x12a   :  { %891 = vst.msk [vmem:[%s1640_s3 + $0x28] sm:$0xf] %vm880_vm0, %v1015_v8  ;;  %v1016_v17 = vpack.c.bf16 %v785_v9, %v785_v9  ;;  %v617_v18 = vadd.f32 %v1080_v10, %v1531_v16  ;;  %v1083_v19 = vadd.f32 %v1082_v15, %v1081_v12  ;;  %v1164_v20 = vpop.f32.mrb[27].mxu1 }
 0x12b   :  { %v1165_v21 = vadd.f32 %v1164_v20, %v1163_v14 }
 0x12c   :  { %892 = vst.msk [vmem:[%s1640_s3 + $0x2c] sm:$0xf] %vm880_vm0, %v1016_v17  ;;  %v737_v22 = vadd.f32 %v1162_v13, %v617_v18  ;;  %v620_v23 = vadd.f32 %v1083_v19, %v1531_v16 }
 0x12e   :  { %v786_v24 = vmax.f32 %v737_v22, 0.0  ;;  %v740_v25 = vadd.f32 %v1165_v21, %v620_v23  ;;  %v1084_v26 = vpop.f32.mrb[28].mxu0 }
 0x12f   :  { %v1166_v27 = vpop.f32.mrb[28].mxu1  ;;  %v1085_v28 = vpop.f32.mrb[29].mxu0 }
 0x130   :  { %v1017_v29 = vpack.c.bf16 %v786_v24, %v786_v24  ;;  %v787_v30 = vmax.f32 %v740_v25, 0.0  ;;  %v1086_v31 = vadd.f32 %v1085_v28, %v1084_v26  ;;  %v1167_v32 = vpop.f32.mrb[29].mxu1  ;;  %v1087_v33 = vpop.f32.mrb[30].mxu0 }
 0x131   :  { %v1168_v34 = vadd.f32 %v1167_v32, %v1166_v27  ;;  %v1169_v35 = vpop.f32.mrb[30].mxu1  ;;  %v1088_v36 = vpop.f32.mrb[31].mxu0 }
 0x132   :  { %893 = vst.msk [vmem:[%s1640_s3 + $0x30] sm:$0xf] %vm880_vm0, %v1017_v29  ;;  %v1018_v37 = vpack.c.bf16 %v787_v30, %v787_v30  ;;  %v625_v38 = vadd.f32 %v1086_v31, %v1531_v16  ;;  %v1089_v39 = vadd.f32 %v1088_v36, %v1087_v33  ;;  %v1170_v40 = vpop.f32.mrb[31].mxu1 }
 0x133   :  { %v1171_v41 = vadd.f32 %v1170_v40, %v1169_v35 }
 0x134   :  { %894 = vst.msk [vmem:[%s1640_s3 + $0x34] sm:$0xf] %vm880_vm0, %v1018_v37  ;;  %v745_v42 = vadd.f32 %v1168_v34, %v625_v38  ;;  %v628_v43 = vadd.f32 %v1089_v39, %v1531_v16 }
 0x136   :  { %v788_v44 = vmax.f32 %v745_v42, 0.0  ;;  %v748_v45 = vadd.f32 %v1171_v41, %v628_v43  ;;  %v1090_v46 = vpop.f32.mrb[32].mxu0 }
 0x137   :  { %v1172_v47 = vpop.f32.mrb[32].mxu1  ;;  %v1091_v48 = vpop.f32.mrb[33].mxu0 }
 0x138   :  { %v1019_v49 = vpack.c.bf16 %v788_v44, %v788_v44  ;;  %v789_v50 = vmax.f32 %v748_v45, 0.0  ;;  %v1092_v51 = vadd.f32 %v1091_v48, %v1090_v46  ;;  %v1173_v52 = vpop.f32.mrb[33].mxu1  ;;  %v1093_v53 = vpop.f32.mrb[34].mxu0 }
 0x139   :  { %v1174_v54 = vadd.f32 %v1173_v52, %v1172_v47  ;;  %v1175_v55 = vpop.f32.mrb[34].mxu1  ;;  %v1094_v56 = vpop.f32.mrb[35].mxu0 }
 0x13a   :  { %895 = vst.msk [vmem:[%s1640_s3 + $0x38] sm:$0xf] %vm880_vm0, %v1019_v49  ;;  %v1020_v57 = vpack.c.bf16 %v789_v50, %v789_v50  ;;  %v633_v58 = vadd.f32 %v1092_v51, %v1531_v16  ;;  %v1095_v59 = vadd.f32 %v1094_v56, %v1093_v53  ;;  %v1176_v60 = vpop.f32.mrb[35].mxu1 }
 0x13b   :  { %v1177_v61 = vadd.f32 %v1176_v60, %v1175_v55 }
 0x13c   :  { %896 = vst.msk [vmem:[%s1640_s3 + $0x3c] sm:$0xf] %vm880_vm0, %v1020_v57  ;;  %v753_v62 = vadd.f32 %v1174_v54, %v633_v58  ;;  %v636_v63 = vadd.f32 %v1095_v59, %v1531_v16 }
 0x13e   :  { %v790_v0 = vmax.f32 %v753_v62, 0.0  ;;  %v756_v1 = vadd.f32 %v1177_v61, %v636_v63  ;;  %v1096_v2 = vpop.f32.mrb[36].mxu0 }
 0x13f   :  { %v1178_v3 = vpop.f32.mrb[36].mxu1  ;;  %v1097_v4 = vpop.f32.mrb[37].mxu0 }
 0x140   :  { %v1021_v5 = vpack.c.bf16 %v790_v0, %v790_v0  ;;  %v791_v6 = vmax.f32 %v756_v1, 0.0  ;;  %v1098_v7 = vadd.f32 %v1097_v4, %v1096_v2  ;;  %v1179_v8 = vpop.f32.mrb[37].mxu1  ;;  %v1099_v9 = vpop.f32.mrb[38].mxu0 }
 0x141   :  { %v1180_v10 = vadd.f32 %v1179_v8, %v1178_v3  ;;  %v1181_v11 = vpop.f32.mrb[38].mxu1  ;;  %v1100_v12 = vpop.f32.mrb[39].mxu0 }
 0x142   :  { %897 = vst.msk [vmem:[%s1640_s3 + $0x40] sm:$0xf] %vm880_vm0, %v1021_v5  ;;  %v1022_v13 = vpack.c.bf16 %v791_v6, %v791_v6  ;;  %v641_v14 = vadd.f32 %v1098_v7, %v1531_v16  ;;  %v1101_v15 = vadd.f32 %v1100_v12, %v1099_v9  ;;  %v1182_v17 = vpop.f32.mrb[39].mxu1 }
 0x143   :  { %v1183_v18 = vadd.f32 %v1182_v17, %v1181_v11 }
 0x144   :  { %898 = vst.msk [vmem:[%s1640_s3 + $0x44] sm:$0xf] %vm880_vm0, %v1022_v13  ;;  %v761_v19 = vadd.f32 %v1180_v10, %v641_v14  ;;  %v644_v20 = vadd.f32 %v1101_v15, %v1531_v16 }
 0x146   :  { %v792_v21 = vmax.f32 %v761_v19, 0.0  ;;  %v764_v22 = vadd.f32 %v1183_v18, %v644_v20  ;;  %v1102_v23 = vpop.f32.mrb[40].mxu0 }
 0x147   :  { %v1184_v24 = vpop.f32.mrb[40].mxu1  ;;  %v1103_v25 = vpop.f32.mrb[41].mxu0 }
 0x148   :  { %v1023_v26 = vpack.c.bf16 %v792_v21, %v792_v21  ;;  %v793_v27 = vmax.f32 %v764_v22, 0.0  ;;  %v1104_v28 = vadd.f32 %v1103_v25, %v1102_v23  ;;  %v1185_v29 = vpop.f32.mrb[41].mxu1  ;;  %v1105_v30 = vpop.f32.mrb[42].mxu0 }
 0x149   :  { %v1186_v31 = vadd.f32 %v1185_v29, %v1184_v24  ;;  %v1187_v32 = vpop.f32.mrb[42].mxu1  ;;  %v1106_v33 = vpop.f32.mrb[43].mxu0 }
 0x14a   :  { %899 = vst.msk [vmem:[%s1640_s3 + $0x48] sm:$0xf] %vm880_vm0, %v1023_v26  ;;  %v1024_v34 = vpack.c.bf16 %v793_v27, %v793_v27  ;;  %v649_v35 = vadd.f32 %v1104_v28, %v1531_v16  ;;  %v1188_v36 = vpop.f32.mrb[43].mxu1 }
 0x14c   :  { %900 = vst.msk [vmem:[%s1640_s3 + $0x4c] sm:$0xf] %vm880_vm0, %v1024_v34  ;;  %v769_v37 = vadd.f32 %v1186_v31, %v649_v35 }
 0x14e   :  { %v794_v38 = vmax.f32 %v769_v37, 0.0 }
 0x150   :  { %v1025_v39 = vpack.c.bf16 %v794_v38, %v794_v38 }
 0x152   :  { %902 = vst.msk [vmem:[%s1640_s3 + $0x50] sm:$0x1] %vm901_vm1, %v1025_v39 }

// kernel: dqn_forward.6
= control target key start
LH: loop header
LB: loop body
LE: loop exit
PB: predicated region body
PF: predicated region fallthrough
CT: control target
= control target key end

     0   :  { %v1248_v34 = vmov 0.0   ;;  %vm1249_vm0 = vmmov 0   ;;  %vm516_vm1 = vcmask 523264   ;;  %vm868_vm2 = vcmask 519168   ;;  %s1599_s1 = inlined_call_operand.vmem [shape: bf16[576,64], index: 1, kind: input, shape index: {}]   ;;  %s1600_s0 = inlined_call_operand.vmem [shape: bf16[98,576], index: 0, kind: input, shape index: {}]   ;;  %s1601_s2 = inlined_call_operand.vmem [shape: f32[1,64], index: 2, kind: input, shape index: {}]   ;;  %s1602_s3 = inlined_call_operand.vmem [shape: bf16[98,64], index: 3, kind: output, shape index: {}]  }
   0x1   :  { %v1165_v0 = vld [vmem:[%s1599_s1 + $0x40] sm:$0xff]   ;;  %v1169_v4 = vld [vmem:[%s1599_s1 + $0x48] sm:$0xff]   ;;  %v1173_v8 = vld [vmem:[%s1599_s1 + $0x50] sm:$0xff]   ;;  %vm881_vm3 = vcmask 516096  }
   0x2   :  { %v1166_v1 = vld [vmem:[%s1599_s1 + $0xc0] sm:$0xff]   ;;  %992 = vmatprep.subr.bf16.mxu0 %v1165_v0  ;;  %v1170_v5 = vld [vmem:[%s1599_s1 + $0xc8] sm:$0xff]   ;;  %v1174_v9 = vld [vmem:[%s1599_s1 + $0xd0] sm:$0xff]  }
   0x3   :  { %v1167_v2 = vld [vmem:[%s1599_s1] sm:$0xff]   ;;  %1050 = vmatprep.subr.bf16.mxu1 %v1166_v1  ;;  %v1171_v6 = vld [vmem:[%s1599_s1 + $0x8] sm:$0xff]   ;;  %v1175_v10 = vld [vmem:[%s1599_s1 + $0x10] sm:$0xff]  }
   0x4   :  { %v1168_v3 = vld [vmem:[%s1599_s1 + $0x80] sm:$0xff]   ;;  %993 = vmatpush3.bf16.msra.mxu0 %v1167_v2  ;;  %v1172_v7 = vld [vmem:[%s1599_s1 + $0x88] sm:$0xff]   ;;  %v1176_v11 = vld [vmem:[%s1599_s1 + $0x90] sm:$0xff]  }
   0x5   :  { %1051 = vmatpush3.bf16.msra.mxu1 %v1168_v3  ;;  %994 = vmatprep.subr.bf16.mxu0 %v1169_v4  ;;  %v1177_v12 = vld [vmem:[%s1599_s1 + $0x58] sm:$0xff]   ;;  %v1181_v16 = vld [vmem:[%s1599_s1 + $0x60] sm:$0xff]   ;;  %v1185_v20 = vld [vmem:[%s1599_s1 + $0x68] sm:$0xff]  }
   0x6   :  { %1052 = vmatprep.subr.bf16.mxu1 %v1170_v5  ;;  %v1178_v13 = vld [vmem:[%s1599_s1 + $0xd8] sm:$0xff]   ;;  %v1182_v17 = vld [vmem:[%s1599_s1 + $0xe0] sm:$0xff]   ;;  %v1186_v21 = vld [vmem:[%s1599_s1 + $0xe8] sm:$0xff]  }
   0x7   :  { %v1179_v14 = vld [vmem:[%s1599_s1 + $0x18] sm:$0xff]   ;;  %v1183_v18 = vld [vmem:[%s1599_s1 + $0x20] sm:$0xff]   ;;  %v1187_v22 = vld [vmem:[%s1599_s1 + $0x28] sm:$0xff]  }
   0x8   :  { %995 = vmatpush3.bf16.msra.mxu0 %v1171_v6  ;;  %v1180_v15 = vld [vmem:[%s1599_s1 + $0x98] sm:$0xff]   ;;  %v1184_v19 = vld [vmem:[%s1599_s1 + $0xa0] sm:$0xff]   ;;  %v1188_v23 = vld [vmem:[%s1599_s1 + $0xa8] sm:$0xff]  }
   0x9   :  { %1053 = vmatpush3.bf16.msra.mxu1 %v1172_v7  ;;  %996 = vmatprep.subr.bf16.mxu0 %v1173_v8  ;;  %v1189_v24 = vld [vmem:[%s1599_s1 + $0x70] sm:$0xff]   ;;  %v1193_v28 = vld [vmem:[%s1599_s1 + $0x78] sm:$0xff]   ;;  %v1202_v36 = vld [vmem:[%s1600_s0 + $0xc] ss:$20 sps:$4 sm:$0xff]  }
   0xa   :  { %1054 = vmatprep.subr.bf16.mxu1 %v1174_v9  ;;  %v1190_v25 = vld [vmem:[%s1599_s1 + $0xf0] sm:$0xff]   ;;  %v1194_v29 = vld [vmem:[%s1599_s1 + $0xf8] sm:$0xff]   ;;  %v1203_v37 = vld [vmem:[%s1599_s1 + $0x100] sm:$0xff]   ;;  %658 = vmatprep.mubr.bf16.mxu1 %v1202_v36 }
   0xb   :  { %v1191_v26 = vld [vmem:[%s1599_s1 + $0x30] sm:$0xff]   ;;  %v1195_v30 = vld [vmem:[%s1599_s1 + $0x38] sm:$0xff]   ;;  %v1204_v38 = vld [vmem:[%s1600_s0 + $0x2c] ss:$20 sps:$4 sm:$0xff]  }
   0xc   :  { %997 = vmatpush3.bf16.msra.mxu0 %v1175_v10  ;;  %v1192_v27 = vld [vmem:[%s1599_s1 + $0xb0] sm:$0xff]   ;;  %v1196_v31 = vld [vmem:[%s1599_s1 + $0xb8] sm:$0xff]   ;;  %v1214_v43 = vld [vmem:[%s1599_s1 + $0x108] sm:$0xff]  }
   0xd   :  { %1055 = vmatpush3.bf16.msra.mxu1 %v1176_v11  ;;  %998 = vmatprep.subr.bf16.mxu0 %v1177_v12  ;;  %v1197_v32 = vld [vmem:[%s1600_s0] ss:$20 sps:$4 sm:$0xff]   ;;  %v1199_v33 = vld [vmem:[%s1600_s0 + $0x4] ss:$20 sps:$4 sm:$0xff]   ;;  %v1200_v35 = vld [vmem:[%s1600_s0 + $0x8] ss:$20 sps:$4 sm:$0xff]  }
   0xe   :  { %1056 = vmatprep.subr.bf16.mxu1 %v1178_v13  ;;  %570 = vmatprep.mubr.bf16.mxu0 %v1199_v33  ;;  %v1206_v39 = vld [vmem:[%s1600_s0 + $0x34] ss:$20 sps:$4 sm:$0xff]   ;;  %v1209_v41 = vld [vmem:[%s1600_s0 + $0x30] ss:$20 sps:$4 sm:$0xff]   ;;  %v1216_v47 = vld [vmem:[%s1600_s0 + $0x58] ss:$20 sps:$4 sm:$0xff]  }
   0xf   :  { %v1208_v40 = vld [vmem:[%s1600_s0 + $0x28] ss:$20 sps:$4 sm:$0xff]   ;;  %v1223_v45 = vld [vmem:[%s1599_s1 + $0x110] sm:$0xff]   ;;  %v1219_v49 = vld [vmem:[%s1600_s0 + $0x84] ss:$20 sps:$4 sm:$0xff]  }
  0x10   :  { %999 = vmatpush3.bf16.msra.mxu0 %v1179_v14  ;;  %v1210_v42 = vld [vmem:[%s1600_s0 + $0x54] ss:$20 sps:$4 sm:$0xff]   ;;  %v1212_v44 = vld [vmem:[%s1600_s0 + $0x5c] ss:$20 sps:$4 sm:$0xff]   ;;  %v1221_v51 = vld [vmem:[%s1600_s0 + $0x78] ss:$20 sps:$4 sm:$0xff]  }
  0x11   :  { %1057 = vmatpush3.bf16.msra.mxu1 %v1180_v15  ;;  %1000 = vmatprep.subr.bf16.mxu0 %v1181_v16  ;;  %v1215_v46 = vld [vmem:[%s1600_s0 + $0x50] ss:$20 sps:$4 sm:$0xff]   ;;  %v1236_v50 = vld [vmem:[%s1599_s1 + $0x118] sm:$0xff]   ;;  %v1222_v52 = vld [vmem:[%s1600_s0 + $0x80] ss:$20 sps:$4 sm:$0xff]  }
  0x12   :  { %1058 = vmatprep.subr.bf16.mxu1 %v1182_v17  ;;  %v1217_v48 = vld [vmem:[%s1600_s0 + $0x7c] ss:$20 sps:$4 sm:$0xff]   ;;  %v1224_v53 = vld [vmem:[%s1600_s0 + $0xa4] ss:$20 sps:$4 sm:$0xff]   ;;  %v1226_v54 = vld [vmem:[%s1600_s0 + $0xac] ss:$20 sps:$4 sm:$0xff]  }
  0x13   :  { %v1228_v55 = vld [vmem:[%s1600_s0 + $0xa0] ss:$20 sps:$4 sm:$0xff]   ;;  %v1229_v56 = vld [vmem:[%s1600_s0 + $0xa8] ss:$20 sps:$4 sm:$0xff]   ;;  %v1235_v62 = vld [vmem:[%s1600_s0 + $0xd0] ss:$20 sps:$4 sm:$0xff]  }
  0x14   :  { %1001 = vmatpush3.bf16.msra.mxu0 %v1183_v18  ;;  %v1230_v57 = vld [vmem:[%s1600_s0 + $0xcc] ss:$20 sps:$4 sm:$0xff]   ;;  %v1232_v58 = vld [vmem:[%s1600_s0 + $0xd4] ss:$20 sps:$4 sm:$0xff]   ;;  %v52_v60 = vld [vmem:[%s1600_s0 + $0xf8] sm:$0x11] }
  0x15   :  { %1059 = vmatpush3.bf16.msra.mxu1 %v1184_v19  ;;  %1002 = vmatprep.subr.bf16.mxu0 %v1185_v20  ;;  %v51_v59 = vld [vmem:[%s1600_s0 + $0xf0] sm:$0x11]  ;;  %v1234_v61 = vld [vmem:[%s1600_s0 + $0xc8] ss:$20 sps:$4 sm:$0xff]   ;;  %v921_v0 = vcombine.high %v52_v60, %v52_v60  ;;  %v920_v2 = vcombine.low %v52_v60, %v52_v60  ;;  %v1243_v5 = vld [vmem:[%s1600_s0 + $0x38] ss:$20 sps:$4 sm:$0xff]  }
  0x16   :  { %1060 = vmatprep.subr.bf16.mxu1 %v1186_v21  ;;  %v919_v63 = vcombine.high %v51_v59, %v51_v59  ;;  %v918_v1 = vcombine.low %v51_v59, %v51_v59  ;;  %v1241_v3 = vld [vmem:[%s1600_s0 + $0x10] ss:$20 sps:$4 sm:$0xff]   ;;  %v1244_v6 = vld [vmem:[%s1600_s0 + $0xd8] ss:$20 sps:$4 sm:$0xff]   ;;  %v1245_v7 = vld [vmem:[%s1600_s0 + $0x60] ss:$20 sps:$4 sm:$0xff]  }
  0x17   :  { %v1242_v4 = vld [vmem:[%s1600_s0 + $0xb0] ss:$20 sps:$4 sm:$0xff]   ;;  %v1246_v8 = vld [vmem:[%s1600_s0 + $0x100] ss:$0 sps:$4 sm:$0x11]  }
  0x18   :  { %1003 = vmatpush3.bf16.msra.mxu0 %v1187_v22  ;;  %v1247_v9 = vld [vmem:[%s1600_s0 + $0x88] ss:$20 sps:$4 sm:$0xff]   ;;  %v1509_v11 = vld [vmem:[%s1601_s2] ss:$0 sm:$0xff] }
  0x19   :  { %1061 = vmatpush3.bf16.msra.mxu1 %v1188_v23  ;;  %1004 = vmatprep.subr.bf16.mxu0 %v1189_v24 }
  0x1a   :  { %1062 = vmatprep.subr.bf16.mxu1 %v1190_v25 }
  0x1c   :  { %1005 = vmatpush3.bf16.msra.mxu0 %v1191_v26 }
  0x1d   :  { %1063 = vmatpush3.bf16.msra.mxu1 %v1192_v27  ;;  %1006 = vmatprep.subr.bf16.mxu0 %v1193_v28 }
  0x1e   :  { %1064 = vmatprep.subr.bf16.mxu1 %v1194_v29 }
  0x20   :  { %1007 = vmatpush3.bf16.msra.mxu0 %v1195_v30 }
  0x21   :  { %1065 = vmatpush3.bf16.msra.mxu1 %v1196_v31  ;;  %1119 = vmatprep.subr.bf16.mxu0 %v1248_v34 }
  0x22   :  { %1155 = vmatprep.subr.bf16.mxu1 %v1248_v34 }
  0x23   :  { %571 = vmatmul.mubr.bf16.vlgmr.msra.gmra.mrb[0].mxu0 %v1197_v32 }
  0x24   :  { %659 = vmatmul.mubr.bf16.vlgmr.msra.gmra.mrb[0].mxu1 %v1200_v35  ;;  %1120 = vmatpush3.bf16.msra.mxu0 %v1203_v37 }
  0x25   :  { %578 = vmatprep.mubr.bf16.mxu0 %v1204_v38  ;;  %1159 = vmatpush3.bf16.msra.mxu1 %v1203_v37 }
  0x26   :  { %666 = vmatprep.mubr.bf16.mxu1 %v1206_v39  ;;  %1121 = vmatprep.subr.bf16.mxu0 %v1248_v34 }
  0x27   :  { %1156 = vmatprep.subr.bf16.mxu1 %v1248_v34 }
  0x28   :  { %1122 = vmatpush3.bf16.msra.mxu0 %v1214_v43 }
  0x29   :  { %1160 = vmatpush3.bf16.msra.mxu1 %v1214_v43  ;;  %1123 = vmatprep.subr.bf16.mxu0 %v1248_v34 }
  0x2a   :  { %1157 = vmatprep.subr.bf16.mxu1 %v1248_v34 }
  0x2b   :  { %579 = vmatmul.mubr.bf16.gmra.mrb[4].mxu0 %v1208_v40 }
  0x2c   :  { %667 = vmatmul.mubr.bf16.gmra.mrb[4].mxu1 %v1209_v41  ;;  %586 = vmatprep.mubr.bf16.mxu0 %v1210_v42 }
  0x2d   :  { %674 = vmatprep.mubr.bf16.mxu1 %v1212_v44  ;;  %1124 = vmatpush3.bf16.msra.mxu0 %v1223_v45 }
  0x2e   :  { %1161 = vmatpush3.bf16.msra.mxu1 %v1223_v45  ;;  %1125 = vmatprep.subr.bf16.mxu0 %v1248_v34 }
  0x2f   :  { %1158 = vmatprep.subr.bf16.mxu1 %v1248_v34 }
  0x31   :  { %1126 = vmatpush3.bf16.msra.mxu0 %v1236_v50 }
  0x32   :  { %1162 = vmatpush3.bf16.msra.mxu1 %v1236_v50 }
  0x33   :  { %587 = vmatmul.mubr.bf16.gmra.mrb[8].mxu0 %v1215_v46 }
  0x34   :  { %675 = vmatmul.mubr.bf16.gmra.mrb[8].mxu1 %v1216_v47  ;;  %594 = vmatprep.mubr.bf16.mxu0 %v1217_v48 }
  0x35   :  { %682 = vmatprep.mubr.bf16.mxu1 %v1219_v49 }
  0x3b   :  { %595 = vmatmul.mubr.bf16.gmra.mrb[12].mxu0 %v1221_v51 }
  0x3c   :  { %683 = vmatmul.mubr.bf16.gmra.mrb[12].mxu1 %v1222_v52  ;;  %602 = vmatprep.mubr.bf16.mxu0 %v1224_v53 }
  0x3d   :  { %690 = vmatprep.mubr.bf16.mxu1 %v1226_v54 }
  0x43   :  { %603 = vmatmul.mubr.bf16.gmra.mrb[16].mxu0 %v1228_v55 }
  0x44   :  { %691 = vmatmul.mubr.bf16.gmra.mrb[16].mxu1 %v1229_v56  ;;  %610 = vmatprep.mubr.bf16.mxu0 %v1230_v57 }
  0x45   :  { %698 = vmatprep.mubr.bf16.mxu1 %v1232_v58 }
  0x4b   :  { %611 = vmatmul.mubr.bf16.gmra.mrb[20].mxu0 %v1234_v61 }
  0x4c   :  { %699 = vmatmul.mubr.bf16.gmra.mrb[20].mxu1 %v1235_v62  ;;  %618 = vmatprep.mubr.bf16.mxu0 %v919_v63 }
  0x4d   :  { %706 = vmatprep.mubr.bf16.mxu1 %v921_v0 }
  0x53   :  { %619 = vmatmul.mubr.bf16.gmra.mrb[24].mxu0 %v918_v1 }
  0x54   :  { %707 = vmatmul.mubr.bf16.gmra.mrb[24].mxu1 %v920_v2  ;;  %1127 = vmatprep.mubr.msk.bf16.mxu0 %vm1249_vm0, %v1248_v34 }
  0x55   :  { %1143 = vmatprep.mubr.msk.bf16.mxu1 %vm1249_vm0, %v1248_v34 }
  0x5b   :  { %1128 = vmatmul.mubr.msk.bf16.vlgmr.msra.gmra.mrb[28].mxu0 %vm516_vm1, %v1241_v3 }
  0x5c   :  { %1144 = vmatmul.mubr.msk.bf16.vlgmr.msra.gmra.mrb[28].mxu1 %vm516_vm1, %v1242_v4  ;;  %1131 = vmatprep.mubr.msk.bf16.mxu0 %vm1249_vm0, %v1248_v34 }
  0x5d   :  { %1147 = vmatprep.mubr.msk.bf16.mxu1 %vm1249_vm0, %v1248_v34 }
  0x63   :  { %1132 = vmatmul.mubr.msk.bf16.gmra.mrb[32].mxu0 %vm516_vm1, %v1243_v5 }
  0x64   :  { %1148 = vmatmul.mubr.msk.bf16.gmra.mrb[32].mxu1 %vm516_vm1, %v1244_v6  ;;  %1135 = vmatprep.mubr.msk.bf16.mxu0 %vm1249_vm0, %v1248_v34 }
  0x65   :  { %1151 = vmatprep.mubr.msk.bf16.mxu1 %vm1249_vm0, %v1248_v34 }
  0x6b   :  { %1136 = vmatmul.mubr.msk.bf16.gmra.mrb[36].mxu0 %vm516_vm1, %v1245_v7 }
  0x6c   :  { %1152 = vmatmul.mubr.msk.bf16.gmra.mrb[36].mxu1 %vm516_vm1, %v1246_v8  ;;  %1139 = vmatprep.mubr.msk.bf16.mxu0 %vm1249_vm0, %v1248_v34 }
  0x73   :  { %1140 = vmatmul.mubr.msk.bf16.gmra.mrb[40].mxu0 %vm516_vm1, %v1247_v9 }
  0xf6   :  { %v1008_v10 = vpop.f32.mrb[0].mxu0 }
  0xf7   :  { %v1009_v12 = vpop.f32.mrb[1].mxu0  ;;  %v1066_v13 = vpop.f32.mrb[0].mxu1 }
  0xf8   :  { %v1010_v14 = vadd.f32 %v1009_v12, %v1008_v10  ;;  %v1011_v15 = vpop.f32.mrb[2].mxu0  ;;  %v1067_v16 = vpop.f32.mrb[1].mxu1 }
  0xf9   :  { %v1012_v17 = vpop.f32.mrb[3].mxu0  ;;  %v1068_v18 = vadd.f32 %v1067_v16, %v1066_v13  ;;  %v1069_v19 = vpop.f32.mrb[2].mxu1 }
  0xfa   :  { %v573_v20 = vadd.f32 %v1010_v14, %v1509_v11  ;;  %v1013_v21 = vadd.f32 %v1012_v17, %v1011_v15  ;;  %v1070_v22 = vpop.f32.mrb[3].mxu1 }
  0xfb   :  { %v1071_v23 = vadd.f32 %v1070_v22, %v1069_v19 }
  0xfc   :  { %v576_v24 = vadd.f32 %v1013_v21, %v1509_v11  ;;  %v1513_v25 = vadd.f32 %v1068_v18, %v573_v20 }
  0xfe   :  { %v1014_v26 = vpop.f32.mrb[4].mxu0  ;;  %v1515_v27 = vadd.f32 %v1071_v23, %v576_v24 }
  0xff   :  { %v1015_v28 = vpop.f32.mrb[5].mxu0  ;;  %v1072_v29 = vpop.f32.mrb[4].mxu1 }
 0x100   :  { %v1016_v30 = vadd.f32 %v1015_v28, %v1014_v26  ;;  %v1017_v31 = vpop.f32.mrb[6].mxu0  ;;  %v1073_v32 = vpop.f32.mrb[5].mxu1 }
 0x101   :  { %v1018_v33 = vpop.f32.mrb[7].mxu0  ;;  %v1074_v34 = vadd.f32 %v1073_v32, %v1072_v29  ;;  %v1075_v35 = vpop.f32.mrb[6].mxu1 }
 0x102   :  { %v581_v36 = vadd.f32 %v1016_v30, %v1509_v11  ;;  %v1019_v37 = vadd.f32 %v1018_v33, %v1017_v31  ;;  %v1076_v38 = vpop.f32.mrb[7].mxu1 }
 0x103   :  { %v1077_v39 = vadd.f32 %v1076_v38, %v1075_v35 }
 0x104   :  { %v584_v40 = vadd.f32 %v1019_v37, %v1509_v11  ;;  %v1519_v41 = vadd.f32 %v1074_v34, %v581_v36 }
 0x106   :  { %v1020_v42 = vpop.f32.mrb[8].mxu0  ;;  %v1521_v43 = vadd.f32 %v1077_v39, %v584_v40 }
 0x107   :  { %v1021_v44 = vpop.f32.mrb[9].mxu0  ;;  %v1078_v45 = vpop.f32.mrb[8].mxu1 }
 0x108   :  { %v1022_v46 = vadd.f32 %v1021_v44, %v1020_v42  ;;  %v1023_v47 = vpop.f32.mrb[10].mxu0  ;;  %v1079_v48 = vpop.f32.mrb[9].mxu1 }
 0x109   :  { %v1024_v49 = vpop.f32.mrb[11].mxu0  ;;  %v1080_v50 = vadd.f32 %v1079_v48, %v1078_v45  ;;  %v1081_v51 = vpop.f32.mrb[10].mxu1 }
 0x10a   :  { %v589_v52 = vadd.f32 %v1022_v46, %v1509_v11  ;;  %v1025_v53 = vadd.f32 %v1024_v49, %v1023_v47  ;;  %v1082_v54 = vpop.f32.mrb[11].mxu1 }
 0x10b   :  { %v1083_v55 = vadd.f32 %v1082_v54, %v1081_v51 }
 0x10c   :  { %v592_v56 = vadd.f32 %v1025_v53, %v1509_v11  ;;  %v1525_v57 = vadd.f32 %v1080_v50, %v589_v52 }
 0x10e   :  { %v1026_v58 = vpop.f32.mrb[12].mxu0  ;;  %v1527_v59 = vadd.f32 %v1083_v55, %v592_v56 }
 0x10f   :  { %v1027_v60 = vpop.f32.mrb[13].mxu0  ;;  %v1084_v61 = vpop.f32.mrb[12].mxu1 }
 0x110   :  { %v1028_v62 = vadd.f32 %v1027_v60, %v1026_v58  ;;  %v1029_v63 = vpop.f32.mrb[14].mxu0  ;;  %v1085_v0 = vpop.f32.mrb[13].mxu1 }
 0x111   :  { %v1030_v1 = vpop.f32.mrb[15].mxu0  ;;  %v1086_v2 = vadd.f32 %v1085_v0, %v1084_v61  ;;  %v1087_v3 = vpop.f32.mrb[14].mxu1 }
 0x112   :  { %v597_v4 = vadd.f32 %v1028_v62, %v1509_v11  ;;  %v1031_v5 = vadd.f32 %v1030_v1, %v1029_v63  ;;  %v1088_v6 = vpop.f32.mrb[15].mxu1 }
 0x113   :  { %v1089_v7 = vadd.f32 %v1088_v6, %v1087_v3 }
 0x114   :  { %v600_v8 = vadd.f32 %v1031_v5, %v1509_v11  ;;  %v1531_v9 = vadd.f32 %v1086_v2, %v597_v4 }
 0x116   :  { %v1032_v10 = vpop.f32.mrb[16].mxu0  ;;  %v1533_v12 = vadd.f32 %v1089_v7, %v600_v8 }
 0x117   :  { %v1033_v13 = vpop.f32.mrb[17].mxu0  ;;  %v1090_v14 = vpop.f32.mrb[16].mxu1 }
 0x118   :  { %v1034_v15 = vadd.f32 %v1033_v13, %v1032_v10  ;;  %v1035_v16 = vpop.f32.mrb[18].mxu0  ;;  %v1091_v17 = vpop.f32.mrb[17].mxu1 }
 0x119   :  { %v1036_v18 = vpop.f32.mrb[19].mxu0  ;;  %v1092_v19 = vadd.f32 %v1091_v17, %v1090_v14  ;;  %v1093_v20 = vpop.f32.mrb[18].mxu1 }
 0x11a   :  { %v605_v21 = vadd.f32 %v1034_v15, %v1509_v11  ;;  %v1037_v22 = vadd.f32 %v1036_v18, %v1035_v16  ;;  %v1094_v23 = vpop.f32.mrb[19].mxu1 }
 0x11b   :  { %v1095_v24 = vadd.f32 %v1094_v23, %v1093_v20 }
 0x11c   :  { %v608_v26 = vadd.f32 %v1037_v22, %v1509_v11  ;;  %v693_v28 = vadd.f32 %v1092_v19, %v605_v21 }
 0x11e   :  { %v1038_v29 = vpop.f32.mrb[20].mxu0  ;;  %v696_v30 = vadd.f32 %v1095_v24, %v608_v26 }
 0x11f   :  { %v1039_v31 = vpop.f32.mrb[21].mxu0  ;;  %v1096_v32 = vpop.f32.mrb[20].mxu1 }
 0x120   :  { %v1040_v33 = vadd.f32 %v1039_v31, %v1038_v29  ;;  %v1041_v34 = vpop.f32.mrb[22].mxu0  ;;  %v1097_v35 = vpop.f32.mrb[21].mxu1 }
 0x121   :  { %v1042_v36 = vpop.f32.mrb[23].mxu0  ;;  %v1098_v37 = vadd.f32 %v1097_v35, %v1096_v32  ;;  %v1099_v38 = vpop.f32.mrb[22].mxu1 }
 0x122   :  { %v613_v39 = vadd.f32 %v1040_v33, %v1509_v11  ;;  %v1043_v40 = vadd.f32 %v1042_v36, %v1041_v34  ;;  %v1100_v42 = vpop.f32.mrb[23].mxu1 }
 0x123   :  { %v1101_v44 = vadd.f32 %v1100_v42, %v1099_v38 }
 0x124   :  { %v616_v45 = vadd.f32 %v1043_v40, %v1509_v11  ;;  %v701_v46 = vadd.f32 %v1098_v37, %v613_v39 }
 0x126   :  { %v1044_v47 = vpop.f32.mrb[24].mxu0  ;;  %v704_v48 = vadd.f32 %v1101_v44, %v616_v45 }
 0x127   :  { %v1045_v49 = vpop.f32.mrb[25].mxu0  ;;  %v1102_v50 = vpop.f32.mrb[24].mxu1 }
 0x128   :  { %v1046_v51 = vadd.f32 %v1045_v49, %v1044_v47  ;;  %v1047_v52 = vpop.f32.mrb[26].mxu0  ;;  %v1103_v53 = vpop.f32.mrb[25].mxu1 }
 0x129   :  { %v1048_v54 = vpop.f32.mrb[27].mxu0  ;;  %v1104_v55 = vadd.f32 %v1103_v53, %v1102_v50  ;;  %v1105_v56 = vpop.f32.mrb[26].mxu1 }
 0x12a   :  { %v621_v58 = vadd.f32 %v1046_v51, %v1509_v11  ;;  %v1106_v60 = vpop.f32.mrb[27].mxu1 }
 0x12c   :  { %v709_v61 = vadd.f32 %v1104_v55, %v621_v58 }
 0x12e   :  { %v748_v62 = vpop.f32.mrb[28].mxu0 }
 0x12f   :  { %v749_v63 = vadd.f32 %v748_v62, %v1513_v25  ;;  %v780_v0 = vpop.f32.mrb[28].mxu1  ;;  %v1129_v1 = vpop.f32.mrb[29].mxu0 }
 0x130   :  { %v781_v2 = vadd.f32 %v780_v0, %v693_v28  ;;  %v1145_v3 = vpop.f32.mrb[29].mxu1  ;;  %v751_v4 = vpop.f32.mrb[30].mxu0 }
 0x131   :  { %v802_v5 = vmax.f32 %v749_v63, 0.0  ;;  %v752_v6 = vadd.f32 %v751_v4, %v1515_v27  ;;  %v783_v7 = vpop.f32.mrb[30].mxu1  ;;  %v1130_v8 = vpop.f32.mrb[31].mxu0 }
 0x132   :  { %v810_v10 = vmax.f32 %v781_v2, 0.0  ;;  %v784_v13 = vadd.f32 %v783_v7, %v696_v30  ;;  %v1146_v14 = vpop.f32.mrb[31].mxu1 }
 0x133   :  { %v979_v11 = vpack.c.bf16 %v802_v5, %v802_v5  ;;  %v803_v15 = vmax.f32 %v752_v6, 0.0 }
 0x134   :  { %v987_v16 = vpack.c.bf16 %v810_v10, %v810_v10  ;;  %v811_v17 = vmax.f32 %v784_v13, 0.0 }
 0x135   :  { %869 = vst.msk [vmem:[%s1602_s3] sm:$0xf] %vm868_vm2, %v979_v11  ;;  %v980_v25 = vpack.c.bf16 %v803_v15, %v803_v15 }
 0x136   :  { %877 = vst.msk [vmem:[%s1602_s3 + $0x20] sm:$0xf] %vm868_vm2, %v987_v16  ;;  %v988_v27 = vpack.c.bf16 %v811_v17, %v811_v17  ;;  %v756_v18 = vpop.f32.mrb[32].mxu0 }
 0x137   :  { %870 = vst.msk [vmem:[%s1602_s3 + $0x4] sm:$0xf] %vm868_vm2, %v980_v25  ;;  %v757_v19 = vadd.f32 %v756_v18, %v1519_v41  ;;  %v788_v20 = vpop.f32.mrb[32].mxu1  ;;  %v1133_v21 = vpop.f32.mrb[33].mxu0 }
 0x138   :  { %878 = vst.msk [vmem:[%s1602_s3 + $0x24] sm:$0xf] %vm868_vm2, %v988_v27  ;;  %v789_v22 = vadd.f32 %v788_v20, %v701_v46  ;;  %v1149_v23 = vpop.f32.mrb[33].mxu1  ;;  %v759_v24 = vpop.f32.mrb[34].mxu0 }
 0x139   :  { %v804_v26 = vmax.f32 %v757_v19, 0.0  ;;  %v760_v28 = vadd.f32 %v759_v24, %v1521_v43  ;;  %v791_v29 = vpop.f32.mrb[34].mxu1  ;;  %v1134_v30 = vpop.f32.mrb[35].mxu0 }
 0x13a   :  { %v812_v31 = vmax.f32 %v789_v22, 0.0  ;;  %v792_v32 = vadd.f32 %v791_v29, %v704_v48  ;;  %v1150_v33 = vpop.f32.mrb[35].mxu1 }
 0x13b   :  { %v981_v34 = vpack.c.bf16 %v804_v26, %v804_v26  ;;  %v805_v41 = vmax.f32 %v760_v28, 0.0 }
 0x13c   :  { %v989_v35 = vpack.c.bf16 %v812_v31, %v812_v31  ;;  %v813_v36 = vmax.f32 %v792_v32, 0.0 }
 0x13d   :  { %871 = vst.msk [vmem:[%s1602_s3 + $0x8] sm:$0xf] %vm868_vm2, %v981_v34  ;;  %v982_v37 = vpack.c.bf16 %v805_v41, %v805_v41 }
 0x13e   :  { %879 = vst.msk [vmem:[%s1602_s3 + $0x28] sm:$0xf] %vm868_vm2, %v989_v35  ;;  %v990_v43 = vpack.c.bf16 %v813_v36, %v813_v36  ;;  %v764_v38 = vpop.f32.mrb[36].mxu0 }
 0x13f   :  { %872 = vst.msk [vmem:[%s1602_s3 + $0xc] sm:$0xf] %vm868_vm2, %v982_v37  ;;  %v765_v39 = vadd.f32 %v764_v38, %v1525_v57  ;;  %v796_v40 = vpop.f32.mrb[36].mxu1  ;;  %v1137_v42 = vpop.f32.mrb[37].mxu0 }
 0x140   :  { %880 = vst.msk [vmem:[%s1602_s3 + $0x2c] sm:$0xf] %vm868_vm2, %v990_v43  ;;  %v797_v44 = vadd.f32 %v796_v40, %v709_v61  ;;  %v767_v45 = vpop.f32.mrb[38].mxu0  ;;  %v1153_v46 = vpop.f32.mrb[37].mxu1 }
 0x141   :  { %v806_v47 = vmax.f32 %v765_v39, 0.0  ;;  %v768_v48 = vadd.f32 %v767_v45, %v1527_v59  ;;  %v1138_v49 = vpop.f32.mrb[39].mxu0  ;;  %v799_v50 = vpop.f32.mrb[38].mxu1 }
 0x142   :  { %v814_v51 = vmax.f32 %v797_v44, 0.0  ;;  %v1154_v52 = vpop.f32.mrb[39].mxu1 }
 0x143   :  { %v983_v53 = vpack.c.bf16 %v806_v47, %v806_v47  ;;  %v807_v57 = vmax.f32 %v768_v48, 0.0 }
 0x144   :  { %v991_v54 = vpack.c.bf16 %v814_v51, %v814_v51 }
 0x145   :  { %873 = vst.msk [vmem:[%s1602_s3 + $0x10] sm:$0xf] %vm868_vm2, %v983_v53  ;;  %v984_v55 = vpack.c.bf16 %v807_v57, %v807_v57 }
 0x146   :  { %882 = vst.msk [vmem:[%s1602_s3 + $0x30] sm:$0x1] %vm881_vm3, %v991_v54  ;;  %v772_v56 = vpop.f32.mrb[40].mxu0 }
 0x147   :  { %874 = vst.msk [vmem:[%s1602_s3 + $0x14] sm:$0xf] %vm868_vm2, %v984_v55  ;;  %v773_v59 = vadd.f32 %v772_v56, %v1531_v9  ;;  %v1141_v58 = vpop.f32.mrb[41].mxu0 }
 0x148   :  { %v775_v60 = vpop.f32.mrb[42].mxu0 }
 0x149   :  { %v808_v61 = vmax.f32 %v773_v59, 0.0  ;;  %v776_v62 = vadd.f32 %v775_v60, %v1533_v12  ;;  %v1142_v63 = vpop.f32.mrb[43].mxu0 }
 0x14b   :  { %v985_v0 = vpack.c.bf16 %v808_v61, %v808_v61  ;;  %v809_v1 = vmax.f32 %v776_v62, 0.0 }
 0x14d   :  { %875 = vst.msk [vmem:[%s1602_s3 + $0x18] sm:$0xf] %vm868_vm2, %v985_v0  ;;  %v986_v2 = vpack.c.bf16 %v809_v1, %v809_v1 }
 0x14f   :  { %876 = vst.msk [vmem:[%s1602_s3 + $0x1c] sm:$0xf] %vm868_vm2, %v986_v2 }

// kernel: dqn_forward.7
= control target key start
LH: loop header
LB: loop body
LE: loop exit
PB: predicated region body
PF: predicated region fallthrough
CT: control target
= control target key end

     0   :  { %10 = vsyncpa [#allocation5], 0  ;;  %s6446_s18 = smov 0   ;;  %s6448_s19 = smov 0   ;;  %s7859_s0 = inlined_call_operand.vmem [shape: bf16[2,3136], index: 0, kind: input, shape index: {}]   ;;  %s7860_s1 = inlined_call_operand.vmem [shape: bf16[3136,512], index: 1, kind: input, shape index: {}]   ;;  %s7861_s2 = inlined_call_operand.vmem [shape: f32[1,512], index: 2, kind: input, shape index: {}]   ;;  %s7862_s3 = inlined_call_operand.vmem [shape: bf16[512,4], index: 3, kind: input, shape index: {}]   ;;  %s7863_s4 = inlined_call_operand.vmem [shape: f32[1,4], index: 4, kind: input, shape index: {}]   ;;  %s7864_s5 = inlined_call_operand.hbm [shape: f32[2,4], index: 5, kind: output, shape index: {}]  }
   0x1   :  { %s6450_s20 = smov 0  }
   0x2 LB: > { %s6462_s21 = sadd.s32 4294967295, %s6410_s20   ;;  %s6465_s22 = sadd.s32 1, %s6410_s20   ;;  %s6410_s20 = sphi %s6450_s20, %s7867_s20   ;;  %s6406_s19 = sphi %s6448_s19, %s7866_s19   ;;  %s6402_s18 = sphi %s6446_s18, %s7865_s18  }
   0x3   : > { %s41_s23 = ssub.s32 %s6410_s20, %s6465_s22  ;;  %s44_s24 = sadd.s32 1, %s6406_s19 }
   0x4   : > { %p42_p0 = scmp.eq.s32.totalorder %s41_s23, 0  ;;  %p51_p1 = scmp.ne.s32.totalorder %s6406_s19, %s6402_s18 }
   0x5   : > { %p52_p2 = scmp.eq.s32.totalorder %s6410_s20, 0  ;;  %p5218_p4 = scmp.ge.s32.totalorder %s6410_s20, 2 }
   0x6   : > { %s6474_s25 = scalar_select %p42_p0, %s6406_s19, %s44_s24  }
   0x7   : > { %p53_p3 = por %p52_p2, %p51_p1  ;;  %177 = sbr.rel (%p5218_p4) target bundleno = 214 (0xd6), region = 24 }
   0xe   : > { %180 = sbr.rel (!%p53_p3) target bundleno = 214 (0xd6), region = 28  ;;  %s182_s26 = sand.u32 (%p53_p3), 1, %s6406_s19  }
   0xf   : > { %s5642_s27 = sshll.u32 (%p53_p3), %s6410_s20, 3  ;;  %s5713_s28 = smul.u32 (%p53_p3), 3136, %s182_s26 }
  0x10   : > { %s6482_s6 = scalar_lea.vmem (%p53_p3), %s7860_s1, %s5642_s27 }
  0x11   : > { %v997_v0 = vld [vmem:[%s6482_s6] sm:$0xff] (%p53_p3)  ;;  %v999_v1 = vld [vmem:[%s6482_s6 + $0x10] sm:$0xff] (%p53_p3)  ;;  %s6490_s7 = scalar_lea.vmem (%p53_p3), [#allocation3], %s5713_s28 }
  0x12   : > { %v1001_v2 = vld [vmem:[%s6482_s6 + $0x20] sm:$0xff] (%p53_p3)  ;;  %v1003_v3 = vld [vmem:[%s6482_s6 + $0x30] sm:$0xff] (%p53_p3)  ;;  %998 = vst [vmem:[%s6490_s7] sm:$0xff] (%p53_p3), %v997_v0  ;;  %1000 = vst [vmem:[%s6490_s7 + $0x8] sm:$0xff] (%p53_p3), %v999_v1 }
  0x13   : > { %v1005_v4 = vld [vmem:[%s6482_s6 + $0x40] sm:$0xff] (%p53_p3)  ;;  %v1007_v5 = vld [vmem:[%s6482_s6 + $0x50] sm:$0xff] (%p53_p3)  ;;  %1002 = vst [vmem:[%s6490_s7 + $0x10] sm:$0xff] (%p53_p3), %v1001_v2  ;;  %1004 = vst [vmem:[%s6490_s7 + $0x18] sm:$0xff] (%p53_p3), %v1003_v3 }
  0x14   : > { %1006 = vst [vmem:[%s6490_s7 + $0x20] sm:$0xff] (%p53_p3), %v1005_v4  ;;  %1008 = vst [vmem:[%s6490_s7 + $0x28] sm:$0xff] (%p53_p3), %v1007_v5  ;;  %v1009_v6 = vld [vmem:[%s6482_s6 + $0x60] sm:$0xff] (%p53_p3)  ;;  %v1011_v7 = vld [vmem:[%s6482_s6 + $0x70] sm:$0xff] (%p53_p3) }
  0x15   : > { %v1013_v8 = vld [vmem:[%s6482_s6 + $0x80] sm:$0xff]  ;;  %1010 = vst [vmem:[%s6490_s7 + $0x30] sm:$0xff] %v1009_v6  ;;  %1012 = vst [vmem:[%s6490_s7 + $0x38] sm:$0xff] %v1011_v7  ;;  %v1015_v9 = vld [vmem:[%s6482_s6 + $0x90] sm:$0xff] }
  0x16   : > { %1014 = vst [vmem:[%s6490_s7 + $0x40] sm:$0xff] %v1013_v8  ;;  %v1017_v10 = vld [vmem:[%s6482_s6 + $0xa0] sm:$0xff]  ;;  %v1019_v11 = vld [vmem:[%s6482_s6 + $0xb0] sm:$0xff]  ;;  %1016 = vst [vmem:[%s6490_s7 + $0x48] sm:$0xff] %v1015_v9 }
  0x17   : > { %1018 = vst [vmem:[%s6490_s7 + $0x50] sm:$0xff] %v1017_v10  ;;  %1020 = vst [vmem:[%s6490_s7 + $0x58] sm:$0xff] %v1019_v11  ;;  %v1021_v12 = vld [vmem:[%s6482_s6 + $0xc0] sm:$0xff]  ;;  %v1023_v13 = vld [vmem:[%s6482_s6 + $0xd0] sm:$0xff] }
  0x18   : > { %v1025_v14 = vld [vmem:[%s6482_s6 + $0xe0] sm:$0xff]  ;;  %1022 = vst [vmem:[%s6490_s7 + $0x60] sm:$0xff] %v1021_v12  ;;  %1024 = vst [vmem:[%s6490_s7 + $0x68] sm:$0xff] %v1023_v13  ;;  %v1027_v15 = vld [vmem:[%s6482_s6 + $0xf0] sm:$0xff] }
  0x19   : > { %1026 = vst [vmem:[%s6490_s7 + $0x70] sm:$0xff] %v1025_v14  ;;  %v1029_v16 = vld [vmem:[%s6482_s6 + $0x100] sm:$0xff]  ;;  %v1031_v17 = vld [vmem:[%s6482_s6 + $0x110] sm:$0xff]  ;;  %1028 = vst [vmem:[%s6490_s7 + $0x78] sm:$0xff] %v1027_v15 }
  0x1a   : > { %1030 = vst [vmem:[%s6490_s7 + $0x80] sm:$0xff] %v1029_v16  ;;  %1032 = vst [vmem:[%s6490_s7 + $0x88] sm:$0xff] %v1031_v17  ;;  %v1033_v18 = vld [vmem:[%s6482_s6 + $0x120] sm:$0xff]  ;;  %v1035_v19 = vld [vmem:[%s6482_s6 + $0x130] sm:$0xff] }
  0x1b   : > { %v1037_v20 = vld [vmem:[%s6482_s6 + $0x140] sm:$0xff]  ;;  %1034 = vst [vmem:[%s6490_s7 + $0x90] sm:$0xff] %v1033_v18  ;;  %1036 = vst [vmem:[%s6490_s7 + $0x98] sm:$0xff] %v1035_v19  ;;  %v1039_v21 = vld [vmem:[%s6482_s6 + $0x150] sm:$0xff] }
  0x1c   : > { %1038 = vst [vmem:[%s6490_s7 + $0xa0] sm:$0xff] %v1037_v20  ;;  %v1041_v22 = vld [vmem:[%s6482_s6 + $0x160] sm:$0xff]  ;;  %v1043_v23 = vld [vmem:[%s6482_s6 + $0x170] sm:$0xff]  ;;  %1040 = vst [vmem:[%s6490_s7 + $0xa8] sm:$0xff] %v1039_v21 }
  0x1d   : > { %1042 = vst [vmem:[%s6490_s7 + $0xb0] sm:$0xff] %v1041_v22  ;;  %1044 = vst [vmem:[%s6490_s7 + $0xb8] sm:$0xff] %v1043_v23  ;;  %v1045_v24 = vld [vmem:[%s6482_s6 + $0x180] sm:$0xff]  ;;  %v1047_v25 = vld [vmem:[%s6482_s6 + $0x190] sm:$0xff] }
  0x1e   : > { %v1049_v26 = vld [vmem:[%s6482_s6 + $0x1a0] sm:$0xff]  ;;  %1046 = vst [vmem:[%s6490_s7 + $0xc0] sm:$0xff] %v1045_v24  ;;  %1048 = vst [vmem:[%s6490_s7 + $0xc8] sm:$0xff] %v1047_v25  ;;  %v1051_v27 = vld [vmem:[%s6482_s6 + $0x1b0] sm:$0xff] }
  0x1f   : > { %1050 = vst [vmem:[%s6490_s7 + $0xd0] sm:$0xff] %v1049_v26  ;;  %v1053_v28 = vld [vmem:[%s6482_s6 + $0x1c0] sm:$0xff]  ;;  %v1055_v29 = vld [vmem:[%s6482_s6 + $0x1d0] sm:$0xff]  ;;  %1052 = vst [vmem:[%s6490_s7 + $0xd8] sm:$0xff] %v1051_v27 }
  0x20   : > { %1054 = vst [vmem:[%s6490_s7 + $0xe0] sm:$0xff] %v1053_v28  ;;  %1056 = vst [vmem:[%s6490_s7 + $0xe8] sm:$0xff] %v1055_v29  ;;  %v1057_v30 = vld [vmem:[%s6482_s6 + $0x1e0] sm:$0xff]  ;;  %v1059_v31 = vld [vmem:[%s6482_s6 + $0x1f0] sm:$0xff] }
  0x21   : > { %v1061_v32 = vld [vmem:[%s6482_s6 + $0x200] sm:$0xff]  ;;  %1058 = vst [vmem:[%s6490_s7 + $0xf0] sm:$0xff] %v1057_v30  ;;  %1060 = vst [vmem:[%s6490_s7 + $0xf8] sm:$0xff] %v1059_v31  ;;  %v1063_v33 = vld [vmem:[%s6482_s6 + $0x210] sm:$0xff] }
  0x22   : > { %1062 = vst [vmem:[%s6490_s7 + $0x100] sm:$0xff] %v1061_v32  ;;  %v1065_v34 = vld [vmem:[%s6482_s6 + $0x220] sm:$0xff]  ;;  %v1067_v35 = vld [vmem:[%s6482_s6 + $0x230] sm:$0xff]  ;;  %1064 = vst [vmem:[%s6490_s7 + $0x108] sm:$0xff] %v1063_v33 }
  0x23   : > { %1066 = vst [vmem:[%s6490_s7 + $0x110] sm:$0xff] %v1065_v34  ;;  %1068 = vst [vmem:[%s6490_s7 + $0x118] sm:$0xff] %v1067_v35  ;;  %v1069_v36 = vld [vmem:[%s6482_s6 + $0x240] sm:$0xff]  ;;  %v1071_v37 = vld [vmem:[%s6482_s6 + $0x250] sm:$0xff] }
  0x24   : > { %v1073_v38 = vld [vmem:[%s6482_s6 + $0x260] sm:$0xff]  ;;  %1070 = vst [vmem:[%s6490_s7 + $0x120] sm:$0xff] %v1069_v36  ;;  %1072 = vst [vmem:[%s6490_s7 + $0x128] sm:$0xff] %v1071_v37  ;;  %v1075_v39 = vld [vmem:[%s6482_s6 + $0x270] sm:$0xff] }
  0x25   : > { %1074 = vst [vmem:[%s6490_s7 + $0x130] sm:$0xff] %v1073_v38  ;;  %v1077_v40 = vld [vmem:[%s6482_s6 + $0x280] sm:$0xff]  ;;  %v1079_v41 = vld [vmem:[%s6482_s6 + $0x290] sm:$0xff]  ;;  %1076 = vst [vmem:[%s6490_s7 + $0x138] sm:$0xff] %v1075_v39 }
  0x26   : > { %1078 = vst [vmem:[%s6490_s7 + $0x140] sm:$0xff] %v1077_v40  ;;  %1080 = vst [vmem:[%s6490_s7 + $0x148] sm:$0xff] %v1079_v41  ;;  %v1081_v42 = vld [vmem:[%s6482_s6 + $0x2a0] sm:$0xff]  ;;  %v1083_v43 = vld [vmem:[%s6482_s6 + $0x2b0] sm:$0xff] }
  0x27   : > { %v1085_v44 = vld [vmem:[%s6482_s6 + $0x2c0] sm:$0xff]  ;;  %1082 = vst [vmem:[%s6490_s7 + $0x150] sm:$0xff] %v1081_v42  ;;  %1084 = vst [vmem:[%s6490_s7 + $0x158] sm:$0xff] %v1083_v43  ;;  %v1087_v45 = vld [vmem:[%s6482_s6 + $0x2d0] sm:$0xff] }
  0x28   : > { %1086 = vst [vmem:[%s6490_s7 + $0x160] sm:$0xff] %v1085_v44  ;;  %v1089_v46 = vld [vmem:[%s6482_s6 + $0x2e0] sm:$0xff]  ;;  %v1091_v47 = vld [vmem:[%s6482_s6 + $0x2f0] sm:$0xff]  ;;  %1088 = vst [vmem:[%s6490_s7 + $0x168] sm:$0xff] %v1087_v45 }
  0x29   : > { %1090 = vst [vmem:[%s6490_s7 + $0x170] sm:$0xff] %v1089_v46  ;;  %1092 = vst [vmem:[%s6490_s7 + $0x178] sm:$0xff] %v1091_v47  ;;  %v1093_v48 = vld [vmem:[%s6482_s6 + $0x300] sm:$0xff]  ;;  %v1095_v49 = vld [vmem:[%s6482_s6 + $0x310] sm:$0xff] }
  0x2a   : > { %v1097_v50 = vld [vmem:[%s6482_s6 + $0x320] sm:$0xff]  ;;  %1094 = vst [vmem:[%s6490_s7 + $0x180] sm:$0xff] %v1093_v48  ;;  %1096 = vst [vmem:[%s6490_s7 + $0x188] sm:$0xff] %v1095_v49  ;;  %v1099_v51 = vld [vmem:[%s6482_s6 + $0x330] sm:$0xff] }
  0x2b   : > { %1098 = vst [vmem:[%s6490_s7 + $0x190] sm:$0xff] %v1097_v50  ;;  %v1101_v52 = vld [vmem:[%s6482_s6 + $0x340] sm:$0xff]  ;;  %v1103_v53 = vld [vmem:[%s6482_s6 + $0x350] sm:$0xff]  ;;  %1100 = vst [vmem:[%s6490_s7 + $0x198] sm:$0xff] %v1099_v51 }
  0x2c   : > { %1102 = vst [vmem:[%s6490_s7 + $0x1a0] sm:$0xff] %v1101_v52  ;;  %1104 = vst [vmem:[%s6490_s7 + $0x1a8] sm:$0xff] %v1103_v53  ;;  %v1105_v54 = vld [vmem:[%s6482_s6 + $0x360] sm:$0xff]  ;;  %v1107_v55 = vld [vmem:[%s6482_s6 + $0x370] sm:$0xff] }
  0x2d   : > { %v1109_v56 = vld [vmem:[%s6482_s6 + $0x380] sm:$0xff]  ;;  %1106 = vst [vmem:[%s6490_s7 + $0x1b0] sm:$0xff] %v1105_v54  ;;  %1108 = vst [vmem:[%s6490_s7 + $0x1b8] sm:$0xff] %v1107_v55  ;;  %v1111_v57 = vld [vmem:[%s6482_s6 + $0x390] sm:$0xff] }
  0x2e   : > { %1110 = vst [vmem:[%s6490_s7 + $0x1c0] sm:$0xff] %v1109_v56  ;;  %v1113_v58 = vld [vmem:[%s6482_s6 + $0x3a0] sm:$0xff]  ;;  %v1115_v59 = vld [vmem:[%s6482_s6 + $0x3b0] sm:$0xff]  ;;  %1112 = vst [vmem:[%s6490_s7 + $0x1c8] sm:$0xff] %v1111_v57 }
  0x2f   : > { %1114 = vst [vmem:[%s6490_s7 + $0x1d0] sm:$0xff] %v1113_v58  ;;  %1116 = vst [vmem:[%s6490_s7 + $0x1d8] sm:$0xff] %v1115_v59  ;;  %v1117_v60 = vld [vmem:[%s6482_s6 + $0x3c0] sm:$0xff]  ;;  %v1119_v61 = vld [vmem:[%s6482_s6 + $0x3d0] sm:$0xff] }
  0x30   : > { %v1121_v62 = vld [vmem:[%s6482_s6 + $0x3e0] sm:$0xff]  ;;  %1118 = vst [vmem:[%s6490_s7 + $0x1e0] sm:$0xff] %v1117_v60  ;;  %1120 = vst [vmem:[%s6490_s7 + $0x1e8] sm:$0xff] %v1119_v61  ;;  %v1123_v63 = vld [vmem:[%s6482_s6 + $0x3f0] sm:$0xff] }
  0x31   : > { %1122 = vst [vmem:[%s6490_s7 + $0x1f0] sm:$0xff] %v1121_v62  ;;  %v1125_v0 = vld [vmem:[%s6482_s6 + $0x400] sm:$0xff]  ;;  %v1127_v1 = vld [vmem:[%s6482_s6 + $0x410] sm:$0xff]  ;;  %1124 = vst [vmem:[%s6490_s7 + $0x1f8] sm:$0xff] %v1123_v63 }
  0x32   : > { %1126 = vst [vmem:[%s6490_s7 + $0x200] sm:$0xff] %v1125_v0  ;;  %1128 = vst [vmem:[%s6490_s7 + $0x208] sm:$0xff] %v1127_v1  ;;  %v1129_v2 = vld [vmem:[%s6482_s6 + $0x420] sm:$0xff]  ;;  %v1131_v3 = vld [vmem:[%s6482_s6 + $0x430] sm:$0xff] }
  0x33   : > { %v1133_v4 = vld [vmem:[%s6482_s6 + $0x440] sm:$0xff]  ;;  %1130 = vst [vmem:[%s6490_s7 + $0x210] sm:$0xff] %v1129_v2  ;;  %1132 = vst [vmem:[%s6490_s7 + $0x218] sm:$0xff] %v1131_v3  ;;  %v1135_v5 = vld [vmem:[%s6482_s6 + $0x450] sm:$0xff] }
  0x34   : > { %1134 = vst [vmem:[%s6490_s7 + $0x220] sm:$0xff] %v1133_v4  ;;  %v1137_v6 = vld [vmem:[%s6482_s6 + $0x460] sm:$0xff]  ;;  %v1139_v7 = vld [vmem:[%s6482_s6 + $0x470] sm:$0xff]  ;;  %1136 = vst [vmem:[%s6490_s7 + $0x228] sm:$0xff] %v1135_v5 }
  0x35   : > { %1138 = vst [vmem:[%s6490_s7 + $0x230] sm:$0xff] %v1137_v6  ;;  %1140 = vst [vmem:[%s6490_s7 + $0x238] sm:$0xff] %v1139_v7  ;;  %v1141_v8 = vld [vmem:[%s6482_s6 + $0x480] sm:$0xff]  ;;  %v1143_v9 = vld [vmem:[%s6482_s6 + $0x490] sm:$0xff] }
  0x36   : > { %v1145_v10 = vld [vmem:[%s6482_s6 + $0x4a0] sm:$0xff]  ;;  %1142 = vst [vmem:[%s6490_s7 + $0x240] sm:$0xff] %v1141_v8  ;;  %1144 = vst [vmem:[%s6490_s7 + $0x248] sm:$0xff] %v1143_v9  ;;  %v1147_v11 = vld [vmem:[%s6482_s6 + $0x4b0] sm:$0xff] }
  0x37   : > { %1146 = vst [vmem:[%s6490_s7 + $0x250] sm:$0xff] %v1145_v10  ;;  %v1149_v12 = vld [vmem:[%s6482_s6 + $0x4c0] sm:$0xff]  ;;  %v1151_v13 = vld [vmem:[%s6482_s6 + $0x4d0] sm:$0xff]  ;;  %1148 = vst [vmem:[%s6490_s7 + $0x258] sm:$0xff] %v1147_v11 }
  0x38   : > { %1150 = vst [vmem:[%s6490_s7 + $0x260] sm:$0xff] %v1149_v12  ;;  %1152 = vst [vmem:[%s6490_s7 + $0x268] sm:$0xff] %v1151_v13  ;;  %v1153_v14 = vld [vmem:[%s6482_s6 + $0x4e0] sm:$0xff]  ;;  %v1155_v15 = vld [vmem:[%s6482_s6 + $0x4f0] sm:$0xff] }
  0x39   : > { %v1157_v16 = vld [vmem:[%s6482_s6 + $0x500] sm:$0xff]  ;;  %1154 = vst [vmem:[%s6490_s7 + $0x270] sm:$0xff] %v1153_v14  ;;  %1156 = vst [vmem:[%s6490_s7 + $0x278] sm:$0xff] %v1155_v15  ;;  %v1159_v17 = vld [vmem:[%s6482_s6 + $0x510] sm:$0xff] }
  0x3a   : > { %1158 = vst [vmem:[%s6490_s7 + $0x280] sm:$0xff] %v1157_v16  ;;  %v1161_v18 = vld [vmem:[%s6482_s6 + $0x520] sm:$0xff]  ;;  %v1163_v19 = vld [vmem:[%s6482_s6 + $0x530] sm:$0xff]  ;;  %1160 = vst [vmem:[%s6490_s7 + $0x288] sm:$0xff] %v1159_v17 }
  0x3b   : > { %1162 = vst [vmem:[%s6490_s7 + $0x290] sm:$0xff] %v1161_v18  ;;  %1164 = vst [vmem:[%s6490_s7 + $0x298] sm:$0xff] %v1163_v19  ;;  %v1165_v20 = vld [vmem:[%s6482_s6 + $0x540] sm:$0xff]  ;;  %v1167_v21 = vld [vmem:[%s6482_s6 + $0x550] sm:$0xff] }
  0x3c   : > { %v1169_v22 = vld [vmem:[%s6482_s6 + $0x560] sm:$0xff]  ;;  %1166 = vst [vmem:[%s6490_s7 + $0x2a0] sm:$0xff] %v1165_v20  ;;  %1168 = vst [vmem:[%s6490_s7 + $0x2a8] sm:$0xff] %v1167_v21  ;;  %v1171_v23 = vld [vmem:[%s6482_s6 + $0x570] sm:$0xff] }
  0x3d   : > { %1170 = vst [vmem:[%s6490_s7 + $0x2b0] sm:$0xff] %v1169_v22  ;;  %v1173_v24 = vld [vmem:[%s6482_s6 + $0x580] sm:$0xff]  ;;  %v1175_v25 = vld [vmem:[%s6482_s6 + $0x590] sm:$0xff]  ;;  %1172 = vst [vmem:[%s6490_s7 + $0x2b8] sm:$0xff] %v1171_v23 }
  0x3e   : > { %1174 = vst [vmem:[%s6490_s7 + $0x2c0] sm:$0xff] %v1173_v24  ;;  %1176 = vst [vmem:[%s6490_s7 + $0x2c8] sm:$0xff] %v1175_v25  ;;  %v1177_v26 = vld [vmem:[%s6482_s6 + $0x5a0] sm:$0xff]  ;;  %v1179_v27 = vld [vmem:[%s6482_s6 + $0x5b0] sm:$0xff] }
  0x3f   : > { %v1181_v28 = vld [vmem:[%s6482_s6 + $0x5c0] sm:$0xff]  ;;  %1178 = vst [vmem:[%s6490_s7 + $0x2d0] sm:$0xff] %v1177_v26  ;;  %1180 = vst [vmem:[%s6490_s7 + $0x2d8] sm:$0xff] %v1179_v27  ;;  %v1183_v29 = vld [vmem:[%s6482_s6 + $0x5d0] sm:$0xff] }
  0x40   : > { %1182 = vst [vmem:[%s6490_s7 + $0x2e0] sm:$0xff] %v1181_v28  ;;  %v1185_v30 = vld [vmem:[%s6482_s6 + $0x5e0] sm:$0xff]  ;;  %v1187_v31 = vld [vmem:[%s6482_s6 + $0x5f0] sm:$0xff]  ;;  %1184 = vst [vmem:[%s6490_s7 + $0x2e8] sm:$0xff] %v1183_v29 }
  0x41   : > { %1186 = vst [vmem:[%s6490_s7 + $0x2f0] sm:$0xff] %v1185_v30  ;;  %1188 = vst [vmem:[%s6490_s7 + $0x2f8] sm:$0xff] %v1187_v31  ;;  %v1189_v32 = vld [vmem:[%s6482_s6 + $0x600] sm:$0xff]  ;;  %v1191_v33 = vld [vmem:[%s6482_s6 + $0x610] sm:$0xff] }
  0x42   : > { %v1193_v34 = vld [vmem:[%s6482_s6 + $0x620] sm:$0xff]  ;;  %1190 = vst [vmem:[%s6490_s7 + $0x300] sm:$0xff] %v1189_v32  ;;  %1192 = vst [vmem:[%s6490_s7 + $0x308] sm:$0xff] %v1191_v33  ;;  %v1195_v35 = vld [vmem:[%s6482_s6 + $0x630] sm:$0xff] }
  0x43   : > { %1194 = vst [vmem:[%s6490_s7 + $0x310] sm:$0xff] %v1193_v34  ;;  %v1197_v36 = vld [vmem:[%s6482_s6 + $0x640] sm:$0xff]  ;;  %v1199_v37 = vld [vmem:[%s6482_s6 + $0x650] sm:$0xff]  ;;  %1196 = vst [vmem:[%s6490_s7 + $0x318] sm:$0xff] %v1195_v35 }
  0x44   : > { %1198 = vst [vmem:[%s6490_s7 + $0x320] sm:$0xff] %v1197_v36  ;;  %1200 = vst [vmem:[%s6490_s7 + $0x328] sm:$0xff] %v1199_v37  ;;  %v1201_v38 = vld [vmem:[%s6482_s6 + $0x660] sm:$0xff]  ;;  %v1203_v39 = vld [vmem:[%s6482_s6 + $0x670] sm:$0xff] }
  0x45   : > { %v1205_v40 = vld [vmem:[%s6482_s6 + $0x680] sm:$0xff]  ;;  %1202 = vst [vmem:[%s6490_s7 + $0x330] sm:$0xff] %v1201_v38  ;;  %1204 = vst [vmem:[%s6490_s7 + $0x338] sm:$0xff] %v1203_v39  ;;  %v1207_v41 = vld [vmem:[%s6482_s6 + $0x690] sm:$0xff] }
  0x46   : > { %1206 = vst [vmem:[%s6490_s7 + $0x340] sm:$0xff] %v1205_v40  ;;  %v1209_v42 = vld [vmem:[%s6482_s6 + $0x6a0] sm:$0xff]  ;;  %v1211_v43 = vld [vmem:[%s6482_s6 + $0x6b0] sm:$0xff]  ;;  %1208 = vst [vmem:[%s6490_s7 + $0x348] sm:$0xff] %v1207_v41 }
  0x47   : > { %1210 = vst [vmem:[%s6490_s7 + $0x350] sm:$0xff] %v1209_v42  ;;  %1212 = vst [vmem:[%s6490_s7 + $0x358] sm:$0xff] %v1211_v43  ;;  %v1213_v44 = vld [vmem:[%s6482_s6 + $0x6c0] sm:$0xff]  ;;  %v1215_v45 = vld [vmem:[%s6482_s6 + $0x6d0] sm:$0xff] }
  0x48   : > { %v1217_v46 = vld [vmem:[%s6482_s6 + $0x6e0] sm:$0xff]  ;;  %1214 = vst [vmem:[%s6490_s7 + $0x360] sm:$0xff] %v1213_v44  ;;  %1216 = vst [vmem:[%s6490_s7 + $0x368] sm:$0xff] %v1215_v45  ;;  %v1219_v47 = vld [vmem:[%s6482_s6 + $0x6f0] sm:$0xff] }
  0x49   : > { %1218 = vst [vmem:[%s6490_s7 + $0x370] sm:$0xff] %v1217_v46  ;;  %v1221_v48 = vld [vmem:[%s6482_s6 + $0x700] sm:$0xff]  ;;  %v1223_v49 = vld [vmem:[%s6482_s6 + $0x710] sm:$0xff]  ;;  %1220 = vst [vmem:[%s6490_s7 + $0x378] sm:$0xff] %v1219_v47 }
  0x4a   : > { %1222 = vst [vmem:[%s6490_s7 + $0x380] sm:$0xff] %v1221_v48  ;;  %1224 = vst [vmem:[%s6490_s7 + $0x388] sm:$0xff] %v1223_v49  ;;  %v1225_v50 = vld [vmem:[%s6482_s6 + $0x720] sm:$0xff]  ;;  %v1227_v51 = vld [vmem:[%s6482_s6 + $0x730] sm:$0xff] }
  0x4b   : > { %v1229_v52 = vld [vmem:[%s6482_s6 + $0x740] sm:$0xff]  ;;  %1226 = vst [vmem:[%s6490_s7 + $0x390] sm:$0xff] %v1225_v50  ;;  %1228 = vst [vmem:[%s6490_s7 + $0x398] sm:$0xff] %v1227_v51  ;;  %v1231_v53 = vld [vmem:[%s6482_s6 + $0x750] sm:$0xff] }
  0x4c   : > { %1230 = vst [vmem:[%s6490_s7 + $0x3a0] sm:$0xff] %v1229_v52  ;;  %v1233_v54 = vld [vmem:[%s6482_s6 + $0x760] sm:$0xff]  ;;  %v1235_v55 = vld [vmem:[%s6482_s6 + $0x770] sm:$0xff]  ;;  %1232 = vst [vmem:[%s6490_s7 + $0x3a8] sm:$0xff] %v1231_v53 }
  0x4d   : > { %1234 = vst [vmem:[%s6490_s7 + $0x3b0] sm:$0xff] %v1233_v54  ;;  %1236 = vst [vmem:[%s6490_s7 + $0x3b8] sm:$0xff] %v1235_v55  ;;  %v1237_v56 = vld [vmem:[%s6482_s6 + $0x780] sm:$0xff]  ;;  %v1239_v57 = vld [vmem:[%s6482_s6 + $0x790] sm:$0xff] }
  0x4e   : > { %v1241_v58 = vld [vmem:[%s6482_s6 + $0x7a0] sm:$0xff]  ;;  %1238 = vst [vmem:[%s6490_s7 + $0x3c0] sm:$0xff] %v1237_v56  ;;  %1240 = vst [vmem:[%s6490_s7 + $0x3c8] sm:$0xff] %v1239_v57  ;;  %v1243_v59 = vld [vmem:[%s6482_s6 + $0x7b0] sm:$0xff] }
  0x4f   : > { %1242 = vst [vmem:[%s6490_s7 + $0x3d0] sm:$0xff] %v1241_v58  ;;  %v1245_v60 = vld [vmem:[%s6482_s6 + $0x7c0] sm:$0xff]  ;;  %v1247_v61 = vld [vmem:[%s6482_s6 + $0x7d0] sm:$0xff]  ;;  %1244 = vst [vmem:[%s6490_s7 + $0x3d8] sm:$0xff] %v1243_v59 }
  0x50   : > { %1246 = vst [vmem:[%s6490_s7 + $0x3e0] sm:$0xff] %v1245_v60  ;;  %1248 = vst [vmem:[%s6490_s7 + $0x3e8] sm:$0xff] %v1247_v61  ;;  %v1249_v62 = vld [vmem:[%s6482_s6 + $0x7e0] sm:$0xff]  ;;  %v1251_v63 = vld [vmem:[%s6482_s6 + $0x7f0] sm:$0xff] }
  0x51   : > { %v1253_v0 = vld [vmem:[%s6482_s6 + $0x800] sm:$0xff]  ;;  %1250 = vst [vmem:[%s6490_s7 + $0x3f0] sm:$0xff] %v1249_v62  ;;  %1252 = vst [vmem:[%s6490_s7 + $0x3f8] sm:$0xff] %v1251_v63  ;;  %v1255_v1 = vld [vmem:[%s6482_s6 + $0x810] sm:$0xff] }
  0x52   : > { %1254 = vst [vmem:[%s6490_s7 + $0x400] sm:$0xff] %v1253_v0  ;;  %v1257_v2 = vld [vmem:[%s6482_s6 + $0x820] sm:$0xff]  ;;  %v1259_v3 = vld [vmem:[%s6482_s6 + $0x830] sm:$0xff]  ;;  %1256 = vst [vmem:[%s6490_s7 + $0x408] sm:$0xff] %v1255_v1 }
  0x53   : > { %1258 = vst [vmem:[%s6490_s7 + $0x410] sm:$0xff] %v1257_v2  ;;  %1260 = vst [vmem:[%s6490_s7 + $0x418] sm:$0xff] %v1259_v3  ;;  %v1261_v4 = vld [vmem:[%s6482_s6 + $0x840] sm:$0xff]  ;;  %v1263_v5 = vld [vmem:[%s6482_s6 + $0x850] sm:$0xff] }
  0x54   : > { %v1265_v6 = vld [vmem:[%s6482_s6 + $0x860] sm:$0xff]  ;;  %1262 = vst [vmem:[%s6490_s7 + $0x420] sm:$0xff] %v1261_v4  ;;  %1264 = vst [vmem:[%s6490_s7 + $0x428] sm:$0xff] %v1263_v5  ;;  %v1267_v7 = vld [vmem:[%s6482_s6 + $0x870] sm:$0xff] }
  0x55   : > { %1266 = vst [vmem:[%s6490_s7 + $0x430] sm:$0xff] %v1265_v6  ;;  %v1269_v8 = vld [vmem:[%s6482_s6 + $0x880] sm:$0xff]  ;;  %v1271_v9 = vld [vmem:[%s6482_s6 + $0x890] sm:$0xff]  ;;  %1268 = vst [vmem:[%s6490_s7 + $0x438] sm:$0xff] %v1267_v7 }
  0x56   : > { %1270 = vst [vmem:[%s6490_s7 + $0x440] sm:$0xff] %v1269_v8  ;;  %1272 = vst [vmem:[%s6490_s7 + $0x448] sm:$0xff] %v1271_v9  ;;  %v1273_v10 = vld [vmem:[%s6482_s6 + $0x8a0] sm:$0xff]  ;;  %v1275_v11 = vld [vmem:[%s6482_s6 + $0x8b0] sm:$0xff] }
  0x57   : > { %v1277_v12 = vld [vmem:[%s6482_s6 + $0x8c0] sm:$0xff]  ;;  %1274 = vst [vmem:[%s6490_s7 + $0x450] sm:$0xff] %v1273_v10  ;;  %1276 = vst [vmem:[%s6490_s7 + $0x458] sm:$0xff] %v1275_v11  ;;  %v1279_v13 = vld [vmem:[%s6482_s6 + $0x8d0] sm:$0xff] }
  0x58   : > { %1278 = vst [vmem:[%s6490_s7 + $0x460] sm:$0xff] %v1277_v12  ;;  %v1281_v14 = vld [vmem:[%s6482_s6 + $0x8e0] sm:$0xff]  ;;  %v1283_v15 = vld [vmem:[%s6482_s6 + $0x8f0] sm:$0xff]  ;;  %1280 = vst [vmem:[%s6490_s7 + $0x468] sm:$0xff] %v1279_v13 }
  0x59   : > { %1282 = vst [vmem:[%s6490_s7 + $0x470] sm:$0xff] %v1281_v14  ;;  %1284 = vst [vmem:[%s6490_s7 + $0x478] sm:$0xff] %v1283_v15  ;;  %v1285_v16 = vld [vmem:[%s6482_s6 + $0x900] sm:$0xff]  ;;  %v1287_v17 = vld [vmem:[%s6482_s6 + $0x910] sm:$0xff] }
  0x5a   : > { %v1289_v18 = vld [vmem:[%s6482_s6 + $0x920] sm:$0xff]  ;;  %1286 = vst [vmem:[%s6490_s7 + $0x480] sm:$0xff] %v1285_v16  ;;  %1288 = vst [vmem:[%s6490_s7 + $0x488] sm:$0xff] %v1287_v17  ;;  %v1291_v19 = vld [vmem:[%s6482_s6 + $0x930] sm:$0xff] }
  0x5b   : > { %1290 = vst [vmem:[%s6490_s7 + $0x490] sm:$0xff] %v1289_v18  ;;  %v1293_v20 = vld [vmem:[%s6482_s6 + $0x940] sm:$0xff]  ;;  %v1295_v21 = vld [vmem:[%s6482_s6 + $0x950] sm:$0xff]  ;;  %1292 = vst [vmem:[%s6490_s7 + $0x498] sm:$0xff] %v1291_v19 }
  0x5c   : > { %1294 = vst [vmem:[%s6490_s7 + $0x4a0] sm:$0xff] %v1293_v20  ;;  %1296 = vst [vmem:[%s6490_s7 + $0x4a8] sm:$0xff] %v1295_v21  ;;  %v1297_v22 = vld [vmem:[%s6482_s6 + $0x960] sm:$0xff]  ;;  %v1299_v23 = vld [vmem:[%s6482_s6 + $0x970] sm:$0xff] }
  0x5d   : > { %v1301_v24 = vld [vmem:[%s6482_s6 + $0x980] sm:$0xff]  ;;  %1298 = vst [vmem:[%s6490_s7 + $0x4b0] sm:$0xff] %v1297_v22  ;;  %1300 = vst [vmem:[%s6490_s7 + $0x4b8] sm:$0xff] %v1299_v23  ;;  %v1303_v25 = vld [vmem:[%s6482_s6 + $0x990] sm:$0xff] }
  0x5e   : > { %1302 = vst [vmem:[%s6490_s7 + $0x4c0] sm:$0xff] %v1301_v24  ;;  %v1305_v26 = vld [vmem:[%s6482_s6 + $0x9a0] sm:$0xff]  ;;  %v1307_v27 = vld [vmem:[%s6482_s6 + $0x9b0] sm:$0xff]  ;;  %1304 = vst [vmem:[%s6490_s7 + $0x4c8] sm:$0xff] %v1303_v25 }
  0x5f   : > { %1306 = vst [vmem:[%s6490_s7 + $0x4d0] sm:$0xff] %v1305_v26  ;;  %1308 = vst [vmem:[%s6490_s7 + $0x4d8] sm:$0xff] %v1307_v27  ;;  %v1309_v28 = vld [vmem:[%s6482_s6 + $0x9c0] sm:$0xff]  ;;  %v1311_v29 = vld [vmem:[%s6482_s6 + $0x9d0] sm:$0xff] }
  0x60   : > { %v1313_v30 = vld [vmem:[%s6482_s6 + $0x9e0] sm:$0xff]  ;;  %1310 = vst [vmem:[%s6490_s7 + $0x4e0] sm:$0xff] %v1309_v28  ;;  %1312 = vst [vmem:[%s6490_s7 + $0x4e8] sm:$0xff] %v1311_v29  ;;  %v1315_v31 = vld [vmem:[%s6482_s6 + $0x9f0] sm:$0xff] }
  0x61   : > { %1314 = vst [vmem:[%s6490_s7 + $0x4f0] sm:$0xff] %v1313_v30  ;;  %v1317_v32 = vld [vmem:[%s6482_s6 + $0xa00] sm:$0xff]  ;;  %v1319_v33 = vld [vmem:[%s6482_s6 + $0xa10] sm:$0xff]  ;;  %1316 = vst [vmem:[%s6490_s7 + $0x4f8] sm:$0xff] %v1315_v31 }
  0x62   : > { %1318 = vst [vmem:[%s6490_s7 + $0x500] sm:$0xff] %v1317_v32  ;;  %1320 = vst [vmem:[%s6490_s7 + $0x508] sm:$0xff] %v1319_v33  ;;  %v1321_v34 = vld [vmem:[%s6482_s6 + $0xa20] sm:$0xff]  ;;  %v1323_v35 = vld [vmem:[%s6482_s6 + $0xa30] sm:$0xff] }
  0x63   : > { %v1325_v36 = vld [vmem:[%s6482_s6 + $0xa40] sm:$0xff]  ;;  %1322 = vst [vmem:[%s6490_s7 + $0x510] sm:$0xff] %v1321_v34  ;;  %1324 = vst [vmem:[%s6490_s7 + $0x518] sm:$0xff] %v1323_v35  ;;  %v1327_v37 = vld [vmem:[%s6482_s6 + $0xa50] sm:$0xff] }
  0x64   : > { %1326 = vst [vmem:[%s6490_s7 + $0x520] sm:$0xff] %v1325_v36  ;;  %v1329_v38 = vld [vmem:[%s6482_s6 + $0xa60] sm:$0xff]  ;;  %v1331_v39 = vld [vmem:[%s6482_s6 + $0xa70] sm:$0xff]  ;;  %1328 = vst [vmem:[%s6490_s7 + $0x528] sm:$0xff] %v1327_v37 }
  0x65   : > { %1330 = vst [vmem:[%s6490_s7 + $0x530] sm:$0xff] %v1329_v38  ;;  %1332 = vst [vmem:[%s6490_s7 + $0x538] sm:$0xff] %v1331_v39  ;;  %v1333_v40 = vld [vmem:[%s6482_s6 + $0xa80] sm:$0xff]  ;;  %v1335_v41 = vld [vmem:[%s6482_s6 + $0xa90] sm:$0xff] }
  0x66   : > { %v1337_v42 = vld [vmem:[%s6482_s6 + $0xaa0] sm:$0xff]  ;;  %1334 = vst [vmem:[%s6490_s7 + $0x540] sm:$0xff] %v1333_v40  ;;  %1336 = vst [vmem:[%s6490_s7 + $0x548] sm:$0xff] %v1335_v41  ;;  %v1339_v43 = vld [vmem:[%s6482_s6 + $0xab0] sm:$0xff] }
  0x67   : > { %1338 = vst [vmem:[%s6490_s7 + $0x550] sm:$0xff] %v1337_v42  ;;  %v1341_v44 = vld [vmem:[%s6482_s6 + $0xac0] sm:$0xff]  ;;  %v1343_v45 = vld [vmem:[%s6482_s6 + $0xad0] sm:$0xff]  ;;  %1340 = vst [vmem:[%s6490_s7 + $0x558] sm:$0xff] %v1339_v43 }
  0x68   : > { %1342 = vst [vmem:[%s6490_s7 + $0x560] sm:$0xff] %v1341_v44  ;;  %1344 = vst [vmem:[%s6490_s7 + $0x568] sm:$0xff] %v1343_v45  ;;  %v1345_v46 = vld [vmem:[%s6482_s6 + $0xae0] sm:$0xff]  ;;  %v1347_v47 = vld [vmem:[%s6482_s6 + $0xaf0] sm:$0xff] }
  0x69   : > { %v1349_v48 = vld [vmem:[%s6482_s6 + $0xb00] sm:$0xff]  ;;  %1346 = vst [vmem:[%s6490_s7 + $0x570] sm:$0xff] %v1345_v46  ;;  %1348 = vst [vmem:[%s6490_s7 + $0x578] sm:$0xff] %v1347_v47  ;;  %v1351_v49 = vld [vmem:[%s6482_s6 + $0xb10] sm:$0xff] }
  0x6a   : > { %1350 = vst [vmem:[%s6490_s7 + $0x580] sm:$0xff] %v1349_v48  ;;  %v1353_v50 = vld [vmem:[%s6482_s6 + $0xb20] sm:$0xff]  ;;  %v1355_v51 = vld [vmem:[%s6482_s6 + $0xb30] sm:$0xff]  ;;  %1352 = vst [vmem:[%s6490_s7 + $0x588] sm:$0xff] %v1351_v49 }
  0x6b   : > { %1354 = vst [vmem:[%s6490_s7 + $0x590] sm:$0xff] %v1353_v50  ;;  %1356 = vst [vmem:[%s6490_s7 + $0x598] sm:$0xff] %v1355_v51  ;;  %v1357_v52 = vld [vmem:[%s6482_s6 + $0xb40] sm:$0xff]  ;;  %v1359_v53 = vld [vmem:[%s6482_s6 + $0xb50] sm:$0xff] }
  0x6c   : > { %v1361_v54 = vld [vmem:[%s6482_s6 + $0xb60] sm:$0xff]  ;;  %1358 = vst [vmem:[%s6490_s7 + $0x5a0] sm:$0xff] %v1357_v52  ;;  %1360 = vst [vmem:[%s6490_s7 + $0x5a8] sm:$0xff] %v1359_v53  ;;  %v1363_v55 = vld [vmem:[%s6482_s6 + $0xb70] sm:$0xff] }
  0x6d   : > { %1362 = vst [vmem:[%s6490_s7 + $0x5b0] sm:$0xff] %v1361_v54  ;;  %v1365_v56 = vld [vmem:[%s6482_s6 + $0xb80] sm:$0xff]  ;;  %v1367_v57 = vld [vmem:[%s6482_s6 + $0xb90] sm:$0xff]  ;;  %1364 = vst [vmem:[%s6490_s7 + $0x5b8] sm:$0xff] %v1363_v55 }
  0x6e   : > { %1366 = vst [vmem:[%s6490_s7 + $0x5c0] sm:$0xff] %v1365_v56  ;;  %1368 = vst [vmem:[%s6490_s7 + $0x5c8] sm:$0xff] %v1367_v57  ;;  %v1369_v58 = vld [vmem:[%s6482_s6 + $0xba0] sm:$0xff]  ;;  %v1371_v59 = vld [vmem:[%s6482_s6 + $0xbb0] sm:$0xff] }
  0x6f   : > { %v1373_v60 = vld [vmem:[%s6482_s6 + $0xbc0] sm:$0xff]  ;;  %1370 = vst [vmem:[%s6490_s7 + $0x5d0] sm:$0xff] %v1369_v58  ;;  %1372 = vst [vmem:[%s6490_s7 + $0x5d8] sm:$0xff] %v1371_v59  ;;  %v1375_v61 = vld [vmem:[%s6482_s6 + $0xbd0] sm:$0xff] }
  0x70   : > { %1374 = vst [vmem:[%s6490_s7 + $0x5e0] sm:$0xff] %v1373_v60  ;;  %v1377_v62 = vld [vmem:[%s6482_s6 + $0xbe0] sm:$0xff]  ;;  %v1379_v63 = vld [vmem:[%s6482_s6 + $0xbf0] sm:$0xff]  ;;  %1376 = vst [vmem:[%s6490_s7 + $0x5e8] sm:$0xff] %v1375_v61 }
  0x71   : > { %1378 = vst [vmem:[%s6490_s7 + $0x5f0] sm:$0xff] %v1377_v62  ;;  %1380 = vst [vmem:[%s6490_s7 + $0x5f8] sm:$0xff] %v1379_v63  ;;  %v1381_v0 = vld [vmem:[%s6482_s6 + $0xc00] sm:$0xff]  ;;  %v1383_v1 = vld [vmem:[%s6482_s6 + $0xc10] sm:$0xff] }
  0x72   : > { %v1385_v2 = vld [vmem:[%s6482_s6 + $0xc20] sm:$0xff]  ;;  %1382 = vst [vmem:[%s6490_s7 + $0x600] sm:$0xff] %v1381_v0  ;;  %1384 = vst [vmem:[%s6490_s7 + $0x608] sm:$0xff] %v1383_v1  ;;  %v1387_v3 = vld [vmem:[%s6482_s6 + $0xc30] sm:$0xff] }
  0x73   : > { %1386 = vst [vmem:[%s6490_s7 + $0x610] sm:$0xff] %v1385_v2  ;;  %v1389_v4 = vld [vmem:[%s6482_s6 + $0xc40] sm:$0xff]  ;;  %v1391_v5 = vld [vmem:[%s6482_s6 + $0xc50] sm:$0xff]  ;;  %1388 = vst [vmem:[%s6490_s7 + $0x618] sm:$0xff] %v1387_v3 }
  0x74   : > { %1390 = vst [vmem:[%s6490_s7 + $0x620] sm:$0xff] %v1389_v4  ;;  %1392 = vst [vmem:[%s6490_s7 + $0x628] sm:$0xff] %v1391_v5  ;;  %v1393_v6 = vld [vmem:[%s6482_s6 + $0xc60] sm:$0xff]  ;;  %v1395_v7 = vld [vmem:[%s6482_s6 + $0xc70] sm:$0xff] }
  0x75   : > { %v1397_v8 = vld [vmem:[%s6482_s6 + $0xc80] sm:$0xff]  ;;  %1394 = vst [vmem:[%s6490_s7 + $0x630] sm:$0xff] %v1393_v6  ;;  %1396 = vst [vmem:[%s6490_s7 + $0x638] sm:$0xff] %v1395_v7  ;;  %v1399_v9 = vld [vmem:[%s6482_s6 + $0xc90] sm:$0xff] }
  0x76   : > { %1398 = vst [vmem:[%s6490_s7 + $0x640] sm:$0xff] %v1397_v8  ;;  %v1401_v10 = vld [vmem:[%s6482_s6 + $0xca0] sm:$0xff]  ;;  %v1403_v11 = vld [vmem:[%s6482_s6 + $0xcb0] sm:$0xff]  ;;  %1400 = vst [vmem:[%s6490_s7 + $0x648] sm:$0xff] %v1399_v9 }
  0x77   : > { %1402 = vst [vmem:[%s6490_s7 + $0x650] sm:$0xff] %v1401_v10  ;;  %1404 = vst [vmem:[%s6490_s7 + $0x658] sm:$0xff] %v1403_v11  ;;  %v1405_v12 = vld [vmem:[%s6482_s6 + $0xcc0] sm:$0xff]  ;;  %v1407_v13 = vld [vmem:[%s6482_s6 + $0xcd0] sm:$0xff] }
  0x78   : > { %v1409_v14 = vld [vmem:[%s6482_s6 + $0xce0] sm:$0xff]  ;;  %1406 = vst [vmem:[%s6490_s7 + $0x660] sm:$0xff] %v1405_v12  ;;  %1408 = vst [vmem:[%s6490_s7 + $0x668] sm:$0xff] %v1407_v13  ;;  %v1411_v15 = vld [vmem:[%s6482_s6 + $0xcf0] sm:$0xff] }
  0x79   : > { %1410 = vst [vmem:[%s6490_s7 + $0x670] sm:$0xff] %v1409_v14  ;;  %v1413_v16 = vld [vmem:[%s6482_s6 + $0xd00] sm:$0xff]  ;;  %v1415_v17 = vld [vmem:[%s6482_s6 + $0xd10] sm:$0xff]  ;;  %1412 = vst [vmem:[%s6490_s7 + $0x678] sm:$0xff] %v1411_v15 }
  0x7a   : > { %1414 = vst [vmem:[%s6490_s7 + $0x680] sm:$0xff] %v1413_v16  ;;  %1416 = vst [vmem:[%s6490_s7 + $0x688] sm:$0xff] %v1415_v17  ;;  %v1417_v18 = vld [vmem:[%s6482_s6 + $0xd20] sm:$0xff]  ;;  %v1419_v19 = vld [vmem:[%s6482_s6 + $0xd30] sm:$0xff] }
  0x7b   : > { %v1421_v20 = vld [vmem:[%s6482_s6 + $0xd40] sm:$0xff]  ;;  %1418 = vst [vmem:[%s6490_s7 + $0x690] sm:$0xff] %v1417_v18  ;;  %1420 = vst [vmem:[%s6490_s7 + $0x698] sm:$0xff] %v1419_v19  ;;  %v1423_v21 = vld [vmem:[%s6482_s6 + $0xd50] sm:$0xff] }
  0x7c   : > { %1422 = vst [vmem:[%s6490_s7 + $0x6a0] sm:$0xff] %v1421_v20  ;;  %v1425_v22 = vld [vmem:[%s6482_s6 + $0xd60] sm:$0xff]  ;;  %v1427_v23 = vld [vmem:[%s6482_s6 + $0xd70] sm:$0xff]  ;;  %1424 = vst [vmem:[%s6490_s7 + $0x6a8] sm:$0xff] %v1423_v21 }
  0x7d   : > { %1426 = vst [vmem:[%s6490_s7 + $0x6b0] sm:$0xff] %v1425_v22  ;;  %1428 = vst [vmem:[%s6490_s7 + $0x6b8] sm:$0xff] %v1427_v23  ;;  %v1429_v24 = vld [vmem:[%s6482_s6 + $0xd80] sm:$0xff]  ;;  %v1431_v25 = vld [vmem:[%s6482_s6 + $0xd90] sm:$0xff] }
  0x7e   : > { %v1433_v26 = vld [vmem:[%s6482_s6 + $0xda0] sm:$0xff]  ;;  %1430 = vst [vmem:[%s6490_s7 + $0x6c0] sm:$0xff] %v1429_v24  ;;  %1432 = vst [vmem:[%s6490_s7 + $0x6c8] sm:$0xff] %v1431_v25  ;;  %v1435_v27 = vld [vmem:[%s6482_s6 + $0xdb0] sm:$0xff] }
  0x7f   : > { %1434 = vst [vmem:[%s6490_s7 + $0x6d0] sm:$0xff] %v1433_v26  ;;  %v1437_v28 = vld [vmem:[%s6482_s6 + $0xdc0] sm:$0xff]  ;;  %v1439_v29 = vld [vmem:[%s6482_s6 + $0xdd0] sm:$0xff]  ;;  %1436 = vst [vmem:[%s6490_s7 + $0x6d8] sm:$0xff] %v1435_v27 }
  0x80   : > { %1438 = vst [vmem:[%s6490_s7 + $0x6e0] sm:$0xff] %v1437_v28  ;;  %1440 = vst [vmem:[%s6490_s7 + $0x6e8] sm:$0xff] %v1439_v29  ;;  %v1441_v30 = vld [vmem:[%s6482_s6 + $0xde0] sm:$0xff]  ;;  %v1443_v31 = vld [vmem:[%s6482_s6 + $0xdf0] sm:$0xff] }
  0x81   : > { %v1445_v32 = vld [vmem:[%s6482_s6 + $0xe00] sm:$0xff]  ;;  %1442 = vst [vmem:[%s6490_s7 + $0x6f0] sm:$0xff] %v1441_v30  ;;  %1444 = vst [vmem:[%s6490_s7 + $0x6f8] sm:$0xff] %v1443_v31  ;;  %v1447_v33 = vld [vmem:[%s6482_s6 + $0xe10] sm:$0xff] }
  0x82   : > { %1446 = vst [vmem:[%s6490_s7 + $0x700] sm:$0xff] %v1445_v32  ;;  %v1449_v34 = vld [vmem:[%s6482_s6 + $0xe20] sm:$0xff]  ;;  %v1451_v35 = vld [vmem:[%s6482_s6 + $0xe30] sm:$0xff]  ;;  %1448 = vst [vmem:[%s6490_s7 + $0x708] sm:$0xff] %v1447_v33 }
  0x83   : > { %1450 = vst [vmem:[%s6490_s7 + $0x710] sm:$0xff] %v1449_v34  ;;  %1452 = vst [vmem:[%s6490_s7 + $0x718] sm:$0xff] %v1451_v35  ;;  %v1453_v36 = vld [vmem:[%s6482_s6 + $0xe40] sm:$0xff]  ;;  %v1455_v37 = vld [vmem:[%s6482_s6 + $0xe50] sm:$0xff] }
  0x84   : > { %v1457_v38 = vld [vmem:[%s6482_s6 + $0xe60] sm:$0xff]  ;;  %1454 = vst [vmem:[%s6490_s7 + $0x720] sm:$0xff] %v1453_v36  ;;  %1456 = vst [vmem:[%s6490_s7 + $0x728] sm:$0xff] %v1455_v37  ;;  %v1459_v39 = vld [vmem:[%s6482_s6 + $0xe70] sm:$0xff] }
  0x85   : > { %1458 = vst [vmem:[%s6490_s7 + $0x730] sm:$0xff] %v1457_v38  ;;  %v1461_v40 = vld [vmem:[%s6482_s6 + $0xe80] sm:$0xff]  ;;  %v1463_v41 = vld [vmem:[%s6482_s6 + $0xe90] sm:$0xff]  ;;  %1460 = vst [vmem:[%s6490_s7 + $0x738] sm:$0xff] %v1459_v39 }
  0x86   : > { %1462 = vst [vmem:[%s6490_s7 + $0x740] sm:$0xff] %v1461_v40  ;;  %1464 = vst [vmem:[%s6490_s7 + $0x748] sm:$0xff] %v1463_v41  ;;  %v1465_v42 = vld [vmem:[%s6482_s6 + $0xea0] sm:$0xff]  ;;  %v1467_v43 = vld [vmem:[%s6482_s6 + $0xeb0] sm:$0xff] }
  0x87   : > { %v1469_v44 = vld [vmem:[%s6482_s6 + $0xec0] sm:$0xff]  ;;  %1466 = vst [vmem:[%s6490_s7 + $0x750] sm:$0xff] %v1465_v42  ;;  %1468 = vst [vmem:[%s6490_s7 + $0x758] sm:$0xff] %v1467_v43  ;;  %v1471_v45 = vld [vmem:[%s6482_s6 + $0xed0] sm:$0xff] }
  0x88   : > { %1470 = vst [vmem:[%s6490_s7 + $0x760] sm:$0xff] %v1469_v44  ;;  %v1473_v46 = vld [vmem:[%s6482_s6 + $0xee0] sm:$0xff]  ;;  %v1475_v47 = vld [vmem:[%s6482_s6 + $0xef0] sm:$0xff]  ;;  %1472 = vst [vmem:[%s6490_s7 + $0x768] sm:$0xff] %v1471_v45 }
  0x89   : > { %1474 = vst [vmem:[%s6490_s7 + $0x770] sm:$0xff] %v1473_v46  ;;  %1476 = vst [vmem:[%s6490_s7 + $0x778] sm:$0xff] %v1475_v47  ;;  %v1477_v48 = vld [vmem:[%s6482_s6 + $0xf00] sm:$0xff]  ;;  %v1479_v49 = vld [vmem:[%s6482_s6 + $0xf10] sm:$0xff] }
  0x8a   : > { %v1481_v50 = vld [vmem:[%s6482_s6 + $0xf20] sm:$0xff]  ;;  %1478 = vst [vmem:[%s6490_s7 + $0x780] sm:$0xff] %v1477_v48  ;;  %1480 = vst [vmem:[%s6490_s7 + $0x788] sm:$0xff] %v1479_v49  ;;  %v1483_v51 = vld [vmem:[%s6482_s6 + $0xf30] sm:$0xff] }
  0x8b   : > { %1482 = vst [vmem:[%s6490_s7 + $0x790] sm:$0xff] %v1481_v50  ;;  %v1485_v52 = vld [vmem:[%s6482_s6 + $0xf40] sm:$0xff]  ;;  %v1487_v53 = vld [vmem:[%s6482_s6 + $0xf50] sm:$0xff]  ;;  %1484 = vst [vmem:[%s6490_s7 + $0x798] sm:$0xff] %v1483_v51 }
  0x8c   : > { %1486 = vst [vmem:[%s6490_s7 + $0x7a0] sm:$0xff] %v1485_v52  ;;  %1488 = vst [vmem:[%s6490_s7 + $0x7a8] sm:$0xff] %v1487_v53  ;;  %v1489_v54 = vld [vmem:[%s6482_s6 + $0xf60] sm:$0xff]  ;;  %v1491_v55 = vld [vmem:[%s6482_s6 + $0xf70] sm:$0xff] }
  0x8d   : > { %v1493_v56 = vld [vmem:[%s6482_s6 + $0xf80] sm:$0xff]  ;;  %1490 = vst [vmem:[%s6490_s7 + $0x7b0] sm:$0xff] %v1489_v54  ;;  %1492 = vst [vmem:[%s6490_s7 + $0x7b8] sm:$0xff] %v1491_v55  ;;  %v1495_v57 = vld [vmem:[%s6482_s6 + $0xf90] sm:$0xff] }
  0x8e   : > { %1494 = vst [vmem:[%s6490_s7 + $0x7c0] sm:$0xff] %v1493_v56  ;;  %v1497_v58 = vld [vmem:[%s6482_s6 + $0xfa0] sm:$0xff]  ;;  %v1499_v59 = vld [vmem:[%s6482_s6 + $0xfb0] sm:$0xff]  ;;  %1496 = vst [vmem:[%s6490_s7 + $0x7c8] sm:$0xff] %v1495_v57 }
  0x8f   : > { %1498 = vst [vmem:[%s6490_s7 + $0x7d0] sm:$0xff] %v1497_v58  ;;  %1500 = vst [vmem:[%s6490_s7 + $0x7d8] sm:$0xff] %v1499_v59  ;;  %v1501_v60 = vld [vmem:[%s6482_s6 + $0xfc0] sm:$0xff]  ;;  %v1503_v61 = vld [vmem:[%s6482_s6 + $0xfd0] sm:$0xff] }
  0x90   : > { %v1505_v62 = vld [vmem:[%s6482_s6 + $0xfe0] sm:$0xff]  ;;  %1502 = vst [vmem:[%s6490_s7 + $0x7e0] sm:$0xff] %v1501_v60  ;;  %1504 = vst [vmem:[%s6490_s7 + $0x7e8] sm:$0xff] %v1503_v61  ;;  %v1507_v63 = vld [vmem:[%s6482_s6 + $0xff0] sm:$0xff] }
  0x91   : > { %1506 = vst [vmem:[%s6490_s7 + $0x7f0] sm:$0xff] %v1505_v62  ;;  %v1509_v0 = vld [vmem:[%s6482_s6 + $0x1000] sm:$0xff]  ;;  %v1511_v1 = vld [vmem:[%s6482_s6 + $0x1010] sm:$0xff]  ;;  %1508 = vst [vmem:[%s6490_s7 + $0x7f8] sm:$0xff] %v1507_v63 }
  0x92   : > { %1510 = vst [vmem:[%s6490_s7 + $0x800] sm:$0xff] %v1509_v0  ;;  %1512 = vst [vmem:[%s6490_s7 + $0x808] sm:$0xff] %v1511_v1  ;;  %v1513_v2 = vld [vmem:[%s6482_s6 + $0x1020] sm:$0xff]  ;;  %v1515_v3 = vld [vmem:[%s6482_s6 + $0x1030] sm:$0xff] }
  0x93   : > { %v1517_v4 = vld [vmem:[%s6482_s6 + $0x1040] sm:$0xff]  ;;  %1514 = vst [vmem:[%s6490_s7 + $0x810] sm:$0xff] %v1513_v2  ;;  %1516 = vst [vmem:[%s6490_s7 + $0x818] sm:$0xff] %v1515_v3  ;;  %v1519_v5 = vld [vmem:[%s6482_s6 + $0x1050] sm:$0xff] }
  0x94   : > { %1518 = vst [vmem:[%s6490_s7 + $0x820] sm:$0xff] %v1517_v4  ;;  %v1521_v6 = vld [vmem:[%s6482_s6 + $0x1060] sm:$0xff]  ;;  %v1523_v7 = vld [vmem:[%s6482_s6 + $0x1070] sm:$0xff]  ;;  %1520 = vst [vmem:[%s6490_s7 + $0x828] sm:$0xff] %v1519_v5 }
  0x95   : > { %1522 = vst [vmem:[%s6490_s7 + $0x830] sm:$0xff] %v1521_v6  ;;  %1524 = vst [vmem:[%s6490_s7 + $0x838] sm:$0xff] %v1523_v7  ;;  %v1525_v8 = vld [vmem:[%s6482_s6 + $0x1080] sm:$0xff]  ;;  %v1527_v9 = vld [vmem:[%s6482_s6 + $0x1090] sm:$0xff] }
  0x96   : > { %v1529_v10 = vld [vmem:[%s6482_s6 + $0x10a0] sm:$0xff]  ;;  %1526 = vst [vmem:[%s6490_s7 + $0x840] sm:$0xff] %v1525_v8  ;;  %1528 = vst [vmem:[%s6490_s7 + $0x848] sm:$0xff] %v1527_v9  ;;  %v1531_v11 = vld [vmem:[%s6482_s6 + $0x10b0] sm:$0xff] }
  0x97   : > { %1530 = vst [vmem:[%s6490_s7 + $0x850] sm:$0xff] %v1529_v10  ;;  %v1533_v12 = vld [vmem:[%s6482_s6 + $0x10c0] sm:$0xff]  ;;  %v1535_v13 = vld [vmem:[%s6482_s6 + $0x10d0] sm:$0xff]  ;;  %1532 = vst [vmem:[%s6490_s7 + $0x858] sm:$0xff] %v1531_v11 }
  0x98   : > { %1534 = vst [vmem:[%s6490_s7 + $0x860] sm:$0xff] %v1533_v12  ;;  %1536 = vst [vmem:[%s6490_s7 + $0x868] sm:$0xff] %v1535_v13  ;;  %v1537_v14 = vld [vmem:[%s6482_s6 + $0x10e0] sm:$0xff]  ;;  %v1539_v15 = vld [vmem:[%s6482_s6 + $0x10f0] sm:$0xff] }
  0x99   : > { %v1541_v16 = vld [vmem:[%s6482_s6 + $0x1100] sm:$0xff]  ;;  %1538 = vst [vmem:[%s6490_s7 + $0x870] sm:$0xff] %v1537_v14  ;;  %1540 = vst [vmem:[%s6490_s7 + $0x878] sm:$0xff] %v1539_v15  ;;  %v1543_v17 = vld [vmem:[%s6482_s6 + $0x1110] sm:$0xff] }
  0x9a   : > { %1542 = vst [vmem:[%s6490_s7 + $0x880] sm:$0xff] %v1541_v16  ;;  %v1545_v18 = vld [vmem:[%s6482_s6 + $0x1120] sm:$0xff]  ;;  %v1547_v19 = vld [vmem:[%s6482_s6 + $0x1130] sm:$0xff]  ;;  %1544 = vst [vmem:[%s6490_s7 + $0x888] sm:$0xff] %v1543_v17 }
  0x9b   : > { %1546 = vst [vmem:[%s6490_s7 + $0x890] sm:$0xff] %v1545_v18  ;;  %1548 = vst [vmem:[%s6490_s7 + $0x898] sm:$0xff] %v1547_v19  ;;  %v1549_v20 = vld [vmem:[%s6482_s6 + $0x1140] sm:$0xff]  ;;  %v1551_v21 = vld [vmem:[%s6482_s6 + $0x1150] sm:$0xff] }
  0x9c   : > { %v1553_v22 = vld [vmem:[%s6482_s6 + $0x1160] sm:$0xff]  ;;  %1550 = vst [vmem:[%s6490_s7 + $0x8a0] sm:$0xff] %v1549_v20  ;;  %1552 = vst [vmem:[%s6490_s7 + $0x8a8] sm:$0xff] %v1551_v21  ;;  %v1555_v23 = vld [vmem:[%s6482_s6 + $0x1170] sm:$0xff] }
  0x9d   : > { %1554 = vst [vmem:[%s6490_s7 + $0x8b0] sm:$0xff] %v1553_v22  ;;  %v1557_v24 = vld [vmem:[%s6482_s6 + $0x1180] sm:$0xff]  ;;  %v1559_v25 = vld [vmem:[%s6482_s6 + $0x1190] sm:$0xff]  ;;  %1556 = vst [vmem:[%s6490_s7 + $0x8b8] sm:$0xff] %v1555_v23 }
  0x9e   : > { %1558 = vst [vmem:[%s6490_s7 + $0x8c0] sm:$0xff] %v1557_v24  ;;  %1560 = vst [vmem:[%s6490_s7 + $0x8c8] sm:$0xff] %v1559_v25  ;;  %v1561_v26 = vld [vmem:[%s6482_s6 + $0x11a0] sm:$0xff]  ;;  %v1563_v27 = vld [vmem:[%s6482_s6 + $0x11b0] sm:$0xff] }
  0x9f   : > { %v1565_v28 = vld [vmem:[%s6482_s6 + $0x11c0] sm:$0xff]  ;;  %1562 = vst [vmem:[%s6490_s7 + $0x8d0] sm:$0xff] %v1561_v26  ;;  %1564 = vst [vmem:[%s6490_s7 + $0x8d8] sm:$0xff] %v1563_v27  ;;  %v1567_v29 = vld [vmem:[%s6482_s6 + $0x11d0] sm:$0xff] }
  0xa0   : > { %1566 = vst [vmem:[%s6490_s7 + $0x8e0] sm:$0xff] %v1565_v28  ;;  %v1569_v30 = vld [vmem:[%s6482_s6 + $0x11e0] sm:$0xff]  ;;  %v1571_v31 = vld [vmem:[%s6482_s6 + $0x11f0] sm:$0xff]  ;;  %1568 = vst [vmem:[%s6490_s7 + $0x8e8] sm:$0xff] %v1567_v29 }
  0xa1   : > { %1570 = vst [vmem:[%s6490_s7 + $0x8f0] sm:$0xff] %v1569_v30  ;;  %1572 = vst [vmem:[%s6490_s7 + $0x8f8] sm:$0xff] %v1571_v31  ;;  %v1573_v32 = vld [vmem:[%s6482_s6 + $0x1200] sm:$0xff]  ;;  %v1575_v33 = vld [vmem:[%s6482_s6 + $0x1210] sm:$0xff] }
  0xa2   : > { %v1577_v34 = vld [vmem:[%s6482_s6 + $0x1220] sm:$0xff]  ;;  %1574 = vst [vmem:[%s6490_s7 + $0x900] sm:$0xff] %v1573_v32  ;;  %1576 = vst [vmem:[%s6490_s7 + $0x908] sm:$0xff] %v1575_v33  ;;  %v1579_v35 = vld [vmem:[%s6482_s6 + $0x1230] sm:$0xff] }
  0xa3   : > { %1578 = vst [vmem:[%s6490_s7 + $0x910] sm:$0xff] %v1577_v34  ;;  %v1581_v36 = vld [vmem:[%s6482_s6 + $0x1240] sm:$0xff]  ;;  %v1583_v37 = vld [vmem:[%s6482_s6 + $0x1250] sm:$0xff]  ;;  %1580 = vst [vmem:[%s6490_s7 + $0x918] sm:$0xff] %v1579_v35 }
  0xa4   : > { %1582 = vst [vmem:[%s6490_s7 + $0x920] sm:$0xff] %v1581_v36  ;;  %1584 = vst [vmem:[%s6490_s7 + $0x928] sm:$0xff] %v1583_v37  ;;  %v1585_v38 = vld [vmem:[%s6482_s6 + $0x1260] sm:$0xff]  ;;  %v1587_v39 = vld [vmem:[%s6482_s6 + $0x1270] sm:$0xff] }
  0xa5   : > { %v1589_v40 = vld [vmem:[%s6482_s6 + $0x1280] sm:$0xff]  ;;  %1586 = vst [vmem:[%s6490_s7 + $0x930] sm:$0xff] %v1585_v38  ;;  %1588 = vst [vmem:[%s6490_s7 + $0x938] sm:$0xff] %v1587_v39  ;;  %v1591_v41 = vld [vmem:[%s6482_s6 + $0x1290] sm:$0xff] }
  0xa6   : > { %1590 = vst [vmem:[%s6490_s7 + $0x940] sm:$0xff] %v1589_v40  ;;  %v1593_v42 = vld [vmem:[%s6482_s6 + $0x12a0] sm:$0xff]  ;;  %v1595_v43 = vld [vmem:[%s6482_s6 + $0x12b0] sm:$0xff]  ;;  %1592 = vst [vmem:[%s6490_s7 + $0x948] sm:$0xff] %v1591_v41 }
  0xa7   : > { %1594 = vst [vmem:[%s6490_s7 + $0x950] sm:$0xff] %v1593_v42  ;;  %1596 = vst [vmem:[%s6490_s7 + $0x958] sm:$0xff] %v1595_v43  ;;  %v1597_v44 = vld [vmem:[%s6482_s6 + $0x12c0] sm:$0xff]  ;;  %v1599_v45 = vld [vmem:[%s6482_s6 + $0x12d0] sm:$0xff] }
  0xa8   : > { %v1601_v46 = vld [vmem:[%s6482_s6 + $0x12e0] sm:$0xff]  ;;  %1598 = vst [vmem:[%s6490_s7 + $0x960] sm:$0xff] %v1597_v44  ;;  %1600 = vst [vmem:[%s6490_s7 + $0x968] sm:$0xff] %v1599_v45  ;;  %v1603_v47 = vld [vmem:[%s6482_s6 + $0x12f0] sm:$0xff] }
  0xa9   : > { %1602 = vst [vmem:[%s6490_s7 + $0x970] sm:$0xff] %v1601_v46  ;;  %v1605_v48 = vld [vmem:[%s6482_s6 + $0x1300] sm:$0xff]  ;;  %v1607_v49 = vld [vmem:[%s6482_s6 + $0x1310] sm:$0xff]  ;;  %1604 = vst [vmem:[%s6490_s7 + $0x978] sm:$0xff] %v1603_v47 }
  0xaa   : > { %1606 = vst [vmem:[%s6490_s7 + $0x980] sm:$0xff] %v1605_v48  ;;  %1608 = vst [vmem:[%s6490_s7 + $0x988] sm:$0xff] %v1607_v49  ;;  %v1609_v50 = vld [vmem:[%s6482_s6 + $0x1320] sm:$0xff]  ;;  %v1611_v51 = vld [vmem:[%s6482_s6 + $0x1330] sm:$0xff] }
  0xab   : > { %v1613_v52 = vld [vmem:[%s6482_s6 + $0x1340] sm:$0xff]  ;;  %1610 = vst [vmem:[%s6490_s7 + $0x990] sm:$0xff] %v1609_v50  ;;  %1612 = vst [vmem:[%s6490_s7 + $0x998] sm:$0xff] %v1611_v51  ;;  %v1615_v53 = vld [vmem:[%s6482_s6 + $0x1350] sm:$0xff] }
  0xac   : > { %1614 = vst [vmem:[%s6490_s7 + $0x9a0] sm:$0xff] %v1613_v52  ;;  %v1617_v54 = vld [vmem:[%s6482_s6 + $0x1360] sm:$0xff]  ;;  %v1619_v55 = vld [vmem:[%s6482_s6 + $0x1370] sm:$0xff]  ;;  %1616 = vst [vmem:[%s6490_s7 + $0x9a8] sm:$0xff] %v1615_v53 }
  0xad   : > { %1618 = vst [vmem:[%s6490_s7 + $0x9b0] sm:$0xff] %v1617_v54  ;;  %1620 = vst [vmem:[%s6490_s7 + $0x9b8] sm:$0xff] %v1619_v55  ;;  %v1621_v56 = vld [vmem:[%s6482_s6 + $0x1380] sm:$0xff]  ;;  %v1623_v57 = vld [vmem:[%s6482_s6 + $0x1390] sm:$0xff] }
  0xae   : > { %v1625_v58 = vld [vmem:[%s6482_s6 + $0x13a0] sm:$0xff]  ;;  %1622 = vst [vmem:[%s6490_s7 + $0x9c0] sm:$0xff] %v1621_v56  ;;  %1624 = vst [vmem:[%s6490_s7 + $0x9c8] sm:$0xff] %v1623_v57  ;;  %v1627_v59 = vld [vmem:[%s6482_s6 + $0x13b0] sm:$0xff] }
  0xaf   : > { %1626 = vst [vmem:[%s6490_s7 + $0x9d0] sm:$0xff] %v1625_v58  ;;  %v1629_v60 = vld [vmem:[%s6482_s6 + $0x13c0] sm:$0xff]  ;;  %v1631_v61 = vld [vmem:[%s6482_s6 + $0x13d0] sm:$0xff]  ;;  %1628 = vst [vmem:[%s6490_s7 + $0x9d8] sm:$0xff] %v1627_v59 }
  0xb0   : > { %1630 = vst [vmem:[%s6490_s7 + $0x9e0] sm:$0xff] %v1629_v60  ;;  %1632 = vst [vmem:[%s6490_s7 + $0x9e8] sm:$0xff] %v1631_v61  ;;  %v1633_v62 = vld [vmem:[%s6482_s6 + $0x13e0] sm:$0xff]  ;;  %v1635_v63 = vld [vmem:[%s6482_s6 + $0x13f0] sm:$0xff] }
  0xb1   : > { %v1637_v0 = vld [vmem:[%s6482_s6 + $0x1400] sm:$0xff]  ;;  %1634 = vst [vmem:[%s6490_s7 + $0x9f0] sm:$0xff] %v1633_v62  ;;  %1636 = vst [vmem:[%s6490_s7 + $0x9f8] sm:$0xff] %v1635_v63  ;;  %v1639_v1 = vld [vmem:[%s6482_s6 + $0x1410] sm:$0xff] }
  0xb2   : > { %1638 = vst [vmem:[%s6490_s7 + $0xa00] sm:$0xff] %v1637_v0  ;;  %v1641_v2 = vld [vmem:[%s6482_s6 + $0x1420] sm:$0xff]  ;;  %v1643_v3 = vld [vmem:[%s6482_s6 + $0x1430] sm:$0xff]  ;;  %1640 = vst [vmem:[%s6490_s7 + $0xa08] sm:$0xff] %v1639_v1 }
  0xb3   : > { %1642 = vst [vmem:[%s6490_s7 + $0xa10] sm:$0xff] %v1641_v2  ;;  %1644 = vst [vmem:[%s6490_s7 + $0xa18] sm:$0xff] %v1643_v3  ;;  %v1645_v4 = vld [vmem:[%s6482_s6 + $0x1440] sm:$0xff]  ;;  %v1647_v5 = vld [vmem:[%s6482_s6 + $0x1450] sm:$0xff] }
  0xb4   : > { %v1649_v6 = vld [vmem:[%s6482_s6 + $0x1460] sm:$0xff]  ;;  %1646 = vst [vmem:[%s6490_s7 + $0xa20] sm:$0xff] %v1645_v4  ;;  %1648 = vst [vmem:[%s6490_s7 + $0xa28] sm:$0xff] %v1647_v5  ;;  %v1651_v7 = vld [vmem:[%s6482_s6 + $0x1470] sm:$0xff] }
  0xb5   : > { %1650 = vst [vmem:[%s6490_s7 + $0xa30] sm:$0xff] %v1649_v6  ;;  %v1653_v8 = vld [vmem:[%s6482_s6 + $0x1480] sm:$0xff]  ;;  %v1655_v9 = vld [vmem:[%s6482_s6 + $0x1490] sm:$0xff]  ;;  %1652 = vst [vmem:[%s6490_s7 + $0xa38] sm:$0xff] %v1651_v7 }
  0xb6   : > { %1654 = vst [vmem:[%s6490_s7 + $0xa40] sm:$0xff] %v1653_v8  ;;  %1656 = vst [vmem:[%s6490_s7 + $0xa48] sm:$0xff] %v1655_v9  ;;  %v1657_v10 = vld [vmem:[%s6482_s6 + $0x14a0] sm:$0xff]  ;;  %v1659_v11 = vld [vmem:[%s6482_s6 + $0x14b0] sm:$0xff] }
  0xb7   : > { %v1661_v12 = vld [vmem:[%s6482_s6 + $0x14c0] sm:$0xff]  ;;  %1658 = vst [vmem:[%s6490_s7 + $0xa50] sm:$0xff] %v1657_v10  ;;  %1660 = vst [vmem:[%s6490_s7 + $0xa58] sm:$0xff] %v1659_v11  ;;  %v1663_v13 = vld [vmem:[%s6482_s6 + $0x14d0] sm:$0xff] }
  0xb8   : > { %1662 = vst [vmem:[%s6490_s7 + $0xa60] sm:$0xff] %v1661_v12  ;;  %v1665_v14 = vld [vmem:[%s6482_s6 + $0x14e0] sm:$0xff]  ;;  %v1667_v15 = vld [vmem:[%s6482_s6 + $0x14f0] sm:$0xff]  ;;  %1664 = vst [vmem:[%s6490_s7 + $0xa68] sm:$0xff] %v1663_v13 }
  0xb9   : > { %1666 = vst [vmem:[%s6490_s7 + $0xa70] sm:$0xff] %v1665_v14  ;;  %1668 = vst [vmem:[%s6490_s7 + $0xa78] sm:$0xff] %v1667_v15  ;;  %v1669_v16 = vld [vmem:[%s6482_s6 + $0x1500] sm:$0xff]  ;;  %v1671_v17 = vld [vmem:[%s6482_s6 + $0x1510] sm:$0xff] }
  0xba   : > { %v1673_v18 = vld [vmem:[%s6482_s6 + $0x1520] sm:$0xff]  ;;  %1670 = vst [vmem:[%s6490_s7 + $0xa80] sm:$0xff] %v1669_v16  ;;  %1672 = vst [vmem:[%s6490_s7 + $0xa88] sm:$0xff] %v1671_v17  ;;  %v1675_v19 = vld [vmem:[%s6482_s6 + $0x1530] sm:$0xff] }
  0xbb   : > { %1674 = vst [vmem:[%s6490_s7 + $0xa90] sm:$0xff] %v1673_v18  ;;  %v1677_v20 = vld [vmem:[%s6482_s6 + $0x1540] sm:$0xff]  ;;  %v1679_v21 = vld [vmem:[%s6482_s6 + $0x1550] sm:$0xff]  ;;  %1676 = vst [vmem:[%s6490_s7 + $0xa98] sm:$0xff] %v1675_v19 }
  0xbc   : > { %1678 = vst [vmem:[%s6490_s7 + $0xaa0] sm:$0xff] %v1677_v20  ;;  %1680 = vst [vmem:[%s6490_s7 + $0xaa8] sm:$0xff] %v1679_v21  ;;  %v1681_v22 = vld [vmem:[%s6482_s6 + $0x1560] sm:$0xff]  ;;  %v1683_v23 = vld [vmem:[%s6482_s6 + $0x1570] sm:$0xff] }
  0xbd   : > { %v1685_v24 = vld [vmem:[%s6482_s6 + $0x1580] sm:$0xff]  ;;  %1682 = vst [vmem:[%s6490_s7 + $0xab0] sm:$0xff] %v1681_v22  ;;  %1684 = vst [vmem:[%s6490_s7 + $0xab8] sm:$0xff] %v1683_v23  ;;  %v1687_v25 = vld [vmem:[%s6482_s6 + $0x1590] sm:$0xff] }
  0xbe   : > { %1686 = vst [vmem:[%s6490_s7 + $0xac0] sm:$0xff] %v1685_v24  ;;  %v1689_v26 = vld [vmem:[%s6482_s6 + $0x15a0] sm:$0xff]  ;;  %v1691_v27 = vld [vmem:[%s6482_s6 + $0x15b0] sm:$0xff]  ;;  %1688 = vst [vmem:[%s6490_s7 + $0xac8] sm:$0xff] %v1687_v25 }
  0xbf   : > { %1690 = vst [vmem:[%s6490_s7 + $0xad0] sm:$0xff] %v1689_v26  ;;  %1692 = vst [vmem:[%s6490_s7 + $0xad8] sm:$0xff] %v1691_v27  ;;  %v1693_v28 = vld [vmem:[%s6482_s6 + $0x15c0] sm:$0xff]  ;;  %v1695_v29 = vld [vmem:[%s6482_s6 + $0x15d0] sm:$0xff] }
  0xc0   : > { %v1697_v30 = vld [vmem:[%s6482_s6 + $0x15e0] sm:$0xff]  ;;  %1694 = vst [vmem:[%s6490_s7 + $0xae0] sm:$0xff] %v1693_v28  ;;  %1696 = vst [vmem:[%s6490_s7 + $0xae8] sm:$0xff] %v1695_v29  ;;  %v1699_v31 = vld [vmem:[%s6482_s6 + $0x15f0] sm:$0xff] }
  0xc1   : > { %1698 = vst [vmem:[%s6490_s7 + $0xaf0] sm:$0xff] %v1697_v30  ;;  %v1701_v32 = vld [vmem:[%s6482_s6 + $0x1600] sm:$0xff]  ;;  %v1703_v33 = vld [vmem:[%s6482_s6 + $0x1610] sm:$0xff]  ;;  %1700 = vst [vmem:[%s6490_s7 + $0xaf8] sm:$0xff] %v1699_v31 }
  0xc2   : > { %1702 = vst [vmem:[%s6490_s7 + $0xb00] sm:$0xff] %v1701_v32  ;;  %1704 = vst [vmem:[%s6490_s7 + $0xb08] sm:$0xff] %v1703_v33  ;;  %v1705_v34 = vld [vmem:[%s6482_s6 + $0x1620] sm:$0xff]  ;;  %v1707_v35 = vld [vmem:[%s6482_s6 + $0x1630] sm:$0xff] }
  0xc3   : > { %v1709_v36 = vld [vmem:[%s6482_s6 + $0x1640] sm:$0xff]  ;;  %1706 = vst [vmem:[%s6490_s7 + $0xb10] sm:$0xff] %v1705_v34  ;;  %1708 = vst [vmem:[%s6490_s7 + $0xb18] sm:$0xff] %v1707_v35  ;;  %v1711_v37 = vld [vmem:[%s6482_s6 + $0x1650] sm:$0xff] }
  0xc4   : > { %1710 = vst [vmem:[%s6490_s7 + $0xb20] sm:$0xff] %v1709_v36  ;;  %v1713_v38 = vld [vmem:[%s6482_s6 + $0x1660] sm:$0xff]  ;;  %v1715_v39 = vld [vmem:[%s6482_s6 + $0x1670] sm:$0xff]  ;;  %1712 = vst [vmem:[%s6490_s7 + $0xb28] sm:$0xff] %v1711_v37 }
  0xc5   : > { %1714 = vst [vmem:[%s6490_s7 + $0xb30] sm:$0xff] %v1713_v38  ;;  %1716 = vst [vmem:[%s6490_s7 + $0xb38] sm:$0xff] %v1715_v39  ;;  %v1717_v40 = vld [vmem:[%s6482_s6 + $0x1680] sm:$0xff]  ;;  %v1719_v41 = vld [vmem:[%s6482_s6 + $0x1690] sm:$0xff] }
  0xc6   : > { %v1721_v42 = vld [vmem:[%s6482_s6 + $0x16a0] sm:$0xff]  ;;  %1718 = vst [vmem:[%s6490_s7 + $0xb40] sm:$0xff] %v1717_v40  ;;  %1720 = vst [vmem:[%s6490_s7 + $0xb48] sm:$0xff] %v1719_v41  ;;  %v1723_v43 = vld [vmem:[%s6482_s6 + $0x16b0] sm:$0xff] }
  0xc7   : > { %1722 = vst [vmem:[%s6490_s7 + $0xb50] sm:$0xff] %v1721_v42  ;;  %v1725_v44 = vld [vmem:[%s6482_s6 + $0x16c0] sm:$0xff]  ;;  %v1727_v45 = vld [vmem:[%s6482_s6 + $0x16d0] sm:$0xff]  ;;  %1724 = vst [vmem:[%s6490_s7 + $0xb58] sm:$0xff] %v1723_v43 }
  0xc8   : > { %1726 = vst [vmem:[%s6490_s7 + $0xb60] sm:$0xff] %v1725_v44  ;;  %1728 = vst [vmem:[%s6490_s7 + $0xb68] sm:$0xff] %v1727_v45  ;;  %v1729_v46 = vld [vmem:[%s6482_s6 + $0x16e0] sm:$0xff]  ;;  %v1731_v47 = vld [vmem:[%s6482_s6 + $0x16f0] sm:$0xff] }
  0xc9   : > { %v1733_v48 = vld [vmem:[%s6482_s6 + $0x1700] sm:$0xff]  ;;  %1730 = vst [vmem:[%s6490_s7 + $0xb70] sm:$0xff] %v1729_v46  ;;  %1732 = vst [vmem:[%s6490_s7 + $0xb78] sm:$0xff] %v1731_v47  ;;  %v1735_v49 = vld [vmem:[%s6482_s6 + $0x1710] sm:$0xff] }
  0xca   : > { %1734 = vst [vmem:[%s6490_s7 + $0xb80] sm:$0xff] %v1733_v48  ;;  %v1737_v50 = vld [vmem:[%s6482_s6 + $0x1720] sm:$0xff]  ;;  %v1739_v51 = vld [vmem:[%s6482_s6 + $0x1730] sm:$0xff]  ;;  %1736 = vst [vmem:[%s6490_s7 + $0xb88] sm:$0xff] %v1735_v49 }
  0xcb   : > { %1738 = vst [vmem:[%s6490_s7 + $0xb90] sm:$0xff] %v1737_v50  ;;  %1740 = vst [vmem:[%s6490_s7 + $0xb98] sm:$0xff] %v1739_v51  ;;  %v1741_v52 = vld [vmem:[%s6482_s6 + $0x1740] sm:$0xff]  ;;  %v1743_v53 = vld [vmem:[%s6482_s6 + $0x1750] sm:$0xff] }
  0xcc   : > { %v1745_v54 = vld [vmem:[%s6482_s6 + $0x1760] sm:$0xff]  ;;  %1742 = vst [vmem:[%s6490_s7 + $0xba0] sm:$0xff] %v1741_v52  ;;  %1744 = vst [vmem:[%s6490_s7 + $0xba8] sm:$0xff] %v1743_v53  ;;  %v1747_v55 = vld [vmem:[%s6482_s6 + $0x1770] sm:$0xff] }
  0xcd   : > { %1746 = vst [vmem:[%s6490_s7 + $0xbb0] sm:$0xff] %v1745_v54  ;;  %v1749_v56 = vld [vmem:[%s6482_s6 + $0x1780] sm:$0xff]  ;;  %v1751_v57 = vld [vmem:[%s6482_s6 + $0x1790] sm:$0xff]  ;;  %1748 = vst [vmem:[%s6490_s7 + $0xbb8] sm:$0xff] %v1747_v55 }
  0xce   : > { %1750 = vst [vmem:[%s6490_s7 + $0xbc0] sm:$0xff] %v1749_v56  ;;  %1752 = vst [vmem:[%s6490_s7 + $0xbc8] sm:$0xff] %v1751_v57  ;;  %v1753_v58 = vld [vmem:[%s6482_s6 + $0x17a0] sm:$0xff]  ;;  %v1755_v59 = vld [vmem:[%s6482_s6 + $0x17b0] sm:$0xff] }
  0xcf   : > { %v1757_v60 = vld [vmem:[%s6482_s6 + $0x17c0] sm:$0xff]  ;;  %1754 = vst [vmem:[%s6490_s7 + $0xbd0] sm:$0xff] %v1753_v58  ;;  %1756 = vst [vmem:[%s6490_s7 + $0xbd8] sm:$0xff] %v1755_v59  ;;  %v1759_v61 = vld [vmem:[%s6482_s6 + $0x17d0] sm:$0xff] }
  0xd0   : > { %1758 = vst [vmem:[%s6490_s7 + $0xbe0] sm:$0xff] %v1757_v60  ;;  %v1761_v62 = vld [vmem:[%s6482_s6 + $0x17e0] sm:$0xff]  ;;  %v1763_v63 = vld [vmem:[%s6482_s6 + $0x17f0] sm:$0xff]  ;;  %1760 = vst [vmem:[%s6490_s7 + $0xbe8] sm:$0xff] %v1759_v61 }
  0xd1   : > { %1762 = vst [vmem:[%s6490_s7 + $0xbf0] sm:$0xff] %v1761_v62  ;;  %1764 = vst [vmem:[%s6490_s7 + $0xbf8] sm:$0xff] %v1763_v63  ;;  %v1765_v0 = vld [vmem:[%s6482_s6 + $0x1800] sm:$0xff]  ;;  %v1767_v1 = vld [vmem:[%s6482_s6 + $0x1810] sm:$0xff] }
  0xd2   : > { %v1769_v2 = vld [vmem:[%s6482_s6 + $0x1820] sm:$0xff]  ;;  %1766 = vst [vmem:[%s6490_s7 + $0xc00] sm:$0xff] %v1765_v0  ;;  %1768 = vst [vmem:[%s6490_s7 + $0xc08] sm:$0xff] %v1767_v1  ;;  %v1771_v3 = vld [vmem:[%s6482_s6 + $0x1830] sm:$0xff] }
  0xd3   : > { %1770 = vst [vmem:[%s6490_s7 + $0xc10] sm:$0xff] %v1769_v2  ;;  %v1773_v4 = vld [vmem:[%s6482_s6 + $0x1840] sm:$0xff]  ;;  %v1775_v5 = vld [vmem:[%s6482_s6 + $0x1850] sm:$0xff]  ;;  %1772 = vst [vmem:[%s6490_s7 + $0xc18] sm:$0xff] %v1771_v3 }
  0xd4   : > { %1774 = vst [vmem:[%s6490_s7 + $0xc20] sm:$0xff] %v1773_v4  ;;  %1776 = vst [vmem:[%s6490_s7 + $0xc28] sm:$0xff] %v1775_v5  ;;  %v1777_v6 = vld [vmem:[%s6482_s6 + $0x1860] sm:$0xff]  ;;  %v1779_v7 = vld [vmem:[%s6482_s6 + $0x1870] sm:$0xff] }
  0xd5   : > { %1778 = vst [vmem:[%s6490_s7 + $0xc30] sm:$0xff] %v1777_v6  ;;  %1780 = vst [vmem:[%s6490_s7 + $0xc38] sm:$0xff] %v1779_v7 }
  0xd6 PF: > { %p5221_p5 = scmp.ge.s32.totalorder %s6410_s20, 1  ;;  %p1802_p6 = scmp.lt.s32.totalorder %s6410_s20, 3 }
  0xd8   : > { %p1803_p7 = pnand %p5221_p5, %p1802_p6 }
  0xd9   : > { %s1809_s8 = sand.u32 (!%p1803_p7), 1, %s6402_s18   ;;  %s5222_s9 = sshll.u32 (!%p1803_p7), %s6462_s21, 1 }
  0xda   : > { %1806 = sbr.rel (%p1803_p7) target bundleno = 1109 (0x455), region = 74  ;;  %p1842_p8 = scmp.lt.s32.totalorder (!%p1803_p7), %s5222_s9, 3 }
  0xdb   : > { %s5714_s10 = smul.u32 (!%p1803_p7), 3136, %s1809_s8  ;;  %s5223_s11 = sshll.u32 (!%p1803_p7), %s6462_s21, 5 }
  0xdc   : > { %p1847_p9 = scmp.lt.s32.totalorder (!%p1803_p7), %s5223_s11, 63  ;;  %p5225_p10 = scmp.ne.s32.totalorder (!%p1803_p7), %s6462_s21, 0 }
  0xdd   : > { %s7286_s18 = scalar_lea.vmem (!%p1803_p7), [#allocation3], %s5714_s10 }
  0xe1   : > { %s7869_s9 = smov (!%p1842_p8, %s5222_s9), 3  ;;  %s7871_s11 = smov (!%p1847_p9, %s5223_s11), 63 }
  0xe2   : > { %s1844_s14 = scalar_lea.vmem %s7861_s2, %s7869_s9  ;;  %s5224_s15 = sshll.u32 %s7871_s11, 2  ;;  %vm1857_vm0 = vcmask (!%p5225_p10), 25600   ;;  %v6412_v8 = vmov (!%p5225_p10), 0.0  }
  0xe3   : > { %s7284_s20 = scalar_lea.vmem %s7862_s3, %s5224_s15  ;;  %1856 = sbr.rel (%p5225_p10) target bundleno = 234 (0xea), region = 82  ;;  %1858 = vst.msk [vmem:[#allocation2] sm:$0x3] (!%p5225_p10), %vm1857_vm0, %v6412_v8 }
  0xea PF: > { %v5749_v9 = vld [vmem:[%s7286_s18 + $0x4] ss:$8 sps:$4 sm:$0xff]   ;;  %v5753_v11 = vld [vmem:[%s7286_s18] ss:$8 sps:$4 sm:$0xff]   ;;  %v5755_v13 = vld [vmem:[%s7286_s18 + $0x14] ss:$8 sps:$4 sm:$0xff]   ;;  %v2257_v45 = vlaneseq }
  0xeb   : > { %v5751_v10 = vld [vmem:[%s7286_s18 + $0x604] ss:$8 sps:$4 sm:$0xff]   ;;  %4420 = vmatprep.subr.bf16.mxu1 %v5749_v9  ;;  %v5754_v12 = vld [vmem:[%s7286_s18 + $0x600] ss:$8 sps:$4 sm:$0xff]   ;;  %v5757_v14 = vld [vmem:[%s7286_s18 + $0x614] ss:$8 sps:$4 sm:$0xff]  }
  0xec   : > { %4666 = vmatprep.subr.bf16.mxu0 %v5751_v10  ;;  %4421 = vmatpush1.bf16.msra.mxu1 %v5753_v11  ;;  %v5759_v15 = vld [vmem:[%s7286_s18 + $0x10] ss:$8 sps:$4 sm:$0xff]   ;;  %v5761_v17 = vld [vmem:[%s7286_s18 + $0x24] ss:$8 sps:$4 sm:$0xff]   ;;  %v5765_v19 = vld [vmem:[%s7286_s18 + $0x20] ss:$8 sps:$4 sm:$0xff]  }
  0xed   : > { %4667 = vmatpush1.bf16.msra.mxu0 %v5754_v12  ;;  %4422 = vmatprep.subr.bf16.mxu1 %v5755_v13  ;;  %v5760_v16 = vld [vmem:[%s7286_s18 + $0x610] ss:$8 sps:$4 sm:$0xff]   ;;  %v5763_v18 = vld [vmem:[%s7286_s18 + $0x624] ss:$8 sps:$4 sm:$0xff]   ;;  %v5766_v20 = vld [vmem:[%s7286_s18 + $0x620] ss:$8 sps:$4 sm:$0xff]  }
  0xee   : > { %4668 = vmatprep.subr.bf16.mxu0 %v5757_v14  ;;  %v5767_v21 = vld [vmem:[%s7286_s18 + $0x34] ss:$8 sps:$4 sm:$0xff]   ;;  %v5771_v23 = vld [vmem:[%s7286_s18 + $0x30] ss:$8 sps:$4 sm:$0xff]   ;;  %v5773_v25 = vld [vmem:[%s7286_s18 + $0x44] ss:$8 sps:$4 sm:$0xff]  }
  0xef   : > { %v5769_v22 = vld [vmem:[%s7286_s18 + $0x634] ss:$8 sps:$4 sm:$0xff]   ;;  %v5772_v24 = vld [vmem:[%s7286_s18 + $0x630] ss:$8 sps:$4 sm:$0xff]   ;;  %v5775_v26 = vld [vmem:[%s7286_s18 + $0x644] ss:$8 sps:$4 sm:$0xff]  }
  0xf0   : > { %4423 = vmatpush1.bf16.msra.mxu1 %v5759_v15  ;;  %v5777_v27 = vld [vmem:[%s7286_s18 + $0x40] ss:$8 sps:$4 sm:$0xff]   ;;  %v5779_v29 = vld [vmem:[%s7286_s18 + $0x54] ss:$8 sps:$4 sm:$0xff]   ;;  %v5783_v31 = vld [vmem:[%s7286_s18 + $0x50] ss:$8 sps:$4 sm:$0xff]  }
  0xf1   : > { %4669 = vmatpush1.bf16.msra.mxu0 %v5760_v16  ;;  %4424 = vmatprep.subr.bf16.mxu1 %v5761_v17  ;;  %v5778_v28 = vld [vmem:[%s7286_s18 + $0x640] ss:$8 sps:$4 sm:$0xff]   ;;  %v5781_v30 = vld [vmem:[%s7286_s18 + $0x654] ss:$8 sps:$4 sm:$0xff]   ;;  %v5784_v32 = vld [vmem:[%s7286_s18 + $0x650] ss:$8 sps:$4 sm:$0xff]  }
  0xf2   : > { %4670 = vmatprep.subr.bf16.mxu0 %v5763_v18  ;;  %v5785_v33 = vld [vmem:[%s7286_s18 + $0x64] ss:$8 sps:$4 sm:$0xff]   ;;  %v5789_v35 = vld [vmem:[%s7286_s18 + $0x60] ss:$8 sps:$4 sm:$0xff]   ;;  %v5791_v37 = vld [vmem:[%s7286_s18 + $0x74] ss:$8 sps:$4 sm:$0xff]  }
  0xf3   : > { %v5787_v34 = vld [vmem:[%s7286_s18 + $0x664] ss:$8 sps:$4 sm:$0xff]   ;;  %v5790_v36 = vld [vmem:[%s7286_s18 + $0x660] ss:$8 sps:$4 sm:$0xff]   ;;  %v5793_v38 = vld [vmem:[%s7286_s18 + $0x674] ss:$8 sps:$4 sm:$0xff]  }
  0xf4   : > { %4425 = vmatpush1.bf16.msra.mxu1 %v5765_v19  ;;  %v5795_v39 = vld [vmem:[%s7286_s18 + $0x70] ss:$8 sps:$4 sm:$0xff]   ;;  %v5797_v41 = vld [vmem:[%s7286_s18 + $0x84] ss:$8 sps:$4 sm:$0xff]   ;;  %v5801_v43 = vld [vmem:[%s7286_s18 + $0x80] ss:$8 sps:$4 sm:$0xff]  }
  0xf5   : > { %4671 = vmatpush1.bf16.msra.mxu0 %v5766_v20  ;;  %4426 = vmatprep.subr.bf16.mxu1 %v5767_v21  ;;  %v5796_v40 = vld [vmem:[%s7286_s18 + $0x670] ss:$8 sps:$4 sm:$0xff]   ;;  %v5799_v42 = vld [vmem:[%s7286_s18 + $0x684] ss:$8 sps:$4 sm:$0xff]   ;;  %v5802_v44 = vld [vmem:[%s7286_s18 + $0x680] ss:$8 sps:$4 sm:$0xff]  }
  0xf6   : > { %4672 = vmatprep.subr.bf16.mxu0 %v5769_v22  ;;  %v6413_v46 = vmov 1966171168   ;;  %v5803_v48 = vld [vmem:[%s7286_s18 + $0x94] ss:$8 sps:$4 sm:$0xff]   ;;  %v5807_v50 = vld [vmem:[%s7286_s18 + $0x90] ss:$8 sps:$4 sm:$0xff]  }
  0xf7   : > { %v2273_v47 = vunpack.c.l.s4 %v6413_v46  ;;  %v5805_v49 = vld [vmem:[%s7286_s18 + $0x694] ss:$8 sps:$4 sm:$0xff]   ;;  %v7328_v51 = vshrl.u32 %v2257_v45, 7  ;;  %v5808_v53 = vld [vmem:[%s7286_s18 + $0x690] ss:$8 sps:$4 sm:$0xff]   ;;  %v1860_v1 = vld [vmem:[%s7859_s0 + $0x8] sm:$0xff] }
  0xf8   : > { %4427 = vmatpush1.bf16.msra.mxu1 %v5771_v23  ;;  %v5809_v54 = vld [vmem:[%s7286_s18 + $0xa4] ss:$8 sps:$4 sm:$0xff]   ;;  %v5813_v56 = vld [vmem:[%s7286_s18 + $0xa0] ss:$8 sps:$4 sm:$0xff]   ;;  %v5815_v59 = vld [vmem:[%s7286_s18 + $0xb4] ss:$8 sps:$4 sm:$0xff]   ;;  %v2320_v5 = vcombine.high %v1860_v1, %v1860_v1 }
  0xf9   : > { %4673 = vmatpush1.bf16.msra.mxu0 %v5772_v24  ;;  %4428 = vmatprep.subr.bf16.mxu1 %v5773_v25  ;;  %v2274_v52 = vunpack.c.0.s8 %v2273_v47  ;;  %v5811_v55 = vld [vmem:[%s7286_s18 + $0x6a4] ss:$8 sps:$4 sm:$0xff]   ;;  %v5814_v57 = vld [vmem:[%s7286_s18 + $0x6a0] ss:$8 sps:$4 sm:$0xff]   ;;  %v5817_v60 = vld [vmem:[%s7286_s18 + $0x6b4] ss:$8 sps:$4 sm:$0xff]  }
  0xfa   : > { %4674 = vmatprep.subr.bf16.mxu0 %v5775_v26  ;;  %v7343_v61 = vld [vmem:[%s7859_s0] sm:$0xff]  ;;  %v5819_v62 = vld [vmem:[%s7286_s18 + $0xb0] ss:$8 sps:$4 sm:$0xff]   ;;  %vm4416_vm1 = vcmask 523264   ;;  %vm5127_vm2 = vcmask 25600   ;;  %p5636_p11 = scmp.ne.s32.totalorder %s6462_s21, 1 }
  0xfb   : > { %v7336_v58 = vsub.s32 %v2274_v52, %v7328_v51  ;;  %v5820_v0 = vld [vmem:[%s7286_s18 + $0x6b0] ss:$8 sps:$4 sm:$0xff]   ;;  %v5821_v2 = vld [vmem:[%s7286_s18 + $0xc4] ss:$8 sps:$4 sm:$0xff]   ;;  %v5825_v8 = vld [vmem:[%s7286_s18 + $0xc0] ss:$8 sps:$4 sm:$0xff]  }
  0xfc   : > { %4429 = vmatpush1.bf16.msra.mxu1 %v5777_v27  ;;  %v5823_v3 = vld [vmem:[%s7286_s18 + $0x6c4] ss:$8 sps:$4 sm:$0xff]   ;;  %v5826_v9 = vld [vmem:[%s7286_s18 + $0x6c0] ss:$8 sps:$4 sm:$0xff]   ;;  %v5827_v10 = vld [vmem:[%s7286_s18 + $0xd4] ss:$8 sps:$4 sm:$0xff]  }
  0xfd   : > { %4675 = vmatpush1.bf16.msra.mxu0 %v5778_v28  ;;  %4430 = vmatprep.subr.bf16.mxu1 %v5779_v29  ;;  %v2278_v63 = vrot.slane %v7343_v61, %v7336_v58  ;;  %v2334_v7 = vrot.slane %v2320_v5, %v7336_v58  ;;  %v5829_v11 = vld [vmem:[%s7286_s18 + $0x6d4] ss:$8 sps:$4 sm:$0xff]   ;;  %v5831_v14 = vld [vmem:[%s7286_s18 + $0xd0] ss:$8 sps:$4 sm:$0xff]   ;;  %v5833_v16 = vld [vmem:[%s7286_s18 + $0xe4] ss:$8 sps:$4 sm:$0xff]  }
  0xfe   : > { %4676 = vmatprep.subr.bf16.mxu0 %v5781_v30  ;;  %v5832_v15 = vld [vmem:[%s7286_s18 + $0x6d0] ss:$8 sps:$4 sm:$0xff]   ;;  %v5835_v17 = vld [vmem:[%s7286_s18 + $0x6e4] ss:$8 sps:$4 sm:$0xff]   ;;  %v5837_v18 = vld [vmem:[%s7286_s18 + $0xe0] ss:$8 sps:$4 sm:$0xff]  }
  0xff   : > { %v2286_v4 = vcombine.high %v2278_v63, %v2278_v63  ;;  %v2336_v12 = vcombine.high %v2334_v7, %v2334_v7  ;;  %v5838_v19 = vld [vmem:[%s7286_s18 + $0x6e0] ss:$8 sps:$4 sm:$0xff]   ;;  %v5839_v20 = vld [vmem:[%s7286_s18 + $0xf4] ss:$8 sps:$4 sm:$0xff]   ;;  %v5843_v22 = vld [vmem:[%s7286_s18 + $0xf0] ss:$8 sps:$4 sm:$0xff]   ;;  %v7374_v26 = vrot.slane %v2278_v63, %v7336_v58  ;;  %v7377_v27 = vrot.slane %v2334_v7, %v7336_v58 }
 0x100   : > { %4431 = vmatpush1.bf16.msra.mxu1 %v5783_v31  ;;  %v5841_v21 = vld [vmem:[%s7286_s18 + $0x6f4] ss:$8 sps:$4 sm:$0xff]   ;;  %v5844_v23 = vld [vmem:[%s7286_s18 + $0x6f0] ss:$8 sps:$4 sm:$0xff]   ;;  %v5848_v24 = vld [vmem:[%s7286_s18 + $0x104] ss:$8 sps:$4 sm:$0xff]  }
 0x101   : > { %4677 = vmatpush1.bf16.msra.mxu0 %v5784_v32  ;;  %4432 = vmatprep.subr.bf16.mxu1 %v5785_v33  ;;  %v2308_v6 = vrot.slane %v2286_v4, %v7336_v58  ;;  %v2364_v13 = vrot.slane %v2336_v12, %v7336_v58  ;;  %v5852_v25 = vld [vmem:[%s7286_s18 + $0x704] ss:$8 sps:$4 sm:$0xff]   ;;  %v5846_v28 = vld [vmem:[%s7286_s18 + $0x100] ss:$8 sps:$4 sm:$0xff]   ;;  %v5855_v30 = vld [vmem:[%s7286_s18 + $0x114] ss:$8 sps:$4 sm:$0xff]  }
 0x102   : > { %4678 = vmatprep.subr.bf16.mxu0 %v5787_v34  ;;  %v5850_v29 = vld [vmem:[%s7286_s18 + $0x700] ss:$8 sps:$4 sm:$0xff]   ;;  %v5858_v31 = vld [vmem:[%s7286_s18 + $0x714] ss:$8 sps:$4 sm:$0xff]   ;;  %v5853_v34 = vld [vmem:[%s7286_s18 + $0x110] ss:$8 sps:$4 sm:$0xff]  }
 0x103   : > { %4452 = vmatprep.mubr.bf16.mxu1 %v2308_v6  ;;  %4698 = vmatprep.mubr.bf16.mxu0 %v2364_v13  ;;  %v2318_v32 = vcombine.high %v2308_v6, %v2308_v6  ;;  %v2368_v33 = vcombine.high %v2364_v13, %v2364_v13  ;;  %v5876_v45 = vld [vmem:[%s7286_s18 + $0x744] ss:$8 sps:$4 sm:$0xff]   ;;  %v5871_v46 = vld [vmem:[%s7286_s18 + $0x140] ss:$8 sps:$4 sm:$0xff]   ;;  %v5880_v52 = vld [vmem:[%s7286_s18 + $0x750] ss:$8 sps:$4 sm:$0xff]  }
 0x104   : > { %4433 = vmatpush1.bf16.msra.mxu1 %v5789_v35  ;;  %v5856_v35 = vld [vmem:[%s7286_s18 + $0x710] ss:$8 sps:$4 sm:$0xff]   ;;  %v5874_v47 = vld [vmem:[%s7286_s18 + $0x740] ss:$8 sps:$4 sm:$0xff]   ;;  %v5897_v63 = vld [vmem:[%s7286_s18 + $0x184] ss:$8 sps:$4 sm:$0xff]  }
 0x105   : > { %4679 = vmatpush1.bf16.msra.mxu0 %v5790_v36  ;;  %4434 = vmatprep.subr.bf16.mxu1 %v5791_v37  ;;  %v5861_v36 = vld [vmem:[%s7286_s18 + $0x124] ss:$8 sps:$4 sm:$0xff]   ;;  %v5895_v1 = vld [vmem:[%s7286_s18 + $0x180] ss:$8 sps:$4 sm:$0xff]   ;;  %v5906_v4 = vld [vmem:[%s7286_s18 + $0x794] ss:$8 sps:$4 sm:$0xff]  }
 0x106   : > { %4680 = vmatprep.subr.bf16.mxu0 %v5793_v38  ;;  %v5864_v37 = vld [vmem:[%s7286_s18 + $0x724] ss:$8 sps:$4 sm:$0xff]   ;;  %v5859_v38 = vld [vmem:[%s7286_s18 + $0x120] ss:$8 sps:$4 sm:$0xff]   ;;  %v5901_v5 = vld [vmem:[%s7286_s18 + $0x190] ss:$8 sps:$4 sm:$0xff]  }
 0x107   : > { %v5904_v6 = vld [vmem:[%s7286_s18 + $0x790] ss:$8 sps:$4 sm:$0xff]   ;;  %v5909_v7 = vld [vmem:[%s7286_s18 + $0x1a4] ss:$8 sps:$4 sm:$0xff]   ;;  %v5918_v12 = vld [vmem:[%s7286_s18 + $0x7b4] ss:$8 sps:$4 sm:$0xff]  }
 0x108   : > { %4435 = vmatpush1.bf16.msra.mxu1 %v5795_v39  ;;  %v5862_v39 = vld [vmem:[%s7286_s18 + $0x720] ss:$8 sps:$4 sm:$0xff]   ;;  %v5913_v13 = vld [vmem:[%s7286_s18 + $0x1b0] ss:$8 sps:$4 sm:$0xff]  }
 0x109   : > { %4681 = vmatpush1.bf16.msra.mxu0 %v5796_v40  ;;  %4436 = vmatprep.subr.bf16.mxu1 %v5797_v41  ;;  %v5867_v40 = vld [vmem:[%s7286_s18 + $0x134] ss:$8 sps:$4 sm:$0xff]  }
 0x10a   : > { %4682 = vmatprep.subr.bf16.mxu0 %v5799_v42  ;;  %v5870_v41 = vld [vmem:[%s7286_s18 + $0x734] ss:$8 sps:$4 sm:$0xff]   ;;  %v5865_v42 = vld [vmem:[%s7286_s18 + $0x130] ss:$8 sps:$4 sm:$0xff]  }
 0x10c   : > { %4437 = vmatpush1.bf16.msra.mxu1 %v5801_v43  ;;  %v5868_v43 = vld [vmem:[%s7286_s18 + $0x730] ss:$8 sps:$4 sm:$0xff]  }
 0x10d   : > { %4683 = vmatpush1.bf16.msra.mxu0 %v5802_v44  ;;  %4438 = vmatprep.subr.bf16.mxu1 %v5803_v48  ;;  %v5873_v44 = vld [vmem:[%s7286_s18 + $0x144] ss:$8 sps:$4 sm:$0xff]   ;;  %v5879_v48 = vld [vmem:[%s7286_s18 + $0x154] ss:$8 sps:$4 sm:$0xff]  }
 0x10e   : > { %4684 = vmatprep.subr.bf16.mxu0 %v5805_v49  ;;  %v5882_v49 = vld [vmem:[%s7286_s18 + $0x754] ss:$8 sps:$4 sm:$0xff]  }
 0x110   : > { %4439 = vmatpush1.bf16.msra.mxu1 %v5807_v50  ;;  %v5877_v50 = vld [vmem:[%s7286_s18 + $0x150] ss:$8 sps:$4 sm:$0xff]  }
 0x111   : > { %4685 = vmatpush1.bf16.msra.mxu0 %v5808_v53  ;;  %4440 = vmatprep.subr.bf16.mxu1 %v5809_v54  ;;  %v5885_v53 = vld [vmem:[%s7286_s18 + $0x164] ss:$8 sps:$4 sm:$0xff]  }
 0x112   : > { %4686 = vmatprep.subr.bf16.mxu0 %v5811_v55  ;;  %v5888_v54 = vld [vmem:[%s7286_s18 + $0x764] ss:$8 sps:$4 sm:$0xff]   ;;  %v5883_v55 = vld [vmem:[%s7286_s18 + $0x160] ss:$8 sps:$4 sm:$0xff]  }
 0x114   : > { %4441 = vmatpush1.bf16.msra.mxu1 %v5813_v56  ;;  %v5886_v56 = vld [vmem:[%s7286_s18 + $0x760] ss:$8 sps:$4 sm:$0xff]  }
 0x115   : > { %4687 = vmatpush1.bf16.msra.mxu0 %v5814_v57  ;;  %4442 = vmatprep.subr.bf16.mxu1 %v5815_v59  ;;  %v5891_v57 = vld [vmem:[%s7286_s18 + $0x174] ss:$8 sps:$4 sm:$0xff]  }
 0x116   : > { %4688 = vmatprep.subr.bf16.mxu0 %v5817_v60  ;;  %v5894_v59 = vld [vmem:[%s7286_s18 + $0x774] ss:$8 sps:$4 sm:$0xff]   ;;  %v5889_v60 = vld [vmem:[%s7286_s18 + $0x170] ss:$8 sps:$4 sm:$0xff]  }
 0x118   : > { %4443 = vmatpush1.bf16.msra.mxu1 %v5819_v62  ;;  %v5892_v62 = vld [vmem:[%s7286_s18 + $0x770] ss:$8 sps:$4 sm:$0xff]  }
 0x119   : > { %4689 = vmatpush1.bf16.msra.mxu0 %v5820_v0  ;;  %4444 = vmatprep.subr.bf16.mxu1 %v5821_v2  ;;  %v5900_v0 = vld [vmem:[%s7286_s18 + $0x784] ss:$8 sps:$4 sm:$0xff]   ;;  %v5898_v2 = vld [vmem:[%s7286_s18 + $0x780] ss:$8 sps:$4 sm:$0xff]  }
 0x11a   : > { %4690 = vmatprep.subr.bf16.mxu0 %v5823_v3  ;;  %v5903_v3 = vld [vmem:[%s7286_s18 + $0x194] ss:$8 sps:$4 sm:$0xff]  }
 0x11c   : > { %4445 = vmatpush1.bf16.msra.mxu1 %v5825_v8  ;;  %v5912_v8 = vld [vmem:[%s7286_s18 + $0x7a4] ss:$8 sps:$4 sm:$0xff]  }
 0x11d   : > { %4691 = vmatpush1.bf16.msra.mxu0 %v5826_v9  ;;  %4446 = vmatprep.subr.bf16.mxu1 %v5827_v10  ;;  %v5907_v9 = vld [vmem:[%s7286_s18 + $0x1a0] ss:$8 sps:$4 sm:$0xff]  }
 0x11e   : > { %4692 = vmatprep.subr.bf16.mxu0 %v5829_v11  ;;  %v5910_v10 = vld [vmem:[%s7286_s18 + $0x7a0] ss:$8 sps:$4 sm:$0xff]   ;;  %v5915_v11 = vld [vmem:[%s7286_s18 + $0x1b4] ss:$8 sps:$4 sm:$0xff]  }
 0x120   : > { %4447 = vmatpush1.bf16.msra.mxu1 %v5831_v14  ;;  %v5916_v14 = vld [vmem:[%s7286_s18 + $0x7b0] ss:$8 sps:$4 sm:$0xff]  }
 0x121   : > { %4693 = vmatpush1.bf16.msra.mxu0 %v5832_v15  ;;  %4448 = vmatprep.subr.bf16.mxu1 %v5833_v16  ;;  %v5921_v15 = vld [vmem:[%s7286_s18 + $0x1c4] ss:$8 sps:$4 sm:$0xff]  }
 0x122   : > { %4694 = vmatprep.subr.bf16.mxu0 %v5835_v17  ;;  %v5924_v16 = vld [vmem:[%s7286_s18 + $0x7c4] ss:$8 sps:$4 sm:$0xff]   ;;  %v5919_v17 = vld [vmem:[%s7286_s18 + $0x1c0] ss:$8 sps:$4 sm:$0xff]  }
 0x124   : > { %4449 = vmatpush1.bf16.msra.mxu1 %v5837_v18  ;;  %v5922_v18 = vld [vmem:[%s7286_s18 + $0x7c0] ss:$8 sps:$4 sm:$0xff]  }
 0x125   : > { %4695 = vmatpush1.bf16.msra.mxu0 %v5838_v19  ;;  %4450 = vmatprep.subr.bf16.mxu1 %v5839_v20  ;;  %v5927_v19 = vld [vmem:[%s7286_s18 + $0x1d4] ss:$8 sps:$4 sm:$0xff]  }
 0x126   : > { %4696 = vmatprep.subr.bf16.mxu0 %v5841_v21  ;;  %v5930_v20 = vld [vmem:[%s7286_s18 + $0x7d4] ss:$8 sps:$4 sm:$0xff]   ;;  %v5925_v21 = vld [vmem:[%s7286_s18 + $0x1d0] ss:$8 sps:$4 sm:$0xff]  }
 0x128   : > { %4451 = vmatpush1.bf16.msra.mxu1 %v5843_v22  ;;  %v5928_v22 = vld [vmem:[%s7286_s18 + $0x7d0] ss:$8 sps:$4 sm:$0xff]  }
 0x129   : > { %4697 = vmatpush1.bf16.msra.mxu0 %v5844_v23  ;;  %4461 = vmatprep.subr.bf16.mxu1 %v5848_v24  ;;  %v5933_v23 = vld [vmem:[%s7286_s18 + $0x1e4] ss:$8 sps:$4 sm:$0xff]  }
 0x12a   : > { %4707 = vmatprep.subr.bf16.mxu0 %v5852_v25  ;;  %v5936_v24 = vld [vmem:[%s7286_s18 + $0x7e4] ss:$8 sps:$4 sm:$0xff]   ;;  %v2271_v25 = vcombine.high %v7343_v61, %v7343_v61  ;;  %v5940_v61 = vld [vmem:[%s7286_s18 + $0x7f0] ss:$8 sps:$4 sm:$0xff]  }
 0x12b   : > { %4453 = vmatmul.mubr.bf16.vlgmr.msra.gmra.mrb[0].mxu1 %v7374_v26 }
 0x12c   : > { %4699 = vmatmul.mubr.bf16.vlgmr.msra.gmra.mrb[0].mxu0 %v7377_v27  ;;  %4462 = vmatpush1.bf16.msra.mxu1 %v5846_v28  ;;  %v5931_v28 = vld [vmem:[%s7286_s18 + $0x1e0] ss:$8 sps:$4 sm:$0xff]  }
 0x12d   : > { %4708 = vmatpush1.bf16.msra.mxu0 %v5850_v29  ;;  %4463 = vmatprep.subr.bf16.mxu1 %v5855_v30  ;;  %v5934_v29 = vld [vmem:[%s7286_s18 + $0x7e0] ss:$8 sps:$4 sm:$0xff]   ;;  %v5939_v30 = vld [vmem:[%s7286_s18 + $0x1f4] ss:$8 sps:$4 sm:$0xff]  }
 0x12e   : > { %4709 = vmatprep.subr.bf16.mxu0 %v5858_v31  ;;  %4493 = vmatprep.mubr.bf16.mxu1 %v2318_v32  ;;  %v5942_v31 = vld [vmem:[%s7286_s18 + $0x7f4] ss:$8 sps:$4 sm:$0xff]   ;;  %v7444_v32 = vrot.slane %v2271_v25, %v7336_v58  ;;  %v6009_v25 = vld [vmem:[%s7286_s18 + $0x2b0] ss:$8 sps:$4 sm:$0xff]  }
 0x12f   : > { %4739 = vmatprep.mubr.bf16.mxu0 %v2368_v33  ;;  %v5937_v33 = vld [vmem:[%s7286_s18 + $0x1f0] ss:$8 sps:$4 sm:$0xff]  }
 0x130   : > { %4464 = vmatpush1.bf16.msra.mxu1 %v5853_v34  ;;  %v5945_v34 = vld [vmem:[%s7286_s18 + $0x204] ss:$8 sps:$4 sm:$0xff]  }
 0x131   : > { %4710 = vmatpush1.bf16.msra.mxu0 %v5856_v35  ;;  %4465 = vmatprep.subr.bf16.mxu1 %v5861_v36  ;;  %v5948_v35 = vld [vmem:[%s7286_s18 + $0x804] ss:$8 sps:$4 sm:$0xff]   ;;  %v2287_v36 = vcombine.high %v7444_v32, %v7444_v32 }
 0x132   : > { %4711 = vmatprep.subr.bf16.mxu0 %v5864_v37  ;;  %v2316_v37 = vcombine.high %v7374_v26, %v7374_v26  ;;  %v7466_v26 = vld [vmem:[%s7859_s0 + $0x10] sm:$0xff] }
 0x134   : > { %4466 = vmatpush1.bf16.msra.mxu1 %v5859_v38  ;;  %v2366_v38 = vcombine.high %v7377_v27, %v7377_v27  ;;  %v5949_v27 = vld [vmem:[%s7286_s18 + $0x210] ss:$8 sps:$4 sm:$0xff]  }
 0x135   : > { %4712 = vmatpush1.bf16.msra.mxu0 %v5862_v39  ;;  %4467 = vmatprep.subr.bf16.mxu1 %v5867_v40  ;;  %v5943_v39 = vld [vmem:[%s7286_s18 + $0x200] ss:$8 sps:$4 sm:$0xff]  }
 0x136   : > { %4713 = vmatprep.subr.bf16.mxu0 %v5870_v41  ;;  %v5946_v40 = vld [vmem:[%s7286_s18 + $0x800] ss:$8 sps:$4 sm:$0xff]   ;;  %v5951_v41 = vld [vmem:[%s7286_s18 + $0x214] ss:$8 sps:$4 sm:$0xff]  }
 0x138   : > { %4468 = vmatpush1.bf16.msra.mxu1 %v5865_v42  ;;  %v5954_v42 = vld [vmem:[%s7286_s18 + $0x814] ss:$8 sps:$4 sm:$0xff]  }
 0x139   : > { %4714 = vmatpush1.bf16.msra.mxu0 %v5868_v43  ;;  %4469 = vmatprep.subr.bf16.mxu1 %v5873_v44  ;;  %v7461_v43 = vrot.slane %v2287_v36, %v7336_v58  ;;  %v7471_v44 = vrot.slane %v7466_v26, %v7336_v58  ;;  %v6024_v36 = vld [vmem:[%s7286_s18 + $0x8d0] ss:$8 sps:$4 sm:$0xff]  }
 0x13a   : > { %4715 = vmatprep.subr.bf16.mxu0 %v5876_v45  ;;  %v5952_v45 = vld [vmem:[%s7286_s18 + $0x810] ss:$8 sps:$4 sm:$0xff]  }
 0x13c   : > { %4470 = vmatpush1.bf16.msra.mxu1 %v5871_v46  ;;  %v5957_v46 = vld [vmem:[%s7286_s18 + $0x224] ss:$8 sps:$4 sm:$0xff]  }
 0x13d   : > { %4716 = vmatpush1.bf16.msra.mxu0 %v5874_v47  ;;  %4471 = vmatprep.subr.bf16.mxu1 %v5879_v48  ;;  %v5960_v47 = vld [vmem:[%s7286_s18 + $0x824] ss:$8 sps:$4 sm:$0xff]   ;;  %v2384_v48 = vcombine.high %v7471_v44, %v7471_v44 }
 0x13e   : > { %4717 = vmatprep.subr.bf16.mxu0 %v5882_v49  ;;  %v5955_v49 = vld [vmem:[%s7286_s18 + $0x220] ss:$8 sps:$4 sm:$0xff]  }
 0x140   : > { %4472 = vmatpush1.bf16.msra.mxu1 %v5877_v50  ;;  %v7481_v50 = vrot.slane %v2384_v48, %v7336_v58  ;;  %v6039_v48 = vld [vmem:[%s7286_s18 + $0x300] ss:$8 sps:$4 sm:$0xff]  }
 0x141   : > { %4718 = vmatpush1.bf16.msra.mxu0 %v5880_v52  ;;  %4473 = vmatprep.subr.bf16.mxu1 %v5885_v53  ;;  %v5958_v52 = vld [vmem:[%s7286_s18 + $0x820] ss:$8 sps:$4 sm:$0xff]   ;;  %v5963_v53 = vld [vmem:[%s7286_s18 + $0x234] ss:$8 sps:$4 sm:$0xff]  }
 0x142   : > { %4719 = vmatprep.subr.bf16.mxu0 %v5888_v54  ;;  %v5966_v54 = vld [vmem:[%s7286_s18 + $0x834] ss:$8 sps:$4 sm:$0xff]  }
 0x144   : > { %4474 = vmatpush1.bf16.msra.mxu1 %v5883_v55  ;;  %v5961_v55 = vld [vmem:[%s7286_s18 + $0x230] ss:$8 sps:$4 sm:$0xff]  }
 0x145   : > { %4720 = vmatpush1.bf16.msra.mxu0 %v5886_v56  ;;  %4475 = vmatprep.subr.bf16.mxu1 %v5891_v57  ;;  %v5964_v56 = vld [vmem:[%s7286_s18 + $0x830] ss:$8 sps:$4 sm:$0xff]   ;;  %v5969_v57 = vld [vmem:[%s7286_s18 + $0x244] ss:$8 sps:$4 sm:$0xff]  }
 0x146   : > { %4721 = vmatprep.subr.bf16.mxu0 %v5894_v59  ;;  %v5972_v59 = vld [vmem:[%s7286_s18 + $0x844] ss:$8 sps:$4 sm:$0xff]  }
 0x148   : > { %4476 = vmatpush1.bf16.msra.mxu1 %v5889_v60  ;;  %v5967_v60 = vld [vmem:[%s7286_s18 + $0x240] ss:$8 sps:$4 sm:$0xff]  }
 0x149   : > { %4722 = vmatpush1.bf16.msra.mxu0 %v5892_v62  ;;  %4477 = vmatprep.subr.bf16.mxu1 %v5897_v63  ;;  %v5970_v62 = vld [vmem:[%s7286_s18 + $0x840] ss:$8 sps:$4 sm:$0xff]   ;;  %v5975_v63 = vld [vmem:[%s7286_s18 + $0x254] ss:$8 sps:$4 sm:$0xff]  }
 0x14a   : > { %4723 = vmatprep.subr.bf16.mxu0 %v5900_v0  ;;  %v5978_v0 = vld [vmem:[%s7286_s18 + $0x854] ss:$8 sps:$4 sm:$0xff]  }
 0x14c   : > { %4478 = vmatpush1.bf16.msra.mxu1 %v5895_v1  ;;  %v5973_v1 = vld [vmem:[%s7286_s18 + $0x250] ss:$8 sps:$4 sm:$0xff]  }
 0x14d   : > { %4724 = vmatpush1.bf16.msra.mxu0 %v5898_v2  ;;  %4479 = vmatprep.subr.bf16.mxu1 %v5903_v3  ;;  %v5976_v2 = vld [vmem:[%s7286_s18 + $0x850] ss:$8 sps:$4 sm:$0xff]   ;;  %v5981_v3 = vld [vmem:[%s7286_s18 + $0x264] ss:$8 sps:$4 sm:$0xff]  }
 0x14e   : > { %4725 = vmatprep.subr.bf16.mxu0 %v5906_v4  ;;  %v5984_v4 = vld [vmem:[%s7286_s18 + $0x864] ss:$8 sps:$4 sm:$0xff]  }
 0x150   : > { %4480 = vmatpush1.bf16.msra.mxu1 %v5901_v5  ;;  %v5979_v5 = vld [vmem:[%s7286_s18 + $0x260] ss:$8 sps:$4 sm:$0xff]  }
 0x151   : > { %4726 = vmatpush1.bf16.msra.mxu0 %v5904_v6  ;;  %4481 = vmatprep.subr.bf16.mxu1 %v5909_v7  ;;  %v5982_v6 = vld [vmem:[%s7286_s18 + $0x860] ss:$8 sps:$4 sm:$0xff]   ;;  %v5987_v7 = vld [vmem:[%s7286_s18 + $0x274] ss:$8 sps:$4 sm:$0xff]  }
 0x152   : > { %4727 = vmatprep.subr.bf16.mxu0 %v5912_v8  ;;  %v5990_v8 = vld [vmem:[%s7286_s18 + $0x874] ss:$8 sps:$4 sm:$0xff]  }
 0x154   : > { %4482 = vmatpush1.bf16.msra.mxu1 %v5907_v9  ;;  %v5985_v9 = vld [vmem:[%s7286_s18 + $0x270] ss:$8 sps:$4 sm:$0xff]  }
 0x155   : > { %4728 = vmatpush1.bf16.msra.mxu0 %v5910_v10  ;;  %4483 = vmatprep.subr.bf16.mxu1 %v5915_v11  ;;  %v5988_v10 = vld [vmem:[%s7286_s18 + $0x870] ss:$8 sps:$4 sm:$0xff]   ;;  %v5993_v11 = vld [vmem:[%s7286_s18 + $0x284] ss:$8 sps:$4 sm:$0xff]  }
 0x156   : > { %4729 = vmatprep.subr.bf16.mxu0 %v5918_v12  ;;  %v5996_v12 = vld [vmem:[%s7286_s18 + $0x884] ss:$8 sps:$4 sm:$0xff]  }
 0x158   : > { %4484 = vmatpush1.bf16.msra.mxu1 %v5913_v13  ;;  %v5991_v13 = vld [vmem:[%s7286_s18 + $0x280] ss:$8 sps:$4 sm:$0xff]  }
 0x159   : > { %4730 = vmatpush1.bf16.msra.mxu0 %v5916_v14  ;;  %4485 = vmatprep.subr.bf16.mxu1 %v5921_v15  ;;  %v5994_v14 = vld [vmem:[%s7286_s18 + $0x880] ss:$8 sps:$4 sm:$0xff]   ;;  %v5999_v15 = vld [vmem:[%s7286_s18 + $0x294] ss:$8 sps:$4 sm:$0xff]  }
 0x15a   : > { %4731 = vmatprep.subr.bf16.mxu0 %v5924_v16  ;;  %v6002_v16 = vld [vmem:[%s7286_s18 + $0x894] ss:$8 sps:$4 sm:$0xff]  }
 0x15c   : > { %4486 = vmatpush1.bf16.msra.mxu1 %v5919_v17  ;;  %v5997_v17 = vld [vmem:[%s7286_s18 + $0x290] ss:$8 sps:$4 sm:$0xff]  }
 0x15d   : > { %4732 = vmatpush1.bf16.msra.mxu0 %v5922_v18  ;;  %4487 = vmatprep.subr.bf16.mxu1 %v5927_v19  ;;  %v6000_v18 = vld [vmem:[%s7286_s18 + $0x890] ss:$8 sps:$4 sm:$0xff]   ;;  %v6005_v19 = vld [vmem:[%s7286_s18 + $0x2a4] ss:$8 sps:$4 sm:$0xff]  }
 0x15e   : > { %4733 = vmatprep.subr.bf16.mxu0 %v5930_v20  ;;  %v6008_v20 = vld [vmem:[%s7286_s18 + $0x8a4] ss:$8 sps:$4 sm:$0xff]  }
 0x160   : > { %4488 = vmatpush1.bf16.msra.mxu1 %v5925_v21  ;;  %v6003_v21 = vld [vmem:[%s7286_s18 + $0x2a0] ss:$8 sps:$4 sm:$0xff]  }
 0x161   : > { %4734 = vmatpush1.bf16.msra.mxu0 %v5928_v22  ;;  %4489 = vmatprep.subr.bf16.mxu1 %v5933_v23  ;;  %v6006_v22 = vld [vmem:[%s7286_s18 + $0x8a0] ss:$8 sps:$4 sm:$0xff]   ;;  %v6011_v23 = vld [vmem:[%s7286_s18 + $0x2b4] ss:$8 sps:$4 sm:$0xff]  }
 0x162   : > { %4735 = vmatprep.subr.bf16.mxu0 %v5936_v24  ;;  %v6014_v24 = vld [vmem:[%s7286_s18 + $0x8b4] ss:$8 sps:$4 sm:$0xff]  }
 0x164   : > { %4490 = vmatpush1.bf16.msra.mxu1 %v5931_v28  ;;  %v6012_v28 = vld [vmem:[%s7286_s18 + $0x8b0] ss:$8 sps:$4 sm:$0xff]  }
 0x165   : > { %4736 = vmatpush1.bf16.msra.mxu0 %v5934_v29  ;;  %4491 = vmatprep.subr.bf16.mxu1 %v5939_v30  ;;  %v6017_v29 = vld [vmem:[%s7286_s18 + $0x2c4] ss:$8 sps:$4 sm:$0xff]  }
 0x166   : > { %4737 = vmatprep.subr.bf16.mxu0 %v5942_v31  ;;  %v6020_v30 = vld [vmem:[%s7286_s18 + $0x8c4] ss:$8 sps:$4 sm:$0xff]   ;;  %v6015_v31 = vld [vmem:[%s7286_s18 + $0x2c0] ss:$8 sps:$4 sm:$0xff]  }
 0x168   : > { %4492 = vmatpush1.bf16.msra.mxu1 %v5937_v33  ;;  %v6018_v33 = vld [vmem:[%s7286_s18 + $0x8c0] ss:$8 sps:$4 sm:$0xff]  }
 0x169   : > { %4738 = vmatpush1.bf16.msra.mxu0 %v5940_v61  ;;  %4502 = vmatprep.subr.bf16.mxu1 %v5945_v34  ;;  %v6023_v61 = vld [vmem:[%s7286_s18 + $0x2d4] ss:$8 sps:$4 sm:$0xff]  }
 0x16a   : > { %4748 = vmatprep.subr.bf16.mxu0 %v5948_v35  ;;  %v6026_v34 = vld [vmem:[%s7286_s18 + $0x8d4] ss:$8 sps:$4 sm:$0xff]   ;;  %v6021_v35 = vld [vmem:[%s7286_s18 + $0x2d0] ss:$8 sps:$4 sm:$0xff]  }
 0x16b   : > { %4494 = vmatmul.mubr.bf16.vlgmr.msra.gmra.mrb[0].mxu1 %v2316_v37  ;;  %v6029_v37 = vld [vmem:[%s7286_s18 + $0x2e4] ss:$8 sps:$4 sm:$0xff]  }
 0x16c   : > { %4740 = vmatmul.mubr.bf16.vlgmr.msra.gmra.mrb[0].mxu0 %v2366_v38  ;;  %4503 = vmatpush1.bf16.msra.mxu1 %v5943_v39  ;;  %v6032_v38 = vld [vmem:[%s7286_s18 + $0x8e4] ss:$8 sps:$4 sm:$0xff]   ;;  %v6027_v39 = vld [vmem:[%s7286_s18 + $0x2e0] ss:$8 sps:$4 sm:$0xff]  }
 0x16d   : > { %4749 = vmatpush1.bf16.msra.mxu0 %v5946_v40  ;;  %4504 = vmatprep.subr.bf16.mxu1 %v5951_v41  ;;  %v6030_v40 = vld [vmem:[%s7286_s18 + $0x8e0] ss:$8 sps:$4 sm:$0xff]   ;;  %v6035_v41 = vld [vmem:[%s7286_s18 + $0x2f4] ss:$8 sps:$4 sm:$0xff]  }
 0x16e   : > { %4750 = vmatprep.subr.bf16.mxu0 %v5954_v42  ;;  %4534 = vmatprep.mubr.bf16.mxu1 %v7461_v43  ;;  %v6038_v42 = vld [vmem:[%s7286_s18 + $0x8f4] ss:$8 sps:$4 sm:$0xff]  }
 0x16f   : > { %4780 = vmatprep.mubr.bf16.mxu0 %v7481_v50 }
 0x170   : > { %4505 = vmatpush1.bf16.msra.mxu1 %v5949_v27  ;;  %v6033_v27 = vld [vmem:[%s7286_s18 + $0x2f0] ss:$8 sps:$4 sm:$0xff]  }
 0x171   : > { %4751 = vmatpush1.bf16.msra.mxu0 %v5952_v45  ;;  %4506 = vmatprep.subr.bf16.mxu1 %v5957_v46  ;;  %v6036_v45 = vld [vmem:[%s7286_s18 + $0x8f0] ss:$8 sps:$4 sm:$0xff]   ;;  %v6041_v46 = vld [vmem:[%s7286_s18 + $0x304] ss:$8 sps:$4 sm:$0xff]  }
 0x172   : > { %4752 = vmatprep.subr.bf16.mxu0 %v5960_v47  ;;  %v6044_v47 = vld [vmem:[%s7286_s18 + $0x904] ss:$8 sps:$4 sm:$0xff]  }
 0x174   : > { %4507 = vmatpush1.bf16.msra.mxu1 %v5955_v49  ;;  %v7542_v49 = vrot.slane %v7444_v32, %v7336_v58  ;;  %v2416_v32 = vcombine.high %v7481_v50, %v7481_v50  ;;  %v6051_v50 = vld [vmem:[%s7286_s18 + $0x320] ss:$8 sps:$4 sm:$0xff]  }
 0x175   : > { %4753 = vmatpush1.bf16.msra.mxu0 %v5958_v52  ;;  %4508 = vmatprep.subr.bf16.mxu1 %v5963_v53  ;;  %v7546_v52 = vrot.slane %v7471_v44, %v7336_v58  ;;  %v6042_v53 = vld [vmem:[%s7286_s18 + $0x900] ss:$8 sps:$4 sm:$0xff]   ;;  %v6045_v44 = vld [vmem:[%s7286_s18 + $0x310] ss:$8 sps:$4 sm:$0xff]  }
 0x176   : > { %4754 = vmatprep.subr.bf16.mxu0 %v5966_v54  ;;  %v6047_v54 = vld [vmem:[%s7286_s18 + $0x314] ss:$8 sps:$4 sm:$0xff]  }
 0x178   : > { %4509 = vmatpush1.bf16.msra.mxu1 %v5961_v55  ;;  %v6050_v55 = vld [vmem:[%s7286_s18 + $0x914] ss:$8 sps:$4 sm:$0xff]  }
 0x179   : > { %4755 = vmatpush1.bf16.msra.mxu0 %v5964_v56  ;;  %4510 = vmatprep.subr.bf16.mxu1 %v5969_v57  ;;  %v2319_v56 = vcombine.high %v7461_v43, %v7461_v43  ;;  %v6048_v57 = vld [vmem:[%s7286_s18 + $0x910] ss:$8 sps:$4 sm:$0xff]   ;;  %v6056_v43 = vld [vmem:[%s7286_s18 + $0x924] ss:$8 sps:$4 sm:$0xff]  }
 0x17a   : > { %4756 = vmatprep.subr.bf16.mxu0 %v5972_v59  ;;  %v6053_v59 = vld [vmem:[%s7286_s18 + $0x324] ss:$8 sps:$4 sm:$0xff]  }
 0x17c   : > { %4511 = vmatpush1.bf16.msra.mxu1 %v5967_v60  ;;  %v6054_v60 = vld [vmem:[%s7286_s18 + $0x920] ss:$8 sps:$4 sm:$0xff]  }
 0x17d   : > { %4757 = vmatpush1.bf16.msra.mxu0 %v5970_v62  ;;  %4512 = vmatprep.subr.bf16.mxu1 %v5975_v63  ;;  %v6059_v62 = vld [vmem:[%s7286_s18 + $0x334] ss:$8 sps:$4 sm:$0xff]  }
 0x17e   : > { %4758 = vmatprep.subr.bf16.mxu0 %v5978_v0  ;;  %v6062_v63 = vld [vmem:[%s7286_s18 + $0x934] ss:$8 sps:$4 sm:$0xff]   ;;  %v6057_v0 = vld [vmem:[%s7286_s18 + $0x330] ss:$8 sps:$4 sm:$0xff]  }
 0x180   : > { %4513 = vmatpush1.bf16.msra.mxu1 %v5973_v1  ;;  %v6060_v1 = vld [vmem:[%s7286_s18 + $0x930] ss:$8 sps:$4 sm:$0xff]  }
 0x181   : > { %4759 = vmatpush1.bf16.msra.mxu0 %v5976_v2  ;;  %4514 = vmatprep.subr.bf16.mxu1 %v5981_v3  ;;  %v6065_v2 = vld [vmem:[%s7286_s18 + $0x344] ss:$8 sps:$4 sm:$0xff]  }
 0x182   : > { %4760 = vmatprep.subr.bf16.mxu0 %v5984_v4  ;;  %v6068_v3 = vld [vmem:[%s7286_s18 + $0x944] ss:$8 sps:$4 sm:$0xff]   ;;  %v6063_v4 = vld [vmem:[%s7286_s18 + $0x340] ss:$8 sps:$4 sm:$0xff]  }
 0x184   : > { %4515 = vmatpush1.bf16.msra.mxu1 %v5979_v5  ;;  %v6066_v5 = vld [vmem:[%s7286_s18 + $0x940] ss:$8 sps:$4 sm:$0xff]  }
 0x185   : > { %4761 = vmatpush1.bf16.msra.mxu0 %v5982_v6  ;;  %4516 = vmatprep.subr.bf16.mxu1 %v5987_v7  ;;  %v6071_v6 = vld [vmem:[%s7286_s18 + $0x354] ss:$8 sps:$4 sm:$0xff]  }
 0x186   : > { %4762 = vmatprep.subr.bf16.mxu0 %v5990_v8  ;;  %v6074_v7 = vld [vmem:[%s7286_s18 + $0x954] ss:$8 sps:$4 sm:$0xff]   ;;  %v6069_v8 = vld [vmem:[%s7286_s18 + $0x350] ss:$8 sps:$4 sm:$0xff]  }
 0x188   : > { %4517 = vmatpush1.bf16.msra.mxu1 %v5985_v9  ;;  %v6072_v9 = vld [vmem:[%s7286_s18 + $0x950] ss:$8 sps:$4 sm:$0xff]  }
 0x189   : > { %4763 = vmatpush1.bf16.msra.mxu0 %v5988_v10  ;;  %4518 = vmatprep.subr.bf16.mxu1 %v5993_v11  ;;  %v6077_v10 = vld [vmem:[%s7286_s18 + $0x364] ss:$8 sps:$4 sm:$0xff]  }
 0x18a   : > { %4764 = vmatprep.subr.bf16.mxu0 %v5996_v12  ;;  %v6080_v11 = vld [vmem:[%s7286_s18 + $0x964] ss:$8 sps:$4 sm:$0xff]   ;;  %v6075_v12 = vld [vmem:[%s7286_s18 + $0x360] ss:$8 sps:$4 sm:$0xff]  }
 0x18c   : > { %4519 = vmatpush1.bf16.msra.mxu1 %v5991_v13  ;;  %v6078_v13 = vld [vmem:[%s7286_s18 + $0x960] ss:$8 sps:$4 sm:$0xff]  }
 0x18d   : > { %4765 = vmatpush1.bf16.msra.mxu0 %v5994_v14  ;;  %4520 = vmatprep.subr.bf16.mxu1 %v5999_v15  ;;  %v6083_v14 = vld [vmem:[%s7286_s18 + $0x374] ss:$8 sps:$4 sm:$0xff]  }
 0x18e   : > { %4766 = vmatprep.subr.bf16.mxu0 %v6002_v16  ;;  %v6086_v15 = vld [vmem:[%s7286_s18 + $0x974] ss:$8 sps:$4 sm:$0xff]   ;;  %v6081_v16 = vld [vmem:[%s7286_s18 + $0x370] ss:$8 sps:$4 sm:$0xff]  }
 0x190   : > { %4521 = vmatpush1.bf16.msra.mxu1 %v5997_v17  ;;  %v6084_v17 = vld [vmem:[%s7286_s18 + $0x970] ss:$8 sps:$4 sm:$0xff]  }
 0x191   : > { %4767 = vmatpush1.bf16.msra.mxu0 %v6000_v18  ;;  %4522 = vmatprep.subr.bf16.mxu1 %v6005_v19  ;;  %v6089_v18 = vld [vmem:[%s7286_s18 + $0x384] ss:$8 sps:$4 sm:$0xff]  }
 0x192   : > { %4768 = vmatprep.subr.bf16.mxu0 %v6008_v20  ;;  %v6092_v19 = vld [vmem:[%s7286_s18 + $0x984] ss:$8 sps:$4 sm:$0xff]   ;;  %v6087_v20 = vld [vmem:[%s7286_s18 + $0x380] ss:$8 sps:$4 sm:$0xff]  }
 0x194   : > { %4523 = vmatpush1.bf16.msra.mxu1 %v6003_v21  ;;  %v6090_v21 = vld [vmem:[%s7286_s18 + $0x980] ss:$8 sps:$4 sm:$0xff]  }
 0x195   : > { %4769 = vmatpush1.bf16.msra.mxu0 %v6006_v22  ;;  %4524 = vmatprep.subr.bf16.mxu1 %v6011_v23  ;;  %v6095_v22 = vld [vmem:[%s7286_s18 + $0x394] ss:$8 sps:$4 sm:$0xff]  }
 0x196   : > { %4770 = vmatprep.subr.bf16.mxu0 %v6014_v24  ;;  %v6098_v23 = vld [vmem:[%s7286_s18 + $0x994] ss:$8 sps:$4 sm:$0xff]   ;;  %v6093_v24 = vld [vmem:[%s7286_s18 + $0x390] ss:$8 sps:$4 sm:$0xff]  }
 0x198   : > { %4525 = vmatpush1.bf16.msra.mxu1 %v6009_v25  ;;  %v6096_v25 = vld [vmem:[%s7286_s18 + $0x990] ss:$8 sps:$4 sm:$0xff]  }
 0x199   : > { %4771 = vmatpush1.bf16.msra.mxu0 %v6012_v28  ;;  %4526 = vmatprep.subr.bf16.mxu1 %v6017_v29  ;;  %v6101_v28 = vld [vmem:[%s7286_s18 + $0x3a4] ss:$8 sps:$4 sm:$0xff]  }
 0x19a   : > { %4772 = vmatprep.subr.bf16.mxu0 %v6020_v30  ;;  %v6104_v29 = vld [vmem:[%s7286_s18 + $0x9a4] ss:$8 sps:$4 sm:$0xff]   ;;  %v6099_v30 = vld [vmem:[%s7286_s18 + $0x3a0] ss:$8 sps:$4 sm:$0xff]  }
 0x19c   : > { %4527 = vmatpush1.bf16.msra.mxu1 %v6015_v31  ;;  %v6102_v31 = vld [vmem:[%s7286_s18 + $0x9a0] ss:$8 sps:$4 sm:$0xff]  }
 0x19d   : > { %4773 = vmatpush1.bf16.msra.mxu0 %v6018_v33  ;;  %4528 = vmatprep.subr.bf16.mxu1 %v6023_v61  ;;  %v6107_v33 = vld [vmem:[%s7286_s18 + $0x3b4] ss:$8 sps:$4 sm:$0xff]  }
 0x19e   : > { %4774 = vmatprep.subr.bf16.mxu0 %v6026_v34  ;;  %v6110_v61 = vld [vmem:[%s7286_s18 + $0x9b4] ss:$8 sps:$4 sm:$0xff]   ;;  %v6105_v34 = vld [vmem:[%s7286_s18 + $0x3b0] ss:$8 sps:$4 sm:$0xff]  }
 0x1a0   : > { %4529 = vmatpush1.bf16.msra.mxu1 %v6021_v35  ;;  %v6108_v35 = vld [vmem:[%s7286_s18 + $0x9b0] ss:$8 sps:$4 sm:$0xff]  }
 0x1a1   : > { %4775 = vmatpush1.bf16.msra.mxu0 %v6024_v36  ;;  %4530 = vmatprep.subr.bf16.mxu1 %v6029_v37  ;;  %v6113_v36 = vld [vmem:[%s7286_s18 + $0x3c4] ss:$8 sps:$4 sm:$0xff]  }
 0x1a2   : > { %4776 = vmatprep.subr.bf16.mxu0 %v6032_v38  ;;  %v6116_v37 = vld [vmem:[%s7286_s18 + $0x9c4] ss:$8 sps:$4 sm:$0xff]   ;;  %v6111_v38 = vld [vmem:[%s7286_s18 + $0x3c0] ss:$8 sps:$4 sm:$0xff]  }
 0x1a4   : > { %4531 = vmatpush1.bf16.msra.mxu1 %v6027_v39  ;;  %v6114_v39 = vld [vmem:[%s7286_s18 + $0x9c0] ss:$8 sps:$4 sm:$0xff]  }
 0x1a5   : > { %4777 = vmatpush1.bf16.msra.mxu0 %v6030_v40  ;;  %4532 = vmatprep.subr.bf16.mxu1 %v6035_v41  ;;  %v6119_v40 = vld [vmem:[%s7286_s18 + $0x3d4] ss:$8 sps:$4 sm:$0xff]  }
 0x1a6   : > { %4778 = vmatprep.subr.bf16.mxu0 %v6038_v42  ;;  %v6122_v41 = vld [vmem:[%s7286_s18 + $0x9d4] ss:$8 sps:$4 sm:$0xff]   ;;  %v6117_v42 = vld [vmem:[%s7286_s18 + $0x3d0] ss:$8 sps:$4 sm:$0xff]  }
 0x1a8   : > { %4533 = vmatpush1.bf16.msra.mxu1 %v6033_v27  ;;  %v6120_v27 = vld [vmem:[%s7286_s18 + $0x9d0] ss:$8 sps:$4 sm:$0xff]  }
 0x1a9   : > { %4779 = vmatpush1.bf16.msra.mxu0 %v6036_v45  ;;  %4543 = vmatprep.subr.bf16.mxu1 %v6041_v46  ;;  %v6125_v45 = vld [vmem:[%s7286_s18 + $0x3e4] ss:$8 sps:$4 sm:$0xff]  }
 0x1aa   : > { %4789 = vmatprep.subr.bf16.mxu0 %v6044_v47  ;;  %v6128_v46 = vld [vmem:[%s7286_s18 + $0x9e4] ss:$8 sps:$4 sm:$0xff]   ;;  %v2369_v47 = vcombine.high %v7466_v26, %v7466_v26  ;;  %v6129_v26 = vld [vmem:[%s7286_s18 + $0x3f0] ss:$8 sps:$4 sm:$0xff]  }
 0x1ab   : > { %4535 = vmatmul.mubr.bf16.vlgmr.msra.gmra.mrb[0].mxu1 %v7542_v49 }
 0x1ac   : > { %4781 = vmatmul.mubr.bf16.vlgmr.msra.gmra.mrb[0].mxu0 %v7546_v52  ;;  %4544 = vmatpush1.bf16.msra.mxu1 %v6039_v48  ;;  %v6123_v48 = vld [vmem:[%s7286_s18 + $0x3e0] ss:$8 sps:$4 sm:$0xff]  }
 0x1ad   : > { %4790 = vmatpush1.bf16.msra.mxu0 %v6042_v53  ;;  %4545 = vmatprep.subr.bf16.mxu1 %v6047_v54  ;;  %v6126_v53 = vld [vmem:[%s7286_s18 + $0x9e0] ss:$8 sps:$4 sm:$0xff]   ;;  %v6131_v54 = vld [vmem:[%s7286_s18 + $0x3f4] ss:$8 sps:$4 sm:$0xff]  }
 0x1ae   : > { %4791 = vmatprep.subr.bf16.mxu0 %v6050_v55  ;;  %4575 = vmatprep.mubr.bf16.mxu1 %v2319_v56  ;;  %v6134_v55 = vld [vmem:[%s7286_s18 + $0x9f4] ss:$8 sps:$4 sm:$0xff]   ;;  %v7618_v56 = vld.sshfl [vmem:[%s7859_s0 + $0x8] sm:$0xff pattern:$0x75316420] }
 0x1af   : > { %4821 = vmatprep.mubr.bf16.mxu0 %v2416_v32  ;;  %v7621_v32 = vrot.slane %v2369_v47, %v7336_v58  ;;  %v6204_v47 = vld [vmem:[%s7286_s18 + $0xab0] ss:$8 sps:$4 sm:$0xff]  }
 0x1b0   : > { %4546 = vmatpush1.bf16.msra.mxu1 %v6045_v44  ;;  %v6132_v44 = vld [vmem:[%s7286_s18 + $0x9f0] ss:$8 sps:$4 sm:$0xff]  }
 0x1b1   : > { %4792 = vmatpush1.bf16.msra.mxu0 %v6048_v57  ;;  %4547 = vmatprep.subr.bf16.mxu1 %v6053_v59  ;;  %v6137_v57 = vld [vmem:[%s7286_s18 + $0x404] ss:$8 sps:$4 sm:$0xff]  }
 0x1b2   : > { %4793 = vmatprep.subr.bf16.mxu0 %v6056_v43  ;;  %v6140_v59 = vld [vmem:[%s7286_s18 + $0xa04] ss:$8 sps:$4 sm:$0xff]   ;;  %v2335_v43 = vcombine.high %v7618_v56, %v7618_v56 }
 0x1b4   : > { %4548 = vmatpush1.bf16.msra.mxu1 %v6051_v50  ;;  %v2385_v50 = vcombine.high %v7621_v32, %v7621_v32 }
 0x1b5   : > { %4794 = vmatpush1.bf16.msra.mxu0 %v6054_v60  ;;  %4549 = vmatprep.subr.bf16.mxu1 %v6059_v62  ;;  %v6135_v60 = vld [vmem:[%s7286_s18 + $0x400] ss:$8 sps:$4 sm:$0xff]   ;;  %v2317_v62 = vcombine.high %v7542_v49, %v7542_v49 }
 0x1b6   : > { %4795 = vmatprep.subr.bf16.mxu0 %v6062_v63  ;;  %v2414_v63 = vcombine.high %v7546_v52, %v7546_v52  ;;  %v7645_v49 = vrot.slane %v2385_v50, %v7336_v58  ;;  %v6149_v52 = vld [vmem:[%s7286_s18 + $0x424] ss:$8 sps:$4 sm:$0xff]  }
 0x1b7   : > { %v6224_v50 = vld [vmem:[%s7286_s18 + $0xae4] ss:$8 sps:$4 sm:$0xff]  }
 0x1b8   : > { %4550 = vmatpush1.bf16.msra.mxu1 %v6057_v0  ;;  %v6138_v0 = vld [vmem:[%s7286_s18 + $0xa00] ss:$8 sps:$4 sm:$0xff]  }
 0x1b9   : > { %4796 = vmatpush1.bf16.msra.mxu0 %v6060_v1  ;;  %4551 = vmatprep.subr.bf16.mxu1 %v6065_v2  ;;  %v6143_v1 = vld [vmem:[%s7286_s18 + $0x414] ss:$8 sps:$4 sm:$0xff]  }
 0x1ba   : > { %4797 = vmatprep.subr.bf16.mxu0 %v6068_v3  ;;  %v6146_v2 = vld [vmem:[%s7286_s18 + $0xa14] ss:$8 sps:$4 sm:$0xff]   ;;  %v6141_v3 = vld [vmem:[%s7286_s18 + $0x410] ss:$8 sps:$4 sm:$0xff]  }
 0x1bc   : > { %4552 = vmatpush1.bf16.msra.mxu1 %v6063_v4  ;;  %v6144_v4 = vld [vmem:[%s7286_s18 + $0xa10] ss:$8 sps:$4 sm:$0xff]  }
 0x1bd   : > { %4798 = vmatpush1.bf16.msra.mxu0 %v6066_v5  ;;  %4553 = vmatprep.subr.bf16.mxu1 %v6071_v6  ;;  %v7642_v5 = vrot.slane %v2335_v43, %v7336_v58  ;;  %v6152_v6 = vld [vmem:[%s7286_s18 + $0xa24] ss:$8 sps:$4 sm:$0xff]  }
 0x1be   : > { %4799 = vmatprep.subr.bf16.mxu0 %v6074_v7  ;;  %v6147_v7 = vld [vmem:[%s7286_s18 + $0x420] ss:$8 sps:$4 sm:$0xff]   ;;  %v6221_v43 = vld [vmem:[%s7286_s18 + $0x4e4] ss:$8 sps:$4 sm:$0xff]  }
 0x1c0   : > { %4554 = vmatpush1.bf16.msra.mxu1 %v6069_v8  ;;  %v6150_v8 = vld [vmem:[%s7286_s18 + $0xa20] ss:$8 sps:$4 sm:$0xff]  }
 0x1c1   : > { %4800 = vmatpush1.bf16.msra.mxu0 %v6072_v9  ;;  %4555 = vmatprep.subr.bf16.mxu1 %v6077_v10  ;;  %v6155_v9 = vld [vmem:[%s7286_s18 + $0x434] ss:$8 sps:$4 sm:$0xff]  }
 0x1c2   : > { %4801 = vmatprep.subr.bf16.mxu0 %v6080_v11  ;;  %v6158_v10 = vld [vmem:[%s7286_s18 + $0xa34] ss:$8 sps:$4 sm:$0xff]   ;;  %v6153_v11 = vld [vmem:[%s7286_s18 + $0x430] ss:$8 sps:$4 sm:$0xff]  }
 0x1c4   : > { %4556 = vmatpush1.bf16.msra.mxu1 %v6075_v12  ;;  %v6156_v12 = vld [vmem:[%s7286_s18 + $0xa30] ss:$8 sps:$4 sm:$0xff]  }
 0x1c5   : > { %4802 = vmatpush1.bf16.msra.mxu0 %v6078_v13  ;;  %4557 = vmatprep.subr.bf16.mxu1 %v6083_v14  ;;  %v6161_v13 = vld [vmem:[%s7286_s18 + $0x444] ss:$8 sps:$4 sm:$0xff]  }
 0x1c6   : > { %4803 = vmatprep.subr.bf16.mxu0 %v6086_v15  ;;  %v6164_v14 = vld [vmem:[%s7286_s18 + $0xa44] ss:$8 sps:$4 sm:$0xff]   ;;  %v6159_v15 = vld [vmem:[%s7286_s18 + $0x440] ss:$8 sps:$4 sm:$0xff]  }
 0x1c8   : > { %4558 = vmatpush1.bf16.msra.mxu1 %v6081_v16  ;;  %v6162_v16 = vld [vmem:[%s7286_s18 + $0xa40] ss:$8 sps:$4 sm:$0xff]  }
 0x1c9   : > { %4804 = vmatpush1.bf16.msra.mxu0 %v6084_v17  ;;  %4559 = vmatprep.subr.bf16.mxu1 %v6089_v18  ;;  %v6167_v17 = vld [vmem:[%s7286_s18 + $0x454] ss:$8 sps:$4 sm:$0xff]  }
 0x1ca   : > { %4805 = vmatprep.subr.bf16.mxu0 %v6092_v19  ;;  %v6170_v18 = vld [vmem:[%s7286_s18 + $0xa54] ss:$8 sps:$4 sm:$0xff]   ;;  %v6165_v19 = vld [vmem:[%s7286_s18 + $0x450] ss:$8 sps:$4 sm:$0xff]  }
 0x1cc   : > { %4560 = vmatpush1.bf16.msra.mxu1 %v6087_v20  ;;  %v6168_v20 = vld [vmem:[%s7286_s18 + $0xa50] ss:$8 sps:$4 sm:$0xff]  }
 0x1cd   : > { %4806 = vmatpush1.bf16.msra.mxu0 %v6090_v21  ;;  %4561 = vmatprep.subr.bf16.mxu1 %v6095_v22  ;;  %v6173_v21 = vld [vmem:[%s7286_s18 + $0x464] ss:$8 sps:$4 sm:$0xff]  }
 0x1ce   : > { %4807 = vmatprep.subr.bf16.mxu0 %v6098_v23  ;;  %v6176_v22 = vld [vmem:[%s7286_s18 + $0xa64] ss:$8 sps:$4 sm:$0xff]   ;;  %v6171_v23 = vld [vmem:[%s7286_s18 + $0x460] ss:$8 sps:$4 sm:$0xff]  }
 0x1d0   : > { %4562 = vmatpush1.bf16.msra.mxu1 %v6093_v24  ;;  %v6174_v24 = vld [vmem:[%s7286_s18 + $0xa60] ss:$8 sps:$4 sm:$0xff]  }
 0x1d1   : > { %4808 = vmatpush1.bf16.msra.mxu0 %v6096_v25  ;;  %4563 = vmatprep.subr.bf16.mxu1 %v6101_v28  ;;  %v6179_v25 = vld [vmem:[%s7286_s18 + $0x474] ss:$8 sps:$4 sm:$0xff]  }
 0x1d2   : > { %4809 = vmatprep.subr.bf16.mxu0 %v6104_v29  ;;  %v6182_v28 = vld [vmem:[%s7286_s18 + $0xa74] ss:$8 sps:$4 sm:$0xff]   ;;  %v6177_v29 = vld [vmem:[%s7286_s18 + $0x470] ss:$8 sps:$4 sm:$0xff]  }
 0x1d4   : > { %4564 = vmatpush1.bf16.msra.mxu1 %v6099_v30  ;;  %v6180_v30 = vld [vmem:[%s7286_s18 + $0xa70] ss:$8 sps:$4 sm:$0xff]  }
 0x1d5   : > { %4810 = vmatpush1.bf16.msra.mxu0 %v6102_v31  ;;  %4565 = vmatprep.subr.bf16.mxu1 %v6107_v33  ;;  %v6185_v31 = vld [vmem:[%s7286_s18 + $0x484] ss:$8 sps:$4 sm:$0xff]  }
 0x1d6   : > { %4811 = vmatprep.subr.bf16.mxu0 %v6110_v61  ;;  %v6188_v33 = vld [vmem:[%s7286_s18 + $0xa84] ss:$8 sps:$4 sm:$0xff]   ;;  %v6183_v61 = vld [vmem:[%s7286_s18 + $0x480] ss:$8 sps:$4 sm:$0xff]  }
 0x1d8   : > { %4566 = vmatpush1.bf16.msra.mxu1 %v6105_v34  ;;  %v6186_v34 = vld [vmem:[%s7286_s18 + $0xa80] ss:$8 sps:$4 sm:$0xff]  }
 0x1d9   : > { %4812 = vmatpush1.bf16.msra.mxu0 %v6108_v35  ;;  %4567 = vmatprep.subr.bf16.mxu1 %v6113_v36  ;;  %v6191_v35 = vld [vmem:[%s7286_s18 + $0x494] ss:$8 sps:$4 sm:$0xff]  }
 0x1da   : > { %4813 = vmatprep.subr.bf16.mxu0 %v6116_v37  ;;  %v6194_v36 = vld [vmem:[%s7286_s18 + $0xa94] ss:$8 sps:$4 sm:$0xff]   ;;  %v6189_v37 = vld [vmem:[%s7286_s18 + $0x490] ss:$8 sps:$4 sm:$0xff]  }
 0x1dc   : > { %4568 = vmatpush1.bf16.msra.mxu1 %v6111_v38  ;;  %v6192_v38 = vld [vmem:[%s7286_s18 + $0xa90] ss:$8 sps:$4 sm:$0xff]  }
 0x1dd   : > { %4814 = vmatpush1.bf16.msra.mxu0 %v6114_v39  ;;  %4569 = vmatprep.subr.bf16.mxu1 %v6119_v40  ;;  %v6197_v39 = vld [vmem:[%s7286_s18 + $0x4a4] ss:$8 sps:$4 sm:$0xff]  }
 0x1de   : > { %4815 = vmatprep.subr.bf16.mxu0 %v6122_v41  ;;  %v6200_v40 = vld [vmem:[%s7286_s18 + $0xaa4] ss:$8 sps:$4 sm:$0xff]   ;;  %v6195_v41 = vld [vmem:[%s7286_s18 + $0x4a0] ss:$8 sps:$4 sm:$0xff]  }
 0x1e0   : > { %4570 = vmatpush1.bf16.msra.mxu1 %v6117_v42  ;;  %v6198_v42 = vld [vmem:[%s7286_s18 + $0xaa0] ss:$8 sps:$4 sm:$0xff]  }
 0x1e1   : > { %4816 = vmatpush1.bf16.msra.mxu0 %v6120_v27  ;;  %4571 = vmatprep.subr.bf16.mxu1 %v6125_v45  ;;  %v6203_v27 = vld [vmem:[%s7286_s18 + $0x4b4] ss:$8 sps:$4 sm:$0xff]  }
 0x1e2   : > { %4817 = vmatprep.subr.bf16.mxu0 %v6128_v46  ;;  %v6206_v45 = vld [vmem:[%s7286_s18 + $0xab4] ss:$8 sps:$4 sm:$0xff]   ;;  %v6201_v46 = vld [vmem:[%s7286_s18 + $0x4b0] ss:$8 sps:$4 sm:$0xff]  }
 0x1e4   : > { %4572 = vmatpush1.bf16.msra.mxu1 %v6123_v48  ;;  %v6209_v48 = vld [vmem:[%s7286_s18 + $0x4c4] ss:$8 sps:$4 sm:$0xff]  }
 0x1e5   : > { %4818 = vmatpush1.bf16.msra.mxu0 %v6126_v53  ;;  %4573 = vmatprep.subr.bf16.mxu1 %v6131_v54  ;;  %v6212_v53 = vld [vmem:[%s7286_s18 + $0xac4] ss:$8 sps:$4 sm:$0xff]   ;;  %v6207_v54 = vld [vmem:[%s7286_s18 + $0x4c0] ss:$8 sps:$4 sm:$0xff]  }
 0x1e6   : > { %4819 = vmatprep.subr.bf16.mxu0 %v6134_v55  ;;  %v6210_v55 = vld [vmem:[%s7286_s18 + $0xac0] ss:$8 sps:$4 sm:$0xff]  }
 0x1e8   : > { %4574 = vmatpush1.bf16.msra.mxu1 %v6129_v26  ;;  %v6215_v26 = vld [vmem:[%s7286_s18 + $0x4d4] ss:$8 sps:$4 sm:$0xff]  }
 0x1e9   : > { %4820 = vmatpush1.bf16.msra.mxu0 %v6132_v44  ;;  %4584 = vmatprep.subr.bf16.mxu1 %v6137_v57  ;;  %v6218_v44 = vld [vmem:[%s7286_s18 + $0xad4] ss:$8 sps:$4 sm:$0xff]   ;;  %v6213_v57 = vld [vmem:[%s7286_s18 + $0x4d0] ss:$8 sps:$4 sm:$0xff]  }
 0x1ea   : > { %4830 = vmatprep.subr.bf16.mxu0 %v6140_v59  ;;  %v6216_v59 = vld [vmem:[%s7286_s18 + $0xad0] ss:$8 sps:$4 sm:$0xff]  }
 0x1eb   : > { %4576 = vmatmul.mubr.bf16.vlgmr.msra.gmra.mrb[0].mxu1 %v2317_v62  ;;  %v6222_v62 = vld [vmem:[%s7286_s18 + $0xae0] ss:$8 sps:$4 sm:$0xff]  }
 0x1ec   : > { %4822 = vmatmul.mubr.bf16.vlgmr.msra.gmra.mrb[0].mxu0 %v2414_v63  ;;  %4585 = vmatpush1.bf16.msra.mxu1 %v6135_v60  ;;  %v6219_v60 = vld [vmem:[%s7286_s18 + $0x4e0] ss:$8 sps:$4 sm:$0xff]   ;;  %v6227_v63 = vld [vmem:[%s7286_s18 + $0x4f4] ss:$8 sps:$4 sm:$0xff]  }
 0x1ed   : > { %4831 = vmatpush1.bf16.msra.mxu0 %v6138_v0  ;;  %4586 = vmatprep.subr.bf16.mxu1 %v6143_v1  ;;  %v6230_v0 = vld [vmem:[%s7286_s18 + $0xaf4] ss:$8 sps:$4 sm:$0xff]   ;;  %v6225_v1 = vld [vmem:[%s7286_s18 + $0x4f0] ss:$8 sps:$4 sm:$0xff]  }
 0x1ee   : > { %4832 = vmatprep.subr.bf16.mxu0 %v6146_v2  ;;  %4616 = vmatprep.mubr.bf16.mxu1 %v7642_v5  ;;  %v6228_v2 = vld [vmem:[%s7286_s18 + $0xaf0] ss:$8 sps:$4 sm:$0xff]  }
 0x1ef   : > { %4862 = vmatprep.mubr.bf16.mxu0 %v7645_v49 }
 0x1f0   : > { %4587 = vmatpush1.bf16.msra.mxu1 %v6141_v3  ;;  %v6233_v3 = vld [vmem:[%s7286_s18 + $0x504] ss:$8 sps:$4 sm:$0xff]  }
 0x1f1   : > { %4833 = vmatpush1.bf16.msra.mxu0 %v6144_v4  ;;  %4588 = vmatprep.subr.bf16.mxu1 %v6149_v52  ;;  %v6237_v4 = vld [vmem:[%s7286_s18 + $0xb04] ss:$8 sps:$4 sm:$0xff]   ;;  %v7709_v52 = vrot.slane %v7618_v56, %v7336_v58  ;;  %v2367_v56 = vcombine.high %v7642_v5, %v7642_v5 }
 0x1f2   : > { %4834 = vmatprep.subr.bf16.mxu0 %v6152_v6  ;;  %v7713_v6 = vrot.slane %v7621_v32, %v7336_v58  ;;  %v6238_v32 = vld [vmem:[%s7286_s18 + $0x510] ss:$8 sps:$4 sm:$0xff]   ;;  %v6246_v5 = vld [vmem:[%s7286_s18 + $0x524] ss:$8 sps:$4 sm:$0xff]  }
 0x1f4   : > { %4589 = vmatpush1.bf16.msra.mxu1 %v6147_v7  ;;  %v6231_v7 = vld [vmem:[%s7286_s18 + $0x500] ss:$8 sps:$4 sm:$0xff]  }
 0x1f5   : > { %4835 = vmatpush1.bf16.msra.mxu0 %v6150_v8  ;;  %4590 = vmatprep.subr.bf16.mxu1 %v6155_v9  ;;  %v6235_v8 = vld [vmem:[%s7286_s18 + $0xb00] ss:$8 sps:$4 sm:$0xff]   ;;  %v6240_v9 = vld [vmem:[%s7286_s18 + $0x514] ss:$8 sps:$4 sm:$0xff]  }
 0x1f6   : > { %4836 = vmatprep.subr.bf16.mxu0 %v6158_v10  ;;  %v6243_v10 = vld [vmem:[%s7286_s18 + $0xb14] ss:$8 sps:$4 sm:$0xff]  }
 0x1f8   : > { %4591 = vmatpush1.bf16.msra.mxu1 %v6153_v11  ;;  %v2417_v11 = vcombine.high %v7645_v49, %v7645_v49  ;;  %v6244_v49 = vld [vmem:[%s7286_s18 + $0x520] ss:$8 sps:$4 sm:$0xff]  }
 0x1f9   : > { %4837 = vmatpush1.bf16.msra.mxu0 %v6156_v12  ;;  %4592 = vmatprep.subr.bf16.mxu1 %v6161_v13  ;;  %v6241_v12 = vld [vmem:[%s7286_s18 + $0xb10] ss:$8 sps:$4 sm:$0xff]   ;;  %v6249_v13 = vld [vmem:[%s7286_s18 + $0xb24] ss:$8 sps:$4 sm:$0xff]  }
 0x1fa   : > { %4838 = vmatprep.subr.bf16.mxu0 %v6164_v14  ;;  %v6247_v14 = vld [vmem:[%s7286_s18 + $0xb20] ss:$8 sps:$4 sm:$0xff]  }
 0x1fc   : > { %4593 = vmatpush1.bf16.msra.mxu1 %v6159_v15  ;;  %v6252_v15 = vld [vmem:[%s7286_s18 + $0x534] ss:$8 sps:$4 sm:$0xff]  }
 0x1fd   : > { %4839 = vmatpush1.bf16.msra.mxu0 %v6162_v16  ;;  %4594 = vmatprep.subr.bf16.mxu1 %v6167_v17  ;;  %v6255_v16 = vld [vmem:[%s7286_s18 + $0xb34] ss:$8 sps:$4 sm:$0xff]   ;;  %v6250_v17 = vld [vmem:[%s7286_s18 + $0x530] ss:$8 sps:$4 sm:$0xff]  }
 0x1fe   : > { %4840 = vmatprep.subr.bf16.mxu0 %v6170_v18  ;;  %v6253_v18 = vld [vmem:[%s7286_s18 + $0xb30] ss:$8 sps:$4 sm:$0xff]  }
 0x200   : > { %4595 = vmatpush1.bf16.msra.mxu1 %v6165_v19  ;;  %v6258_v19 = vld [vmem:[%s7286_s18 + $0x544] ss:$8 sps:$4 sm:$0xff]  }
 0x201   : > { %4841 = vmatpush1.bf16.msra.mxu0 %v6168_v20  ;;  %4596 = vmatprep.subr.bf16.mxu1 %v6173_v21  ;;  %v6261_v20 = vld [vmem:[%s7286_s18 + $0xb44] ss:$8 sps:$4 sm:$0xff]   ;;  %v6256_v21 = vld [vmem:[%s7286_s18 + $0x540] ss:$8 sps:$4 sm:$0xff]  }
 0x202   : > { %4842 = vmatprep.subr.bf16.mxu0 %v6176_v22  ;;  %v6259_v22 = vld [vmem:[%s7286_s18 + $0xb40] ss:$8 sps:$4 sm:$0xff]  }
 0x204   : > { %4597 = vmatpush1.bf16.msra.mxu1 %v6171_v23  ;;  %v6264_v23 = vld [vmem:[%s7286_s18 + $0x554] ss:$8 sps:$4 sm:$0xff]  }
 0x205   : > { %4843 = vmatpush1.bf16.msra.mxu0 %v6174_v24  ;;  %4598 = vmatprep.subr.bf16.mxu1 %v6179_v25  ;;  %v6267_v24 = vld [vmem:[%s7286_s18 + $0xb54] ss:$8 sps:$4 sm:$0xff]   ;;  %v6262_v25 = vld [vmem:[%s7286_s18 + $0x550] ss:$8 sps:$4 sm:$0xff]  }
 0x206   : > { %4844 = vmatprep.subr.bf16.mxu0 %v6182_v28  ;;  %v6265_v28 = vld [vmem:[%s7286_s18 + $0xb50] ss:$8 sps:$4 sm:$0xff]  }
 0x208   : > { %4599 = vmatpush1.bf16.msra.mxu1 %v6177_v29  ;;  %v6270_v29 = vld [vmem:[%s7286_s18 + $0x564] ss:$8 sps:$4 sm:$0xff]  }
 0x209   : > { %4845 = vmatpush1.bf16.msra.mxu0 %v6180_v30  ;;  %4600 = vmatprep.subr.bf16.mxu1 %v6185_v31  ;;  %v6273_v30 = vld [vmem:[%s7286_s18 + $0xb64] ss:$8 sps:$4 sm:$0xff]   ;;  %v6268_v31 = vld [vmem:[%s7286_s18 + $0x560] ss:$8 sps:$4 sm:$0xff]  }
 0x20a   : > { %4846 = vmatprep.subr.bf16.mxu0 %v6188_v33  ;;  %v6271_v33 = vld [vmem:[%s7286_s18 + $0xb60] ss:$8 sps:$4 sm:$0xff]  }
 0x20c   : > { %4601 = vmatpush1.bf16.msra.mxu1 %v6183_v61  ;;  %v6276_v61 = vld [vmem:[%s7286_s18 + $0x574] ss:$8 sps:$4 sm:$0xff]  }
 0x20d   : > { %4847 = vmatpush1.bf16.msra.mxu0 %v6186_v34  ;;  %4602 = vmatprep.subr.bf16.mxu1 %v6191_v35  ;;  %v6279_v34 = vld [vmem:[%s7286_s18 + $0xb74] ss:$8 sps:$4 sm:$0xff]   ;;  %v6274_v35 = vld [vmem:[%s7286_s18 + $0x570] ss:$8 sps:$4 sm:$0xff]  }
 0x20e   : > { %4848 = vmatprep.subr.bf16.mxu0 %v6194_v36  ;;  %v6277_v36 = vld [vmem:[%s7286_s18 + $0xb70] ss:$8 sps:$4 sm:$0xff]  }
 0x210   : > { %4603 = vmatpush1.bf16.msra.mxu1 %v6189_v37  ;;  %v6282_v37 = vld [vmem:[%s7286_s18 + $0x584] ss:$8 sps:$4 sm:$0xff]  }
 0x211   : > { %4849 = vmatpush1.bf16.msra.mxu0 %v6192_v38  ;;  %4604 = vmatprep.subr.bf16.mxu1 %v6197_v39  ;;  %v6285_v38 = vld [vmem:[%s7286_s18 + $0xb84] ss:$8 sps:$4 sm:$0xff]   ;;  %v6280_v39 = vld [vmem:[%s7286_s18 + $0x580] ss:$8 sps:$4 sm:$0xff]  }
 0x212   : > { %4850 = vmatprep.subr.bf16.mxu0 %v6200_v40  ;;  %v6283_v40 = vld [vmem:[%s7286_s18 + $0xb80] ss:$8 sps:$4 sm:$0xff]  }
 0x214   : > { %4605 = vmatpush1.bf16.msra.mxu1 %v6195_v41  ;;  %v6288_v41 = vld [vmem:[%s7286_s18 + $0x594] ss:$8 sps:$4 sm:$0xff]  }
 0x215   : > { %4851 = vmatpush1.bf16.msra.mxu0 %v6198_v42  ;;  %4606 = vmatprep.subr.bf16.mxu1 %v6203_v27  ;;  %v6291_v42 = vld [vmem:[%s7286_s18 + $0xb94] ss:$8 sps:$4 sm:$0xff]   ;;  %v6286_v27 = vld [vmem:[%s7286_s18 + $0x590] ss:$8 sps:$4 sm:$0xff]  }
 0x216   : > { %4852 = vmatprep.subr.bf16.mxu0 %v6206_v45  ;;  %v6289_v45 = vld [vmem:[%s7286_s18 + $0xb90] ss:$8 sps:$4 sm:$0xff]  }
 0x218   : > { %4607 = vmatpush1.bf16.msra.mxu1 %v6201_v46  ;;  %v6294_v46 = vld [vmem:[%s7286_s18 + $0x5a4] ss:$8 sps:$4 sm:$0xff]  }
 0x219   : > { %4853 = vmatpush1.bf16.msra.mxu0 %v6204_v47  ;;  %4608 = vmatprep.subr.bf16.mxu1 %v6209_v48  ;;  %v6297_v47 = vld [vmem:[%s7286_s18 + $0xba4] ss:$8 sps:$4 sm:$0xff]   ;;  %v6292_v48 = vld [vmem:[%s7286_s18 + $0x5a0] ss:$8 sps:$4 sm:$0xff]  }
 0x21a   : > { %4854 = vmatprep.subr.bf16.mxu0 %v6212_v53  ;;  %v6295_v53 = vld [vmem:[%s7286_s18 + $0xba0] ss:$8 sps:$4 sm:$0xff]  }
 0x21c   : > { %4609 = vmatpush1.bf16.msra.mxu1 %v6207_v54  ;;  %v6300_v54 = vld [vmem:[%s7286_s18 + $0x5b4] ss:$8 sps:$4 sm:$0xff]  }
 0x21d   : > { %4855 = vmatpush1.bf16.msra.mxu0 %v6210_v55  ;;  %4610 = vmatprep.subr.bf16.mxu1 %v6215_v26  ;;  %v6303_v55 = vld [vmem:[%s7286_s18 + $0xbb4] ss:$8 sps:$4 sm:$0xff]   ;;  %v6298_v26 = vld [vmem:[%s7286_s18 + $0x5b0] ss:$8 sps:$4 sm:$0xff]  }
 0x21e   : > { %4856 = vmatprep.subr.bf16.mxu0 %v6218_v44  ;;  %v6301_v44 = vld [vmem:[%s7286_s18 + $0xbb0] ss:$8 sps:$4 sm:$0xff]  }
 0x220   : > { %4611 = vmatpush1.bf16.msra.mxu1 %v6213_v57  ;;  %v6306_v57 = vld [vmem:[%s7286_s18 + $0x5c4] ss:$8 sps:$4 sm:$0xff]  }
 0x221   : > { %4857 = vmatpush1.bf16.msra.mxu0 %v6216_v59  ;;  %4612 = vmatprep.subr.bf16.mxu1 %v6221_v43  ;;  %v6309_v59 = vld [vmem:[%s7286_s18 + $0xbc4] ss:$8 sps:$4 sm:$0xff]   ;;  %v6304_v43 = vld [vmem:[%s7286_s18 + $0x5c0] ss:$8 sps:$4 sm:$0xff]  }
 0x222   : > { %4858 = vmatprep.subr.bf16.mxu0 %v6224_v50  ;;  %v6307_v50 = vld [vmem:[%s7286_s18 + $0xbc0] ss:$8 sps:$4 sm:$0xff]  }
 0x224   : > { %4613 = vmatpush1.bf16.msra.mxu1 %v6219_v60  ;;  %v6312_v60 = vld [vmem:[%s7286_s18 + $0x5d4] ss:$8 sps:$4 sm:$0xff]  }
 0x225   : > { %4859 = vmatpush1.bf16.msra.mxu0 %v6222_v62  ;;  %4614 = vmatprep.subr.bf16.mxu1 %v6227_v63  ;;  %v6315_v62 = vld [vmem:[%s7286_s18 + $0xbd4] ss:$8 sps:$4 sm:$0xff]   ;;  %v6310_v63 = vld [vmem:[%s7286_s18 + $0x5d0] ss:$8 sps:$4 sm:$0xff]  }
 0x226   : > { %4860 = vmatprep.subr.bf16.mxu0 %v6230_v0  ;;  %v6313_v0 = vld [vmem:[%s7286_s18 + $0xbd0] ss:$8 sps:$4 sm:$0xff]  }
 0x228   : > { %4615 = vmatpush1.bf16.msra.mxu1 %v6225_v1  ;;  %v6318_v1 = vld [vmem:[%s7286_s18 + $0x5e4] ss:$8 sps:$4 sm:$0xff]  }
 0x229   : > { %4861 = vmatpush1.bf16.msra.mxu0 %v6228_v2  ;;  %4625 = vmatprep.subr.bf16.mxu1 %v6233_v3  ;;  %v6321_v2 = vld [vmem:[%s7286_s18 + $0xbe4] ss:$8 sps:$4 sm:$0xff]   ;;  %v6316_v3 = vld [vmem:[%s7286_s18 + $0x5e0] ss:$8 sps:$4 sm:$0xff]  }
 0x22a   : > { %4871 = vmatprep.subr.bf16.mxu0 %v6237_v4  ;;  %v6319_v4 = vld [vmem:[%s7286_s18 + $0xbe0] ss:$8 sps:$4 sm:$0xff]  }
 0x22b   : > { %4617 = vmatmul.mubr.bf16.vlgmr.msra.gmra.mrb[0].mxu1 %v7709_v52 }
 0x22c   : > { %4863 = vmatmul.mubr.bf16.vlgmr.msra.gmra.mrb[0].mxu0 %v7713_v6  ;;  %4626 = vmatpush1.bf16.msra.mxu1 %v6231_v7  ;;  %v6324_v7 = vld [vmem:[%s7286_s18 + $0x5f4] ss:$8 sps:$4 sm:$0xff]  }
 0x22d   : > { %4872 = vmatpush1.bf16.msra.mxu0 %v6235_v8  ;;  %4627 = vmatprep.subr.bf16.mxu1 %v6240_v9  ;;  %v6327_v8 = vld [vmem:[%s7286_s18 + $0xbf4] ss:$8 sps:$4 sm:$0xff]   ;;  %v6322_v9 = vld [vmem:[%s7286_s18 + $0x5f0] ss:$8 sps:$4 sm:$0xff]  }
 0x22e   : > { %4873 = vmatprep.subr.bf16.mxu0 %v6243_v10  ;;  %4657 = vmatprep.mubr.bf16.mxu1 %v2367_v56  ;;  %v6325_v10 = vld [vmem:[%s7286_s18 + $0xbf0] ss:$8 sps:$4 sm:$0xff]   ;;  %v6330_v56 = vld [vmem:[%s7286_s18 + $0xc04] ss:$8 sps:$4 sm:$0xff]  }
 0x22f   : > { %4903 = vmatprep.mubr.bf16.mxu0 %v2417_v11  ;;  %v6340_v11 = vld [vmem:[%s7284_s20 + $0x40] sm:$0xff]  }
 0x230   : > { %4628 = vmatpush1.bf16.msra.mxu1 %v6238_v32  ;;  %v2365_v32 = vcombine.high %v7709_v52, %v7709_v52  ;;  %v6331_v52 = vld [vmem:[%s7286_s18 + $0xc10] ss:$8 sps:$4 sm:$0xff]  }
 0x231   : > { %4874 = vmatpush1.bf16.msra.mxu0 %v6241_v12  ;;  %4629 = vmatprep.subr.bf16.mxu1 %v6246_v5  ;;  %v2415_v12 = vcombine.high %v7713_v6, %v7713_v6  ;;  %v6328_v5 = vld [vmem:[%s7286_s18 + $0xc00] ss:$8 sps:$4 sm:$0xff]   ;;  %v6336_v6 = vld [vmem:[%s7286_s18 + $0xc24] ss:$8 sps:$4 sm:$0xff]  }
 0x232   : > { %4875 = vmatprep.subr.bf16.mxu0 %v6249_v13  ;;  %v6333_v13 = vld [vmem:[%s7286_s18 + $0xc14] ss:$8 sps:$4 sm:$0xff]  }
 0x234   : > { %4630 = vmatpush1.bf16.msra.mxu1 %v6244_v49  ;;  %v6341_v49 = vld [vmem:[%s7284_s20] sm:$0xff]  }
 0x235   : > { %4876 = vmatpush1.bf16.msra.mxu0 %v6247_v14  ;;  %4631 = vmatprep.subr.bf16.mxu1 %v6252_v15  ;;  %v6342_v14 = vld [vmem:[%s7284_s20 + $0x48] sm:$0xff]   ;;  %v6414_v15 = vmov 0  }
 0x236   : > { %4877 = vmatprep.subr.bf16.mxu0 %v6255_v16  ;;  %v6343_v16 = vld [vmem:[%s7284_s20 + $0x8] sm:$0xff]  }
 0x238   : > { %4632 = vmatpush1.bf16.msra.mxu1 %v6250_v17  ;;  %v6334_v17 = vld [vmem:[%s7286_s18 + $0xc20] ss:$8 sps:$4 sm:$0xff]  }
 0x239   : > { %4878 = vmatpush1.bf16.msra.mxu0 %v6253_v18  ;;  %4633 = vmatprep.subr.bf16.mxu1 %v6258_v19  ;;  %v6339_v18 = vld [vmem:[%s7286_s18 + $0xc34] ss:$8 sps:$4 sm:$0xff]   ;;  %v6337_v19 = vld [vmem:[%s7286_s18 + $0xc30] ss:$8 sps:$4 sm:$0xff]  }
 0x23a   : > { %4879 = vmatprep.subr.bf16.mxu0 %v6261_v20  ;;  %v5226_v20 = vld.sshfl [vmem:[%s7859_s0 + $0x18] sm:$0x1 pattern:$0x75316420] }
 0x23c   : > { %4634 = vmatpush1.bf16.msra.mxu1 %v6256_v21  ;;  %v2431_v21 = vrot.slane %v5226_v20, %v7336_v58  ;;  %v6350_v58 = vld [vmem:[%s7284_s20 + $0x68] sm:$0xff]  }
 0x23d   : > { %4880 = vmatpush1.bf16.msra.mxu0 %v6259_v22  ;;  %4635 = vmatprep.subr.bf16.mxu1 %v6264_v23  ;;  %v6344_v22 = vld [vmem:[%s7284_s20 + $0x50] sm:$0xff]  }
 0x23e   : > { %4881 = vmatprep.subr.bf16.mxu0 %v6267_v24  ;;  %v6345_v23 = vld [vmem:[%s7284_s20 + $0x10] sm:$0xff]   ;;  %v6346_v24 = vld [vmem:[%s7284_s20 + $0x58] sm:$0xff]  }
 0x240   : > { %4636 = vmatpush1.bf16.msra.mxu1 %v6262_v25  ;;  %v6347_v25 = vld [vmem:[%s7284_s20 + $0x18] sm:$0xff]  }
 0x241   : > { %4882 = vmatpush1.bf16.msra.mxu0 %v6265_v28  ;;  %4637 = vmatprep.subr.bf16.mxu1 %v6270_v29  ;;  %v6348_v28 = vld [vmem:[%s7284_s20 + $0x60] sm:$0xff]  }
 0x242   : > { %4883 = vmatprep.subr.bf16.mxu0 %v6273_v30  ;;  %v6349_v29 = vld [vmem:[%s7284_s20 + $0x20] sm:$0xff]   ;;  %v6351_v30 = vld [vmem:[%s7284_s20 + $0x28] sm:$0xff]  }
 0x244   : > { %4638 = vmatpush1.bf16.msra.mxu1 %v6268_v31  ;;  %v6352_v31 = vld [vmem:[%s7284_s20 + $0x70] sm:$0xff]  }
 0x245   : > { %4884 = vmatpush1.bf16.msra.mxu0 %v6271_v33  ;;  %4639 = vmatprep.subr.bf16.mxu1 %v6276_v61  ;;  %v6353_v33 = vld [vmem:[%s7284_s20 + $0x30] sm:$0xff]   ;;  %v6354_v61 = vld [vmem:[%s7284_s20 + $0x78] sm:$0xff]  }
 0x246   : > { %4885 = vmatprep.subr.bf16.mxu0 %v6279_v34  ;;  %v6355_v34 = vld [vmem:[%s7284_s20 + $0x38] sm:$0xff]  }
 0x248   : > { %4640 = vmatpush1.bf16.msra.mxu1 %v6274_v35 }
 0x249   : > { %4886 = vmatpush1.bf16.msra.mxu0 %v6277_v36  ;;  %4641 = vmatprep.subr.bf16.mxu1 %v6282_v37 }
 0x24a   : > { %4887 = vmatprep.subr.bf16.mxu0 %v6285_v38 }
 0x24c   : > { %4642 = vmatpush1.bf16.msra.mxu1 %v6280_v39  ;;  %v2259_v39 = vsub.s32 0, %v7328_v51 }
 0x24d   : > { %4888 = vmatpush1.bf16.msra.mxu0 %v6283_v40  ;;  %4643 = vmatprep.subr.bf16.mxu1 %v6288_v41  ;;  %v2255_v40 = vld [vmem:[%s1844_s14] sm:$0x3]  ;;  %v2263_v41 = vsub.s32 1, %v7328_v51 }
 0x24e   : > { %4889 = vmatprep.subr.bf16.mxu0 %v6291_v42  ;;  %v2260_v42 = vrot.slane %v2255_v40, %v2259_v39 }
 0x250   : > { %4644 = vmatpush1.bf16.msra.mxu1 %v6286_v27  ;;  %v2264_v27 = vrot.slane %v2255_v40, %v2263_v41 }
 0x251   : > { %4890 = vmatpush1.bf16.msra.mxu0 %v6289_v45  ;;  %4645 = vmatprep.subr.bf16.mxu1 %v6294_v46 }
 0x252   : > { %4891 = vmatprep.subr.bf16.mxu0 %v6297_v47 }
 0x254   : > { %4646 = vmatpush1.bf16.msra.mxu1 %v6292_v48 }
 0x255   : > { %4892 = vmatpush1.bf16.msra.mxu0 %v6295_v53  ;;  %4647 = vmatprep.subr.bf16.mxu1 %v6300_v54 }
 0x256   : > { %4893 = vmatprep.subr.bf16.mxu0 %v6303_v55 }
 0x258   : > { %4648 = vmatpush1.bf16.msra.mxu1 %v6298_v26 }
 0x259   : > { %4894 = vmatpush1.bf16.msra.mxu0 %v6301_v44  ;;  %4649 = vmatprep.subr.bf16.mxu1 %v6306_v57 }
 0x25a   : > { %4895 = vmatprep.subr.bf16.mxu0 %v6309_v59 }
 0x25c   : > { %4650 = vmatpush1.bf16.msra.mxu1 %v6304_v43 }
 0x25d   : > { %4896 = vmatpush1.bf16.msra.mxu0 %v6307_v50  ;;  %4651 = vmatprep.subr.bf16.mxu1 %v6312_v60  ;;  %v4957_v60 = vld [vmem:[#allocation2] sm:$0x3] }
 0x25e   : > { %4897 = vmatprep.subr.bf16.mxu0 %v6315_v62 }
 0x260   : > { %4652 = vmatpush1.bf16.msra.mxu1 %v6310_v63 }
 0x261   : > { %4898 = vmatpush1.bf16.msra.mxu0 %v6313_v0  ;;  %4653 = vmatprep.subr.bf16.mxu1 %v6318_v1 }
 0x262   : > { %4899 = vmatprep.subr.bf16.mxu0 %v6321_v2 }
 0x264   : > { %4654 = vmatpush1.bf16.msra.mxu1 %v6316_v3  ;;  %v5637_v3 = vld [vmem:[%s7863_s4] ss:$0 sm:$0xff] (!%p5636_p11) }
 0x265   : > { %4900 = vmatpush1.bf16.msra.mxu0 %v6319_v4  ;;  %4655 = vmatprep.subr.bf16.mxu1 %v6324_v7 }
 0x266   : > { %4901 = vmatprep.subr.bf16.mxu0 %v6327_v8 }
 0x268   : > { %4656 = vmatpush1.bf16.msra.mxu1 %v6322_v9 }
 0x269   : > { %4902 = vmatpush1.bf16.msra.mxu0 %v6325_v10  ;;  %5643 = vmatprep.subr.bf16.mxu1 %v6340_v11 }
 0x26a   : > { %4912 = vmatprep.subr.bf16.mxu0 %v6330_v56 }
 0x26b   : > { %4658 = vmatmul.mubr.bf16.vlgmr.msra.gmra.mrb[0].mxu1 %v2365_v32 }
 0x26c   : > { %4904 = vmatmul.mubr.bf16.vlgmr.msra.gmra.mrb[0].mxu0 %v2415_v12  ;;  %5644 = vmatpush3.bf16.msra.mxu1 %v6341_v49 }
 0x26d   : > { %4913 = vmatpush1.bf16.msra.mxu0 %v6328_v5  ;;  %4944 = vmatprep.mubr.bf16.mxu0 %v6414_v15 }
 0x26e   : > { %4914 = vmatprep.subr.bf16.mxu0 %v6333_v13  ;;  %5645 = vmatprep.subr.bf16.mxu1 %v6342_v14 }
 0x270   : > { %5646 = vmatpush3.bf16.msra.mxu1 %v6343_v16 }
 0x271   : > { %4915 = vmatpush1.bf16.msra.mxu0 %v6331_v52  ;;  %5647 = vmatprep.subr.bf16.mxu1 %v6344_v22 }
 0x272   : > { %4916 = vmatprep.subr.bf16.mxu0 %v6336_v6 }
 0x274   : > { %5648 = vmatpush3.bf16.msra.mxu1 %v6345_v23 }
 0x275   : > { %4917 = vmatpush1.bf16.msra.mxu0 %v6334_v17  ;;  %5649 = vmatprep.subr.bf16.mxu1 %v6346_v24 }
 0x276   : > { %4918 = vmatprep.subr.bf16.mxu0 %v6339_v18 }
 0x278   : > { %5650 = vmatpush3.bf16.msra.mxu1 %v6347_v25 }
 0x279   : > { %4919 = vmatpush1.bf16.msra.mxu0 %v6337_v19  ;;  %5651 = vmatprep.subr.bf16.mxu1 %v6348_v28 }
 0x27c   : > { %5619 = vmatmul.mubr.msk.bf16.vlgmr.msra.gmra.mrb[0].mxu0 %vm4416_vm1, %v2431_v21  ;;  %5652 = vmatpush3.bf16.msra.mxu1 %v6349_v29 }
 0x27d   : > { %5653 = vmatprep.subr.bf16.mxu1 %v6350_v58 }
 0x280   : > { %5654 = vmatpush3.bf16.msra.mxu1 %v6351_v30 }
 0x281   : > { %5655 = vmatprep.subr.bf16.mxu1 %v6352_v31 }
 0x284   : > { %5656 = vmatpush3.bf16.msra.mxu1 %v6353_v33 }
 0x285   : > { %5657 = vmatprep.subr.bf16.mxu1 %v6354_v61 }
 0x288   : > { %5658 = vmatpush3.bf16.msra.mxu1 %v6355_v34 }
 0x33e   : > { %v4659_v35 = vpop.f32.mrb[0].mxu1 }
 0x33f   : > { %v4661_v36 = vpop.f32.mrb[1].mxu1  ;;  %v5665_v45 = vadd.f32 %v4659_v35, %v2260_v42 }
 0x340   : > { %v4663_v37 = vpop.f32.mrb[2].mxu1  ;;  %v5667_v46 = vadd.f32 %v4661_v36, %v2264_v27 }
 0x341   : > { %v4664_v38 = vpop.f32.mrb[3].mxu1 }
 0x34f   : > { %v4946_v47 = vpop.f32.mrb[0].mxu0 }
 0x350   : > { %v5666_v48 = vadd.f32 %v5665_v45, %v4946_v47  ;;  %v4948_v53 = vpop.f32.mrb[1].mxu0 }
 0x351   : > { %v5668_v54 = vadd.f32 %v5667_v46, %v4948_v53  ;;  %v4950_v55 = vpop.f32.mrb[2].mxu0 }
 0x352   : > { %v4953_v26 = vmax.f32 %v5666_v48, 0.0  ;;  %v4951_v44 = vpop.f32.mrb[3].mxu0 }
 0x353   : > { %v4954_v57 = vmax.f32 %v5668_v54, 0.0 }
 0x354   : > { %v4955_v43 = vpack.c.bf16 %v4953_v26, %v4953_v26 }
 0x355   : > { %v4956_v59 = vpack.c.bf16 %v4954_v57, %v4954_v57 }
 0x357   : > { %5118 = vmatprep.mubr.bf16.mxu1 %v4956_v59 }
 0x358   : > { %5119 = vmatmul.mubr.bf16.vlgmr.msra.gmra.mrb[4].mxu1 %v4955_v43 }
 0x42b   : > { %v5659_v50 = vpop.f32.mrb[4].mxu1  ;;  %5132 = sbr.rel (%p5636_p11) target bundleno = 1084 (0x43c), region = 86 }
 0x42c   : > { %v5660_v62 = vpop.f32.mrb[5].mxu1 }
 0x42d   : > { %v5661_v51 = vadd.f32 %v5660_v62, %v5659_v50  ;;  %v5662_v63 = vpop.f32.mrb[6].mxu1 }
 0x42e   : > { %v5663_v0 = vpop.f32.mrb[7].mxu1 }
 0x42f   : > { %v5126_v1 = vadd.f32 %v5661_v51, %v4957_v60 }
 0x431   : > { %5128 = vst.msk [vmem:[#allocation2] sm:$0x3] %vm5127_vm2, %v5126_v1 }
 0x438   : > { %v5133_v2 = vld [vmem:[#allocation2] sm:$0x3] }
 0x439   : > { %v5141_v4 = vadd.f32 %v5637_v3, %v5133_v2 }
 0x43b   : > { %5142 = vst.msk [vmem:[#allocation4] sm:$0x3] %vm5127_vm2, %v5141_v4 }
 0x43c PF: > { %p5719_p12 = scmp.eq.s32.totalorder %s6462_s21, 1  ;;  %s6415_s13 = smov [#allocation4]  }
 0x43d   : > { %s5150_s14 = sshll.u32 %s6415_s13, 4  ;;  %s5151_s14 = int_to_ptr.vmem [resolvable:$true] %s5150_s14 }
 0x43e   : > { %s6358_s15 = scalar_lea.vmem %s5151_s14, 32  ;;  %p6365_p2 = scmp.lt.s32.totalorder %s5151_s14, %s5151_s14 }
 0x43f   : > { %p6359_p13 = scmp.ne.s32.totalorder %s5151_s14, %s6358_s15  ;;  %p6366_p3 = scmp.lt.s32.totalorder %s6358_s15, %s6358_s15 }
 0x441   : > { %p6360_p0 = pnand %p6359_p13, %p5719_p12  ;;  %p6367_p4 = por %p6366_p3, %p6365_p2 }
 0x443   : > { %p6361_p1 = pneg %p6360_p0 }
 0x445   : > { %p6368_p5 = pnand %p6367_p4, %p6361_p1 }
 0x447   : > { %6371 = shalt.err (!%p6368_p5)
}
 0x448   : > { %s6372_s20 = scalar_lea.hbm %s7864_s5, 32 }
 0x449   : > { %p6373_p6 = scmp.ne.s32.totalorder %s7864_s5, %s6372_s20  ;;  %p6378_p9 = scmp.lt.u32.totalorder %s6372_s20, %s7864_s5 }
 0x44b   : > { %p6374_p7 = pnand %p6373_p6, %p5719_p12 }
 0x44d   : > { %p6375_p8 = pneg %p6374_p7 }
 0x44f   : > { %p6380_p10 = pnand %p6378_p9, %p6375_p8 }
 0x451   : > { %6383 = shalt.err (!%p6380_p10)
}
 0x452   : > { %5716 = dma.vmem_to_hbm [thread:$0]  (%p5719_p12), %s5151_s14, 32, %s7864_s5, [#allocation5]  }
 0x453   : > { %6397 = dma.done.wait (%p5719_p12), [#allocation5], 32  }
 0x454   : > { %6399 = vsyncadd (%p5719_p12), [#allocation5], 4294967264 }
 0x455 PF: > { %p13_p11 = scmp.ge.s32.totalorder %s6465_s22, 4   ;;  %s7865_s18 = smov %s6406_s19 }
 0x456   : > { %s7866_s19 = smov %s6474_s25  ;;  %s7867_s20 = smov %s6465_s22 }
 0x457   :  { %15 = sbr.rel (!%p13_p11) target bundleno = 2 (0x2), region = 124 }
 0x45e   :  { %5163 = vsyncpa [#allocation5], 1 }
 0x45f   :  { %5165 = vsyncpa [#allocation5 + $0x1], 1 }

</bundles_post_ra>
